<compile_context>
chip_gen: v6e
topology: v6e:2x2x1
jax: 0.10.0
libtpu: 0.0.40
codegen_flags: <defaults>
</compile_context>

<pallas_src>
import jax
import jax.numpy as jnp
from jax.experimental import pallas as pl
from jax.experimental.pallas import tpu as pltpu


# ----------------------- deterministic activation set -----------------------
def _relu(x):
    return jnp.maximum(x, 0.0)


def _leaky_relu(x):
    return jnp.where(x >= 0.0, x, 0.1 * x)


def _elu(x):
    # alpha = 1; clamp exp argument so the untaken branch stays finite.
    return jnp.where(x > 0.0, x, jnp.exp(jnp.minimum(x, 0.0)) - 1.0)


def _tanh(x):
    return jnp.tanh(x)


def _sigmoid(x):
    return 1.0 / (1.0 + jnp.exp(-x))


ACT_FNS = (_relu, _leaky_relu, _elu, _tanh, _sigmoid)
NUM_ACTS = len(ACT_FNS)


# ------------------------------ Pallas kernel -------------------------------
def _kan_network_kernel(*refs):
    """refs = (x_ref, [wcat_ref, scale_ref, bias_ref] * L, out_ref).

    x_ref:     (row_tile, f_in)          activations for this row tile
    wcat_ref:  (NUM_ACTS * in_l, out_l)  stacked per-activation weights (W_a^T)
    scale_ref: (1, out_l)                weight_scale.sum(dim=1)
    bias_ref:  (1, out_l)
    out_ref:   (row_tile, f_out)
    """
    x_ref = refs[0]
    out_ref = refs[-1]
    param_refs = refs[1:-1]
    n_layers = len(param_refs) // 3

    h = x_ref[...].astype(jnp.float32)                     # (row_tile, f_in)
    for layer in range(n_layers):
        w_ref = param_refs[3 * layer]
        s_ref = param_refs[3 * layer + 1]
        b_ref = param_refs[3 * layer + 2]
        f_in = w_ref.shape[0] // NUM_ACTS                  # static python int

        acc = None
        for a, act in enumerate(ACT_FNS):
            a_h = act(h)                                   # VPU / EUP elementwise
            w_a = w_ref[a * f_in:(a + 1) * f_in, :]        # static slice of ref
            part = jnp.dot(a_h, w_a, preferred_element_type=jnp.float32)
            acc = part if acc is None else acc + part
        h = acc * s_ref[...] + b_ref[...]                  # (1,out) broadcasts

    out_ref[...] = h.astype(out_ref.dtype)


def kan_network_pallas(x_flat, layer_params, out_dim, row_tile=16):
    """Run the full KAN network on a (rows, f_in) matrix.

    layer_params: list of (wcat (A*in, out), scale (1, out), bias (1, out)).
    """
    n_rows, f_in = x_flat.shape
    n_rows_pad = pl.cdiv(n_rows, row_tile) * row_tile
    if n_rows_pad != n_rows:
        x_flat = jnp.pad(x_flat, ((0, n_rows_pad - n_rows), (0, 0)))

    flat_params = []
    in_specs = [pl.BlockSpec((row_tile, f_in), lambda r: (r, 0))]
    for (wcat, scale, bias) in layer_params:
        for arr in (wcat, scale, bias):
            flat_params.append(arr)
            in_specs.append(
                pl.BlockSpec(arr.shape, lambda r, _nd=arr.ndim: (0,) * _nd))
    out_specs = pl.BlockSpec((row_tile, out_dim), lambda r: (r, 0))

    out = pl.pallas_call(
        _kan_network_kernel,
        out_shape=jax.ShapeDtypeStruct((n_rows_pad, out_dim), x_flat.dtype),
        grid_spec=pltpu.PrefetchScalarGridSpec(
            num_scalar_prefetch=0,
            grid=(n_rows_pad // row_tile,),
            in_specs=in_specs,
            out_specs=out_specs,
        ),
        compiler_params=pltpu.CompilerParams(
            dimension_semantics=("parallel",)),
    )(x_flat, *flat_params)
    return out[:n_rows]


# ------------------------- KANeural forward wrapper --------------------------
def kaneural_forward(x_nchw, raw_params, patch_size, out_channels):
    """raw_params: per layer (activation_weights (out,in,A), weight_scale (out,in), bias (out,))."""
    B, C, H, W = x_nchw.shape
    ps = patch_size
    nh, nw = H // ps, W // ps
    ps2 = 2 * ps

    # ---- patch extraction (matches patch.reshape(B, -1) ordering) ----
    p = x_nchw.reshape(B, C, nh, ps, nw, ps)
    p = jnp.transpose(p, (0, 2, 4, 1, 3, 5))               # (B, nh, nw, C, ps, ps)
    x_flat = p.reshape(B * nh * nw, C * ps * ps)

    # ---- pack params into the kernel's lane-dense layout ----
    layer_params = []
    for (aw, ws, bias) in raw_params:
        n_out, n_in, n_acts = aw.shape
        # wcat[a*in + k, o] = activation_weights[o, k, a]
        wcat = jnp.transpose(aw, (2, 1, 0)).reshape(n_acts * n_in, n_out)
        scale = jnp.sum(ws, axis=1).reshape(1, n_out)       # weight_scale.sum(dim=1)
        layer_params.append((wcat, scale, bias.reshape(1, n_out)))

    out_dim = raw_params[-1][0].shape[0]
    y_flat = kan_network_pallas(x_flat, layer_params, out_dim)

    # ---- reassemble the 2x-upscaled image ----
    y = y_flat.reshape(B, nh, nw, out_channels, ps2, ps2)
    y = jnp.transpose(y, (0, 3, 1, 4, 2, 5))                # (B, out_c, nh, ps2, nw, ps2)
    return y.reshape(B, out_channels, nh * ps2, nw * ps2)


# -------------------- pure-JAX reference (PyTorch semantics) -----------------
def _kan_linear_ref(x, aw, ws, bias):
    res = jnp.zeros((x.shape[0], aw.shape[0]), jnp.float32)
    for a, act in enumerate(ACT_FNS):
        res = res + jnp.dot(act(x), aw[:, :, a].T,
                            precision=jax.lax.Precision.HIGHEST)
    return res * jnp.sum(ws, axis=1) + bias


def kaneural_ref(x, raw_params, patch_size, out_channels):
    B, C, H, W = x.shape
    ps = patch_size
    nh, nw = H // ps, W // ps
    ps2 = 2 * ps
    out = jnp.zeros((B, out_channels, nh * ps2, nw * ps2), jnp.float32)
    for i in range(nh):
        for j in range(nw):
            patch = x[:, :, i * ps:(i + 1) * ps, j * ps:(j + 1) * ps].reshape(B, -1)
            h = patch
            for (aw, ws, bias) in raw_params:
                h = _kan_linear_ref(h, aw, ws, bias)
            up = h.reshape(B, out_channels, ps2, ps2)
            out = out.at[:, :, i * ps2:(i + 1) * ps2,
                         j * ps2:(j + 1) * ps2].set(up)
    return out


# ----------------------------------- main ------------------------------------
if __name__ == "__main__":
    B = 2
    in_channels = 4
    H = W = 16
    patch_size = 4
    hidden_dims = [128, 256, 128]
    out_channels = in_channels * 4                     # KANeural default
    num_activations = NUM_ACTS                         # 5

    in_features = patch_size * patch_size * in_channels             # 64
    out_features = (2 * patch_size) * (2 * patch_size) * out_channels  # 1024
    dims = [in_features] + hidden_dims + [out_features]

    key = jax.random.PRNGKey(0)
    keys = jax.random.split(key, 1 + 3 * (len(dims) - 1))
    x = jax.random.normal(keys[0], (B, in_channels, H, W), jnp.float32)

    # Deterministic synthetic parameters (random instead of the module's
    # ones/zeros init so every op path is exercised non-trivially).
    raw_params = []
    kidx = 1
    for layer in range(len(dims) - 1):
        n_in, n_out = dims[layer], dims[layer + 1]
        aw = 0.1 * jax.random.normal(keys[kidx], (n_out, n_in, num_activations),
                                     jnp.float32)
        kidx += 1
        ws = 0.1 * jax.random.normal(keys[kidx], (n_out, n_in), jnp.float32)
        kidx += 1
        bias = 0.1 * jax.random.normal(keys[kidx], (n_out,), jnp.float32)
        kidx += 1
        raw_params.append((aw, ws, bias))

    fwd = jax.jit(lambda xx, pp: kaneural_forward(xx, pp, patch_size, out_channels))
    out = jax.block_until_ready(fwd(x, raw_params))

    ref = kaneural_ref(x, raw_params, patch_size, out_channels)
    max_err = float(jnp.max(jnp.abs(out - ref)))
    assert out.shape == (B, out_channels, 2 * H, 2 * W), out.shape
    assert jnp.allclose(out, ref, atol=5e-2, rtol=5e-2), max_err

    print("KERNEL_OK")
</pallas_src>

<mosaic_0001>
module attributes {stable_mosaic.version = 11 : i64} {
  func.func @_kan_network_kernel(%arg0: i32, %arg1: memref<16x64xf32, #tpu.memory_space<vmem>>, %arg2: memref<320x128xf32, #tpu.memory_space<vmem>>, %arg3: memref<1x128xf32, #tpu.memory_space<vmem>>, %arg4: memref<1x128xf32, #tpu.memory_space<vmem>>, %arg5: memref<640x256xf32, #tpu.memory_space<vmem>>, %arg6: memref<1x256xf32, #tpu.memory_space<vmem>>, %arg7: memref<1x256xf32, #tpu.memory_space<vmem>>, %arg8: memref<1280x128xf32, #tpu.memory_space<vmem>>, %arg9: memref<1x128xf32, #tpu.memory_space<vmem>>, %arg10: memref<1x128xf32, #tpu.memory_space<vmem>>, %arg11: memref<640x1024xf32, #tpu.memory_space<vmem>>, %arg12: memref<1x1024xf32, #tpu.memory_space<vmem>>, %arg13: memref<1x1024xf32, #tpu.memory_space<vmem>>, %arg14: memref<16x1024xf32, #tpu.memory_space<vmem>>) attributes {dimension_semantics = [#tpu.dimension_semantics<parallel>], iteration_bounds = array<i64: 2>, scalar_prefetch = 0 : i64, scratch_operands = 0 : i64, tpu.core_type = #tpu.core_type<tc>, window_params = [{transform_indices = @transform_0, window_bounds = array<i64: 16, 64>}, {pipeline_mode = #tpu.pipeline_mode<synchronous>, transform_indices = @transform_1, window_bounds = array<i64: 320, 128>}, {pipeline_mode = #tpu.pipeline_mode<synchronous>, transform_indices = @transform_2, window_bounds = array<i64: 1, 128>}, {pipeline_mode = #tpu.pipeline_mode<synchronous>, transform_indices = @transform_3, window_bounds = array<i64: 1, 128>}, {pipeline_mode = #tpu.pipeline_mode<synchronous>, transform_indices = @transform_4, window_bounds = array<i64: 640, 256>}, {pipeline_mode = #tpu.pipeline_mode<synchronous>, transform_indices = @transform_5, window_bounds = array<i64: 1, 256>}, {pipeline_mode = #tpu.pipeline_mode<synchronous>, transform_indices = @transform_6, window_bounds = array<i64: 1, 256>}, {pipeline_mode = #tpu.pipeline_mode<synchronous>, transform_indices = @transform_7, window_bounds = array<i64: 1280, 128>}, {pipeline_mode = #tpu.pipeline_mode<synchronous>, transform_indices = @transform_8, window_bounds = array<i64: 1, 128>}, {pipeline_mode = #tpu.pipeline_mode<synchronous>, transform_indices = @transform_9, window_bounds = array<i64: 1, 128>}, {pipeline_mode = #tpu.pipeline_mode<synchronous>, transform_indices = @transform_10, window_bounds = array<i64: 640, 1024>}, {pipeline_mode = #tpu.pipeline_mode<synchronous>, transform_indices = @transform_11, window_bounds = array<i64: 1, 1024>}, {pipeline_mode = #tpu.pipeline_mode<synchronous>, transform_indices = @transform_12, window_bounds = array<i64: 1, 1024>}, {transform_indices = @transform_13, window_bounds = array<i64: 16, 1024>}]} {
    %c0 = arith.constant 0 : index
    %c0_0 = arith.constant 0 : index
    %0 = vector.load %arg1[%c0, %c0_0] : memref<16x64xf32, #tpu.memory_space<vmem>>, vector<16x64xf32>
    %cst = arith.constant 0.000000e+00 : f32
    %1 = vector.broadcast %cst : f32 to vector<16x64xf32>
    %2 = arith.maximumf %0, %1 : vector<16x64xf32>
    %c0_1 = arith.constant 0 : index
    %c0_2 = arith.constant 0 : index
    %3 = vector.load %arg2[%c0_1, %c0_2] : memref<320x128xf32, #tpu.memory_space<vmem>>, vector<64x128xf32>
    %cst_3 = arith.constant dense<0.000000e+00> : vector<16x128xf32>
    %4 = tpu.matmul %2, %3, %cst_3 {dimension_numbers = #tpu.dot_dimension_numbers<[1], [0], [0], [1], [0, 0, 1, 1], [], []>} : vector<16x64xf32>, vector<64x128xf32>, vector<16x128xf32> -> vector<16x128xf32>
    %cst_4 = arith.constant 0.000000e+00 : f32
    %5 = vector.broadcast %cst_4 : f32 to vector<16x64xf32>
    %6 = arith.cmpf oge, %0, %5 : vector<16x64xf32>
    %cst_5 = arith.constant 1.000000e-01 : f32
    %7 = vector.broadcast %cst_5 : f32 to vector<16x64xf32>
    %8 = arith.mulf %7, %0 : vector<16x64xf32>
    %9 = arith.select %6, %0, %8 : vector<16x64xi1>, vector<16x64xf32>
    %c64 = arith.constant 64 : index
    %c0_6 = arith.constant 0 : index
    %10 = vector.load %arg2[%c64, %c0_6] : memref<320x128xf32, #tpu.memory_space<vmem>>, vector<64x128xf32>
    %cst_7 = arith.constant dense<0.000000e+00> : vector<16x128xf32>
    %11 = tpu.matmul %9, %10, %cst_7 {dimension_numbers = #tpu.dot_dimension_numbers<[1], [0], [0], [1], [0, 0, 1, 1], [], []>} : vector<16x64xf32>, vector<64x128xf32>, vector<16x128xf32> -> vector<16x128xf32>
    %12 = arith.addf %4, %11 : vector<16x128xf32>
    %cst_8 = arith.constant 0.000000e+00 : f32
    %13 = vector.broadcast %cst_8 : f32 to vector<16x64xf32>
    %14 = arith.cmpf ogt, %0, %13 : vector<16x64xf32>
    %cst_9 = arith.constant 0.000000e+00 : f32
    %15 = vector.broadcast %cst_9 : f32 to vector<16x64xf32>
    %16 = arith.minimumf %0, %15 : vector<16x64xf32>
    %17 = math.exp %16 : vector<16x64xf32>
    %cst_10 = arith.constant 1.000000e+00 : f32
    %18 = vector.broadcast %cst_10 : f32 to vector<16x64xf32>
    %19 = arith.subf %17, %18 : vector<16x64xf32>
    %20 = arith.select %14, %0, %19 : vector<16x64xi1>, vector<16x64xf32>
    %c128 = arith.constant 128 : index
    %c0_11 = arith.constant 0 : index
    %21 = vector.load %arg2[%c128, %c0_11] : memref<320x128xf32, #tpu.memory_space<vmem>>, vector<64x128xf32>
    %cst_12 = arith.constant dense<0.000000e+00> : vector<16x128xf32>
    %22 = tpu.matmul %20, %21, %cst_12 {dimension_numbers = #tpu.dot_dimension_numbers<[1], [0], [0], [1], [0, 0, 1, 1], [], []>} : vector<16x64xf32>, vector<64x128xf32>, vector<16x128xf32> -> vector<16x128xf32>
    %23 = arith.addf %12, %22 : vector<16x128xf32>
    %24 = math.tanh %0 : vector<16x64xf32>
    %c192 = arith.constant 192 : index
    %c0_13 = arith.constant 0 : index
    %25 = vector.load %arg2[%c192, %c0_13] : memref<320x128xf32, #tpu.memory_space<vmem>>, vector<64x128xf32>
    %cst_14 = arith.constant dense<0.000000e+00> : vector<16x128xf32>
    %26 = tpu.matmul %24, %25, %cst_14 {dimension_numbers = #tpu.dot_dimension_numbers<[1], [0], [0], [1], [0, 0, 1, 1], [], []>} : vector<16x64xf32>, vector<64x128xf32>, vector<16x128xf32> -> vector<16x128xf32>
    %27 = arith.addf %23, %26 : vector<16x128xf32>
    %cst_15 = arith.constant 0.000000e+00 : f32
    %28 = vector.broadcast %cst_15 : f32 to vector<16x64xf32>
    %29 = arith.subf %28, %0 : vector<16x64xf32>
    %30 = math.exp %29 : vector<16x64xf32>
    %cst_16 = arith.constant 1.000000e+00 : f32
    %31 = vector.broadcast %cst_16 : f32 to vector<16x64xf32>
    %32 = arith.addf %31, %30 : vector<16x64xf32>
    %cst_17 = arith.constant 1.000000e+00 : f32
    %33 = vector.broadcast %cst_17 : f32 to vector<16x64xf32>
    %34 = arith.divf %33, %32 : vector<16x64xf32>
    %c256 = arith.constant 256 : index
    %c0_18 = arith.constant 0 : index
    %35 = vector.load %arg2[%c256, %c0_18] : memref<320x128xf32, #tpu.memory_space<vmem>>, vector<64x128xf32>
    %cst_19 = arith.constant dense<0.000000e+00> : vector<16x128xf32>
    %36 = tpu.matmul %34, %35, %cst_19 {dimension_numbers = #tpu.dot_dimension_numbers<[1], [0], [0], [1], [0, 0, 1, 1], [], []>} : vector<16x64xf32>, vector<64x128xf32>, vector<16x128xf32> -> vector<16x128xf32>
    %37 = arith.addf %27, %36 : vector<16x128xf32>
    %c0_20 = arith.constant 0 : index
    %c0_21 = arith.constant 0 : index
    %38 = vector.load %arg3[%c0_20, %c0_21] : memref<1x128xf32, #tpu.memory_space<vmem>>, vector<1x128xf32>
    %39 = vector.broadcast %38 : vector<1x128xf32> to vector<16x128xf32>
    %40 = arith.mulf %37, %39 : vector<16x128xf32>
    %c0_22 = arith.constant 0 : index
    %c0_23 = arith.constant 0 : index
    %41 = vector.load %arg4[%c0_22, %c0_23] : memref<1x128xf32, #tpu.memory_space<vmem>>, vector<1x128xf32>
    %42 = vector.broadcast %41 : vector<1x128xf32> to vector<16x128xf32>
    %43 = arith.addf %40, %42 : vector<16x128xf32>
    %cst_24 = arith.constant 0.000000e+00 : f32
    %44 = vector.broadcast %cst_24 : f32 to vector<16x128xf32>
    %45 = arith.maximumf %43, %44 : vector<16x128xf32>
    %c0_25 = arith.constant 0 : index
    %c0_26 = arith.constant 0 : index
    %46 = vector.load %arg5[%c0_25, %c0_26] : memref<640x256xf32, #tpu.memory_space<vmem>>, vector<128x256xf32>
    %cst_27 = arith.constant dense<0.000000e+00> : vector<16x256xf32>
    %47 = tpu.matmul %45, %46, %cst_27 {dimension_numbers = #tpu.dot_dimension_numbers<[1], [0], [0], [1], [0, 0, 1, 1], [], []>} : vector<16x128xf32>, vector<128x256xf32>, vector<16x256xf32> -> vector<16x256xf32>
    %cst_28 = arith.constant 0.000000e+00 : f32
    %48 = vector.broadcast %cst_28 : f32 to vector<16x128xf32>
    %49 = arith.cmpf oge, %43, %48 : vector<16x128xf32>
    %cst_29 = arith.constant 1.000000e-01 : f32
    %50 = vector.broadcast %cst_29 : f32 to vector<16x128xf32>
    %51 = arith.mulf %50, %43 : vector<16x128xf32>
    %52 = arith.select %49, %43, %51 : vector<16x128xi1>, vector<16x128xf32>
    %c128_30 = arith.constant 128 : index
    %c0_31 = arith.constant 0 : index
    %53 = vector.load %arg5[%c128_30, %c0_31] : memref<640x256xf32, #tpu.memory_space<vmem>>, vector<128x256xf32>
    %cst_32 = arith.constant dense<0.000000e+00> : vector<16x256xf32>
    %54 = tpu.matmul %52, %53, %cst_32 {dimension_numbers = #tpu.dot_dimension_numbers<[1], [0], [0], [1], [0, 0, 1, 1], [], []>} : vector<16x128xf32>, vector<128x256xf32>, vector<16x256xf32> -> vector<16x256xf32>
    %55 = arith.addf %47, %54 : vector<16x256xf32>
    %cst_33 = arith.constant 0.000000e+00 : f32
    %56 = vector.broadcast %cst_33 : f32 to vector<16x128xf32>
    %57 = arith.cmpf ogt, %43, %56 : vector<16x128xf32>
    %cst_34 = arith.constant 0.000000e+00 : f32
    %58 = vector.broadcast %cst_34 : f32 to vector<16x128xf32>
    %59 = arith.minimumf %43, %58 : vector<16x128xf32>
    %60 = math.exp %59 : vector<16x128xf32>
    %cst_35 = arith.constant 1.000000e+00 : f32
    %61 = vector.broadcast %cst_35 : f32 to vector<16x128xf32>
    %62 = arith.subf %60, %61 : vector<16x128xf32>
    %63 = arith.select %57, %43, %62 : vector<16x128xi1>, vector<16x128xf32>
    %c256_36 = arith.constant 256 : index
    %c0_37 = arith.constant 0 : index
    %64 = vector.load %arg5[%c256_36, %c0_37] : memref<640x256xf32, #tpu.memory_space<vmem>>, vector<128x256xf32>
    %cst_38 = arith.constant dense<0.000000e+00> : vector<16x256xf32>
    %65 = tpu.matmul %63, %64, %cst_38 {dimension_numbers = #tpu.dot_dimension_numbers<[1], [0], [0], [1], [0, 0, 1, 1], [], []>} : vector<16x128xf32>, vector<128x256xf32>, vector<16x256xf32> -> vector<16x256xf32>
    %66 = arith.addf %55, %65 : vector<16x256xf32>
    %67 = math.tanh %43 : vector<16x128xf32>
    %c384 = arith.constant 384 : index
    %c0_39 = arith.constant 0 : index
    %68 = vector.load %arg5[%c384, %c0_39] : memref<640x256xf32, #tpu.memory_space<vmem>>, vector<128x256xf32>
    %cst_40 = arith.constant dense<0.000000e+00> : vector<16x256xf32>
    %69 = tpu.matmul %67, %68, %cst_40 {dimension_numbers = #tpu.dot_dimension_numbers<[1], [0], [0], [1], [0, 0, 1, 1], [], []>} : vector<16x128xf32>, vector<128x256xf32>, vector<16x256xf32> -> vector<16x256xf32>
    %70 = arith.addf %66, %69 : vector<16x256xf32>
    %cst_41 = arith.constant 0.000000e+00 : f32
    %71 = vector.broadcast %cst_41 : f32 to vector<16x128xf32>
    %72 = arith.subf %71, %43 : vector<16x128xf32>
    %73 = math.exp %72 : vector<16x128xf32>
    %cst_42 = arith.constant 1.000000e+00 : f32
    %74 = vector.broadcast %cst_42 : f32 to vector<16x128xf32>
    %75 = arith.addf %74, %73 : vector<16x128xf32>
    %cst_43 = arith.constant 1.000000e+00 : f32
    %76 = vector.broadcast %cst_43 : f32 to vector<16x128xf32>
    %77 = arith.divf %76, %75 : vector<16x128xf32>
    %c512 = arith.constant 512 : index
    %c0_44 = arith.constant 0 : index
    %78 = vector.load %arg5[%c512, %c0_44] : memref<640x256xf32, #tpu.memory_space<vmem>>, vector<128x256xf32>
    %cst_45 = arith.constant dense<0.000000e+00> : vector<16x256xf32>
    %79 = tpu.matmul %77, %78, %cst_45 {dimension_numbers = #tpu.dot_dimension_numbers<[1], [0], [0], [1], [0, 0, 1, 1], [], []>} : vector<16x128xf32>, vector<128x256xf32>, vector<16x256xf32> -> vector<16x256xf32>
    %80 = arith.addf %70, %79 : vector<16x256xf32>
    %c0_46 = arith.constant 0 : index
    %c0_47 = arith.constant 0 : index
    %81 = vector.load %arg6[%c0_46, %c0_47] : memref<1x256xf32, #tpu.memory_space<vmem>>, vector<1x256xf32>
    %82 = vector.broadcast %81 : vector<1x256xf32> to vector<16x256xf32>
    %83 = arith.mulf %80, %82 : vector<16x256xf32>
    %c0_48 = arith.constant 0 : index
    %c0_49 = arith.constant 0 : index
    %84 = vector.load %arg7[%c0_48, %c0_49] : memref<1x256xf32, #tpu.memory_space<vmem>>, vector<1x256xf32>
    %85 = vector.broadcast %84 : vector<1x256xf32> to vector<16x256xf32>
    %86 = arith.addf %83, %85 : vector<16x256xf32>
    %cst_50 = arith.constant 0.000000e+00 : f32
    %87 = vector.broadcast %cst_50 : f32 to vector<16x256xf32>
    %88 = arith.maximumf %86, %87 : vector<16x256xf32>
    %c0_51 = arith.constant 0 : index
    %c0_52 = arith.constant 0 : index
    %89 = vector.load %arg8[%c0_51, %c0_52] : memref<1280x128xf32, #tpu.memory_space<vmem>>, vector<256x128xf32>
    %cst_53 = arith.constant dense<0.000000e+00> : vector<16x128xf32>
    %90 = tpu.matmul %88, %89, %cst_53 {dimension_numbers = #tpu.dot_dimension_numbers<[1], [0], [0], [1], [0, 0, 1, 1], [], []>} : vector<16x256xf32>, vector<256x128xf32>, vector<16x128xf32> -> vector<16x128xf32>
    %cst_54 = arith.constant 0.000000e+00 : f32
    %91 = vector.broadcast %cst_54 : f32 to vector<16x256xf32>
    %92 = arith.cmpf oge, %86, %91 : vector<16x256xf32>
    %cst_55 = arith.constant 1.000000e-01 : f32
    %93 = vector.broadcast %cst_55 : f32 to vector<16x256xf32>
    %94 = arith.mulf %93, %86 : vector<16x256xf32>
    %95 = arith.select %92, %86, %94 : vector<16x256xi1>, vector<16x256xf32>
    %c256_56 = arith.constant 256 : index
    %c0_57 = arith.constant 0 : index
    %96 = vector.load %arg8[%c256_56, %c0_57] : memref<1280x128xf32, #tpu.memory_space<vmem>>, vector<256x128xf32>
    %cst_58 = arith.constant dense<0.000000e+00> : vector<16x128xf32>
    %97 = tpu.matmul %95, %96, %cst_58 {dimension_numbers = #tpu.dot_dimension_numbers<[1], [0], [0], [1], [0, 0, 1, 1], [], []>} : vector<16x256xf32>, vector<256x128xf32>, vector<16x128xf32> -> vector<16x128xf32>
    %98 = arith.addf %90, %97 : vector<16x128xf32>
    %cst_59 = arith.constant 0.000000e+00 : f32
    %99 = vector.broadcast %cst_59 : f32 to vector<16x256xf32>
    %100 = arith.cmpf ogt, %86, %99 : vector<16x256xf32>
    %cst_60 = arith.constant 0.000000e+00 : f32
    %101 = vector.broadcast %cst_60 : f32 to vector<16x256xf32>
    %102 = arith.minimumf %86, %101 : vector<16x256xf32>
    %103 = math.exp %102 : vector<16x256xf32>
    %cst_61 = arith.constant 1.000000e+00 : f32
    %104 = vector.broadcast %cst_61 : f32 to vector<16x256xf32>
    %105 = arith.subf %103, %104 : vector<16x256xf32>
    %106 = arith.select %100, %86, %105 : vector<16x256xi1>, vector<16x256xf32>
    %c512_62 = arith.constant 512 : index
    %c0_63 = arith.constant 0 : index
    %107 = vector.load %arg8[%c512_62, %c0_63] : memref<1280x128xf32, #tpu.memory_space<vmem>>, vector<256x128xf32>
    %cst_64 = arith.constant dense<0.000000e+00> : vector<16x128xf32>
    %108 = tpu.matmul %106, %107, %cst_64 {dimension_numbers = #tpu.dot_dimension_numbers<[1], [0], [0], [1], [0, 0, 1, 1], [], []>} : vector<16x256xf32>, vector<256x128xf32>, vector<16x128xf32> -> vector<16x128xf32>
    %109 = arith.addf %98, %108 : vector<16x128xf32>
    %110 = math.tanh %86 : vector<16x256xf32>
    %c768 = arith.constant 768 : index
    %c0_65 = arith.constant 0 : index
    %111 = vector.load %arg8[%c768, %c0_65] : memref<1280x128xf32, #tpu.memory_space<vmem>>, vector<256x128xf32>
    %cst_66 = arith.constant dense<0.000000e+00> : vector<16x128xf32>
    %112 = tpu.matmul %110, %111, %cst_66 {dimension_numbers = #tpu.dot_dimension_numbers<[1], [0], [0], [1], [0, 0, 1, 1], [], []>} : vector<16x256xf32>, vector<256x128xf32>, vector<16x128xf32> -> vector<16x128xf32>
    %113 = arith.addf %109, %112 : vector<16x128xf32>
    %cst_67 = arith.constant 0.000000e+00 : f32
    %114 = vector.broadcast %cst_67 : f32 to vector<16x256xf32>
    %115 = arith.subf %114, %86 : vector<16x256xf32>
    %116 = math.exp %115 : vector<16x256xf32>
    %cst_68 = arith.constant 1.000000e+00 : f32
    %117 = vector.broadcast %cst_68 : f32 to vector<16x256xf32>
    %118 = arith.addf %117, %116 : vector<16x256xf32>
    %cst_69 = arith.constant 1.000000e+00 : f32
    %119 = vector.broadcast %cst_69 : f32 to vector<16x256xf32>
    %120 = arith.divf %119, %118 : vector<16x256xf32>
    %c1024 = arith.constant 1024 : index
    %c0_70 = arith.constant 0 : index
    %121 = vector.load %arg8[%c1024, %c0_70] : memref<1280x128xf32, #tpu.memory_space<vmem>>, vector<256x128xf32>
    %cst_71 = arith.constant dense<0.000000e+00> : vector<16x128xf32>
    %122 = tpu.matmul %120, %121, %cst_71 {dimension_numbers = #tpu.dot_dimension_numbers<[1], [0], [0], [1], [0, 0, 1, 1], [], []>} : vector<16x256xf32>, vector<256x128xf32>, vector<16x128xf32> -> vector<16x128xf32>
    %123 = arith.addf %113, %122 : vector<16x128xf32>
    %c0_72 = arith.constant 0 : index
    %c0_73 = arith.constant 0 : index
    %124 = vector.load %arg9[%c0_72, %c0_73] : memref<1x128xf32, #tpu.memory_space<vmem>>, vector<1x128xf32>
    %125 = vector.broadcast %124 : vector<1x128xf32> to vector<16x128xf32>
    %126 = arith.mulf %123, %125 : vector<16x128xf32>
    %c0_74 = arith.constant 0 : index
    %c0_75 = arith.constant 0 : index
    %127 = vector.load %arg10[%c0_74, %c0_75] : memref<1x128xf32, #tpu.memory_space<vmem>>, vector<1x128xf32>
    %128 = vector.broadcast %127 : vector<1x128xf32> to vector<16x128xf32>
    %129 = arith.addf %126, %128 : vector<16x128xf32>
    %cst_76 = arith.constant 0.000000e+00 : f32
    %130 = vector.broadcast %cst_76 : f32 to vector<16x128xf32>
    %131 = arith.maximumf %129, %130 : vector<16x128xf32>
    %c0_77 = arith.constant 0 : index
    %c0_78 = arith.constant 0 : index
    %132 = vector.load %arg11[%c0_77, %c0_78] : memref<640x1024xf32, #tpu.memory_space<vmem>>, vector<128x1024xf32>
    %cst_79 = arith.constant dense<0.000000e+00> : vector<16x1024xf32>
    %133 = tpu.matmul %131, %132, %cst_79 {dimension_numbers = #tpu.dot_dimension_numbers<[1], [0], [0], [1], [0, 0, 1, 1], [], []>} : vector<16x128xf32>, vector<128x1024xf32>, vector<16x1024xf32> -> vector<16x1024xf32>
    %cst_80 = arith.constant 0.000000e+00 : f32
    %134 = vector.broadcast %cst_80 : f32 to vector<16x128xf32>
    %135 = arith.cmpf oge, %129, %134 : vector<16x128xf32>
    %cst_81 = arith.constant 1.000000e-01 : f32
    %136 = vector.broadcast %cst_81 : f32 to vector<16x128xf32>
    %137 = arith.mulf %136, %129 : vector<16x128xf32>
    %138 = arith.select %135, %129, %137 : vector<16x128xi1>, vector<16x128xf32>
    %c128_82 = arith.constant 128 : index
    %c0_83 = arith.constant 0 : index
    %139 = vector.load %arg11[%c128_82, %c0_83] : memref<640x1024xf32, #tpu.memory_space<vmem>>, vector<128x1024xf32>
    %cst_84 = arith.constant dense<0.000000e+00> : vector<16x1024xf32>
    %140 = tpu.matmul %138, %139, %cst_84 {dimension_numbers = #tpu.dot_dimension_numbers<[1], [0], [0], [1], [0, 0, 1, 1], [], []>} : vector<16x128xf32>, vector<128x1024xf32>, vector<16x1024xf32> -> vector<16x1024xf32>
    %141 = arith.addf %133, %140 : vector<16x1024xf32>
    %cst_85 = arith.constant 0.000000e+00 : f32
    %142 = vector.broadcast %cst_85 : f32 to vector<16x128xf32>
    %143 = arith.cmpf ogt, %129, %142 : vector<16x128xf32>
    %cst_86 = arith.constant 0.000000e+00 : f32
    %144 = vector.broadcast %cst_86 : f32 to vector<16x128xf32>
    %145 = arith.minimumf %129, %144 : vector<16x128xf32>
    %146 = math.exp %145 : vector<16x128xf32>
    %cst_87 = arith.constant 1.000000e+00 : f32
    %147 = vector.broadcast %cst_87 : f32 to vector<16x128xf32>
    %148 = arith.subf %146, %147 : vector<16x128xf32>
    %149 = arith.select %143, %129, %148 : vector<16x128xi1>, vector<16x128xf32>
    %c256_88 = arith.constant 256 : index
    %c0_89 = arith.constant 0 : index
    %150 = vector.load %arg11[%c256_88, %c0_89] : memref<640x1024xf32, #tpu.memory_space<vmem>>, vector<128x1024xf32>
    %cst_90 = arith.constant dense<0.000000e+00> : vector<16x1024xf32>
    %151 = tpu.matmul %149, %150, %cst_90 {dimension_numbers = #tpu.dot_dimension_numbers<[1], [0], [0], [1], [0, 0, 1, 1], [], []>} : vector<16x128xf32>, vector<128x1024xf32>, vector<16x1024xf32> -> vector<16x1024xf32>
    %152 = arith.addf %141, %151 : vector<16x1024xf32>
    %153 = math.tanh %129 : vector<16x128xf32>
    %c384_91 = arith.constant 384 : index
    %c0_92 = arith.constant 0 : index
    %154 = vector.load %arg11[%c384_91, %c0_92] : memref<640x1024xf32, #tpu.memory_space<vmem>>, vector<128x1024xf32>
    %cst_93 = arith.constant dense<0.000000e+00> : vector<16x1024xf32>
    %155 = tpu.matmul %153, %154, %cst_93 {dimension_numbers = #tpu.dot_dimension_numbers<[1], [0], [0], [1], [0, 0, 1, 1], [], []>} : vector<16x128xf32>, vector<128x1024xf32>, vector<16x1024xf32> -> vector<16x1024xf32>
    %156 = arith.addf %152, %155 : vector<16x1024xf32>
    %cst_94 = arith.constant 0.000000e+00 : f32
    %157 = vector.broadcast %cst_94 : f32 to vector<16x128xf32>
    %158 = arith.subf %157, %129 : vector<16x128xf32>
    %159 = math.exp %158 : vector<16x128xf32>
    %cst_95 = arith.constant 1.000000e+00 : f32
    %160 = vector.broadcast %cst_95 : f32 to vector<16x128xf32>
    %161 = arith.addf %160, %159 : vector<16x128xf32>
    %cst_96 = arith.constant 1.000000e+00 : f32
    %162 = vector.broadcast %cst_96 : f32 to vector<16x128xf32>
    %163 = arith.divf %162, %161 : vector<16x128xf32>
    %c512_97 = arith.constant 512 : index
    %c0_98 = arith.constant 0 : index
    %164 = vector.load %arg11[%c512_97, %c0_98] : memref<640x1024xf32, #tpu.memory_space<vmem>>, vector<128x1024xf32>
    %cst_99 = arith.constant dense<0.000000e+00> : vector<16x1024xf32>
    %165 = tpu.matmul %163, %164, %cst_99 {dimension_numbers = #tpu.dot_dimension_numbers<[1], [0], [0], [1], [0, 0, 1, 1], [], []>} : vector<16x128xf32>, vector<128x1024xf32>, vector<16x1024xf32> -> vector<16x1024xf32>
    %166 = arith.addf %156, %165 : vector<16x1024xf32>
    %c0_100 = arith.constant 0 : index
    %c0_101 = arith.constant 0 : index
    %167 = vector.load %arg12[%c0_100, %c0_101] : memref<1x1024xf32, #tpu.memory_space<vmem>>, vector<1x1024xf32>
    %168 = vector.broadcast %167 : vector<1x1024xf32> to vector<16x1024xf32>
    %169 = arith.mulf %166, %168 : vector<16x1024xf32>
    %c0_102 = arith.constant 0 : index
    %c0_103 = arith.constant 0 : index
    %170 = vector.load %arg13[%c0_102, %c0_103] : memref<1x1024xf32, #tpu.memory_space<vmem>>, vector<1x1024xf32>
    %171 = vector.broadcast %170 : vector<1x1024xf32> to vector<16x1024xf32>
    %172 = arith.addf %169, %171 : vector<16x1024xf32>
    %c0_104 = arith.constant 0 : index
    %c0_105 = arith.constant 0 : index
    %173 = vector.load %arg14[%c0_104, %c0_105] : memref<16x1024xf32, #tpu.memory_space<vmem>>, vector<16x1024xf32>
    tpu.vector_store %arg14[%c0_104, %c0_105], %172 {strides = array<i32>} : memref<16x1024xf32, #tpu.memory_space<vmem>>, vector<16x1024xf32>,
    return
  }
  func.func @transform_0(%arg0: i32) -> (i32, i32) {
    %c0_i32 = arith.constant 0 : i32
    %c0_i32_0 = arith.constant 0 : i32
    return %arg0, %c0_i32 : i32, i32
  }
  func.func @transform_1(%arg0: i32) -> (i32, i32) {
    %c0_i32 = arith.constant 0 : i32
    %c0_i32_0 = arith.constant 0 : i32
    %c0_i32_1 = arith.constant 0 : i32
    return %c0_i32, %c0_i32_0 : i32, i32
  }
  func.func @transform_2(%arg0: i32) -> (i32, i32) {
    %c0_i32 = arith.constant 0 : i32
    %c0_i32_0 = arith.constant 0 : i32
    %c0_i32_1 = arith.constant 0 : i32
    return %c0_i32, %c0_i32_0 : i32, i32
  }
  func.func @transform_3(%arg0: i32) -> (i32, i32) {
    %c0_i32 = arith.constant 0 : i32
    %c0_i32_0 = arith.constant 0 : i32
    %c0_i32_1 = arith.constant 0 : i32
    return %c0_i32, %c0_i32_0 : i32, i32
  }
  func.func @transform_4(%arg0: i32) -> (i32, i32) {
    %c0_i32 = arith.constant 0 : i32
    %c0_i32_0 = arith.constant 0 : i32
    %c0_i32_1 = arith.constant 0 : i32
    return %c0_i32, %c0_i32_0 : i32, i32
  }
  func.func @transform_5(%arg0: i32) -> (i32, i32) {
    %c0_i32 = arith.constant 0 : i32
    %c0_i32_0 = arith.constant 0 : i32
    %c0_i32_1 = arith.constant 0 : i32
    return %c0_i32, %c0_i32_0 : i32, i32
  }
  func.func @transform_6(%arg0: i32) -> (i32, i32) {
    %c0_i32 = arith.constant 0 : i32
    %c0_i32_0 = arith.constant 0 : i32
    %c0_i32_1 = arith.constant 0 : i32
    return %c0_i32, %c0_i32_0 : i32, i32
  }
  func.func @transform_7(%arg0: i32) -> (i32, i32) {
    %c0_i32 = arith.constant 0 : i32
    %c0_i32_0 = arith.constant 0 : i32
    %c0_i32_1 = arith.constant 0 : i32
    return %c0_i32, %c0_i32_0 : i32, i32
  }
  func.func @transform_8(%arg0: i32) -> (i32, i32) {
    %c0_i32 = arith.constant 0 : i32
    %c0_i32_0 = arith.constant 0 : i32
    %c0_i32_1 = arith.constant 0 : i32
    return %c0_i32, %c0_i32_0 : i32, i32
  }
  func.func @transform_9(%arg0: i32) -> (i32, i32) {
    %c0_i32 = arith.constant 0 : i32
    %c0_i32_0 = arith.constant 0 : i32
    %c0_i32_1 = arith.constant 0 : i32
    return %c0_i32, %c0_i32_0 : i32, i32
  }
  func.func @transform_10(%arg0: i32) -> (i32, i32) {
    %c0_i32 = arith.constant 0 : i32
    %c0_i32_0 = arith.constant 0 : i32
    %c0_i32_1 = arith.constant 0 : i32
    return %c0_i32, %c0_i32_0 : i32, i32
  }
  func.func @transform_11(%arg0: i32) -> (i32, i32) {
    %c0_i32 = arith.constant 0 : i32
    %c0_i32_0 = arith.constant 0 : i32
    %c0_i32_1 = arith.constant 0 : i32
    return %c0_i32, %c0_i32_0 : i32, i32
  }
  func.func @transform_12(%arg0: i32) -> (i32, i32) {
    %c0_i32 = arith.constant 0 : i32
    %c0_i32_0 = arith.constant 0 : i32
    %c0_i32_1 = arith.constant 0 : i32
    return %c0_i32, %c0_i32_0 : i32, i32
  }
  func.func @transform_13(%arg0: i32) -> (i32, i32) {
    %c0_i32 = arith.constant 0 : i32
    %c0_i32_0 = arith.constant 0 : i32
    return %arg0, %c0_i32 : i32, i32
  }
}

</mosaic_0001>

<bundles_post_ra>
// kernel: _lambda_.1
= control target key start
LH: loop header
LB: loop body
LE: loop exit
PB: predicated region body
PF: predicated region fallthrough
CT: control target
= control target key end

     0   :  { %s5194_s25 = smov 0   ;;  %s8679_s0 = inlined_call_operand.vmem [shape: f32[32,64], index: 0, kind: input, shape index: {}]   ;;  %s8680_s1 = inlined_call_operand.vmem [shape: f32[320,128], index: 1, kind: input, shape index: {}]   ;;  %s8681_s2 = inlined_call_operand.vmem [shape: f32[1,128], index: 2, kind: input, shape index: {}]   ;;  %s8682_s3 = inlined_call_operand.vmem [shape: f32[1,128], index: 3, kind: input, shape index: {}]   ;;  %s8683_s4 = inlined_call_operand.vmem [shape: f32[640,256], index: 4, kind: input, shape index: {}]   ;;  %s8684_s5 = inlined_call_operand.vmem [shape: f32[1,256], index: 5, kind: input, shape index: {}]   ;;  %s8685_s6 = inlined_call_operand.vmem [shape: f32[1,256], index: 6, kind: input, shape index: {}]   ;;  %s8686_s7 = inlined_call_operand.vmem [shape: f32[1280,128], index: 7, kind: input, shape index: {}]   ;;  %s8687_s8 = inlined_call_operand.vmem [shape: f32[1,128], index: 8, kind: input, shape index: {}]   ;;  %s8688_s9 = inlined_call_operand.vmem [shape: f32[1,128], index: 9, kind: input, shape index: {}]   ;;  %s8689_s10 = inlined_call_operand.vmem [shape: f32[640,1024], index: 10, kind: input, shape index: {}]   ;;  %s8690_s11 = inlined_call_operand.vmem [shape: f32[1,1024], index: 11, kind: input, shape index: {}]   ;;  %s8691_s12 = inlined_call_operand.vmem [shape: f32[1,1024], index: 12, kind: input, shape index: {}]   ;;  %s8692_s13 = inlined_call_operand.vmem [shape: f32[32,1024], index: 13, kind: output, shape index: {}]  }
   0x1 LB: > { %s4654_s26 = sadd.s32 4294967295, %s5121_s25   ;;  %p4658_p0 = scmp.ge.s32.totalorder %s5121_s25, 1  ;;  %s5121_s25 = sphi %s5194_s25, %s23_s25  }
   0x2   : > { %p388_p1 = scmp.lt.s32.totalorder %s5121_s25, 3 }
   0x4   : > { %p389_p2 = pnand %p4658_p0, %p388_p1 }
   0x6   : > { %392 = sbr.rel (%p389_p2) target bundleno = 1343 (0x53f), region = 72 }
   0xb   : > { %v471_v0 = vld [vmem:[%s8680_s1 + $0x78] sm:$0xff]  ;;  %v470_v2 = vld [vmem:[%s8680_s1 + $0x70] sm:$0xff]  ;;  %s4659_s16 = sshll.u32 %s4654_s26, 1  ;;  %v469_v4 = vld [vmem:[%s8680_s1 + $0x68] sm:$0xff]  ;;  %vm472_vm2 = vcmask 523264  }
   0xc   : > { %v457_v1 = vld [vmem:[%s8680_s1 + $0x38] sm:$0xff]  ;;  %4931 = vmatprep.subr.mxu0 %v471_v0  ;;  %v456_v3 = vld [vmem:[%s8680_s1 + $0x30] sm:$0xff]  ;;  %p434_p3 = scmp.lt.s32.totalorder %s4659_s16, 3  ;;  %v455_v5 = vld [vmem:[%s8680_s1 + $0x28] sm:$0xff] }
   0xd   : > { %4950 = vmatprep.subr.mxu1 %v457_v1  ;;  %4932 = vmatpush3.msra.mxu0 %v471_v0  ;;  %v468_v6 = vld [vmem:[%s8680_s1 + $0x60] sm:$0xff]  ;;  %v467_v8 = vld [vmem:[%s8680_s1 + $0x58] sm:$0xff]  ;;  %v466_v11 = vld [vmem:[%s8680_s1 + $0x50] sm:$0xff] }
   0xe   : > { %4951 = vmatpush3.msra.mxu1 %v457_v1  ;;  %4933 = vmatprep.subr.mxu0 %v470_v2  ;;  %s8716_s16 = smov (!%p434_p3, %s4659_s16), 3  ;;  %v454_v7 = vld [vmem:[%s8680_s1 + $0x20] sm:$0xff]  ;;  %v453_v9 = vld [vmem:[%s8680_s1 + $0x18] sm:$0xff]  ;;  %v452_v12 = vld [vmem:[%s8680_s1 + $0x10] sm:$0xff] }
   0xf   : > { %4952 = vmatprep.subr.mxu1 %v456_v3  ;;  %4934 = vmatpush3.msra.mxu0 %v470_v2  ;;  %s4660_s28 = sshll.u32 %s8716_s16, 3  ;;  %v465_v17 = vld [vmem:[%s8680_s1 + $0x48] sm:$0xff]  ;;  %v464_v22 = vld [vmem:[%s8680_s1 + $0x40] sm:$0xff]  ;;  %v654_v32 = vld [vmem:[%s8680_s1 + $0xb8] sm:$0xff]  ;;  %s4690_s21 = sshll.u32 %s8716_s16, 6 }
  0x10   : > { %4953 = vmatpush3.msra.mxu1 %v456_v3  ;;  %4935 = vmatprep.subr.mxu0 %v469_v4  ;;  %s437_s19 = scalar_lea.vmem %s8679_s0, %s4660_s28  ;;  %v451_v18 = vld [vmem:[%s8680_s1 + $0x8] sm:$0xff]  ;;  %v450_v23 = vld [vmem:[%s8680_s1] sm:$0xff]  ;;  %v747_v33 = vld [vmem:[%s8680_s1 + $0xf8] sm:$0xff]  ;;  %s8614_s16 = scalar_lea.vmem %s8692_s13, %s4690_s21 }
  0x11   : > { %4954 = vmatprep.subr.mxu1 %v455_v5  ;;  %4936 = vmatpush3.msra.mxu0 %v469_v4  ;;  %v5238_v10 = vld [vmem:[%s437_s19] sm:$0xff]  ;;  %v5246_v13 = vld [vmem:[%s437_s19 + $0x8] sm:$0xff]  ;;  %v653_v34 = vld [vmem:[%s8680_s1 + $0xb0] sm:$0xff] }
  0x12   : > { %4955 = vmatpush3.msra.mxu1 %v455_v5  ;;  %4937 = vmatprep.subr.mxu0 %v468_v6  ;;  %v831_v14 = vsub.f32 0.0, %v5238_v10  ;;  %v460_v15 = vmul.f32 0.1, %v5238_v10  ;;  %v832_v16 = vsub.f32 0.0, %v5246_v13  ;;  %vm458_vm0 = vcmp.ge.f32.partialorder %v5238_v10, 0.0  ;;  %v746_v35 = vld [vmem:[%s8680_s1 + $0xf0] sm:$0xff] }
  0x13   : > { %4956 = vmatprep.subr.mxu1 %v454_v7  ;;  %4938 = vmatpush3.msra.mxu0 %v468_v6  ;;  %v461_v21 = vmul.f32 0.1, %v5246_v13  ;;  %vm459_vm1 = vcmp.ge.f32.partialorder %v5246_v13, 0.0  ;;  %v637_v24 = vmin.f32 %v5238_v10, 0.0  ;;  %v448_v26 = vmax.f32 %v5238_v10, 0.0  ;;  %v652_v36 = vld [vmem:[%s8680_s1 + $0xa8] sm:$0xff] }
  0x14   : > { %4957 = vmatpush3.msra.mxu1 %v454_v7  ;;  %4939 = vmatprep.subr.mxu0 %v467_v8  ;;  %v833_v19 = vmul.f32 1.442695, %v831_v14  ;;  %v835_v20 = vmul.f32 1.442695, %v832_v16  ;;  %v462_v25 = vsel %vm458_vm0, %v5238_v10, %v460_v15  ;;  %v638_v27 = vmin.f32 %v5246_v13, 0.0  ;;  %v745_v37 = vld [vmem:[%s8680_s1 + $0xe8] sm:$0xff] }
  0x15   : > { %4958 = vmatprep.subr.mxu1 %v453_v9  ;;  %4940 = vmatpush3.msra.mxu0 %v467_v8  ;;  %v449_v28 = vmax.f32 %v5246_v13, 0.0  ;;  %v639_v29 = vmul.f32 1.442695, %v637_v24  ;;  %v463_v30 = vsel %vm459_vm1, %v5246_v13, %v461_v21  ;;  %v651_v38 = vld [vmem:[%s8680_s1 + $0xa0] sm:$0xff]  ;;  %v650_v40 = vld [vmem:[%s8680_s1 + $0x98] sm:$0xff]  ;;  %v649_v44 = vld [vmem:[%s8680_s1 + $0x90] sm:$0xff] }
  0x16   : > { %4959 = vmatpush3.msra.mxu1 %v453_v9  ;;  %4941 = vmatprep.subr.mxu0 %v466_v11  ;;  %5035 = vpow2.f32 %v833_v19  ;;  %v641_v31 = vmul.f32 1.442695, %v638_v27  ;;  %v744_v39 = vld [vmem:[%s8680_s1 + $0xe0] sm:$0xff]  ;;  %v743_v41 = vld [vmem:[%s8680_s1 + $0xd8] sm:$0xff]  ;;  %v742_v45 = vld [vmem:[%s8680_s1 + $0xd0] sm:$0xff]  ;;  %vm635_vm3 = vcmp.gt.f32.partialorder %v5238_v10, 0.0 }
  0x17   : > { %4960 = vmatprep.subr.mxu1 %v452_v12  ;;  %4942 = vmatpush3.msra.mxu0 %v466_v11  ;;  %5037 = vpow2.f32 %v835_v20  ;;  %v648_v47 = vld [vmem:[%s8680_s1 + $0x88] sm:$0xff]  ;;  %v647_v51 = vld [vmem:[%s8680_s1 + $0x80] sm:$0xff]  ;;  %vm636_vm4 = vcmp.gt.f32.partialorder %v5246_v13, 0.0  ;;  %v850_v57 = vld [vmem:[%s8680_s1 + $0x138] sm:$0xff] }
  0x18   : > { %4961 = vmatpush3.msra.mxu1 %v452_v12  ;;  %4943 = vmatprep.subr.mxu0 %v465_v17  ;;  %5039 = vpow2.f32 %v639_v29  ;;  %v741_v48 = vld [vmem:[%s8680_s1 + $0xc8] sm:$0xff]  ;;  %v740_v54 = vld [vmem:[%s8680_s1 + $0xc0] sm:$0xff]  ;;  %v849_v61 = vld [vmem:[%s8680_s1 + $0x130] sm:$0xff] }
  0x19   : > { %4962 = vmatprep.subr.mxu1 %v451_v18  ;;  %4944 = vmatpush3.msra.mxu0 %v465_v17  ;;  %5041 = vpow2.f32 %v641_v31  ;;  %v848_v62 = vld [vmem:[%s8680_s1 + $0x128] sm:$0xff]  ;;  %v847_v63 = vld [vmem:[%s8680_s1 + $0x120] sm:$0xff]  ;;  %v846_v1 = vld [vmem:[%s8680_s1 + $0x118] sm:$0xff] }
  0x1a   : > { %4963 = vmatpush3.msra.mxu1 %v451_v18  ;;  %4945 = vmatprep.subr.mxu0 %v464_v22  ;;  %5043 = vtanh.f32 %v5238_v10  ;;  %v845_v2 = vld [vmem:[%s8680_s1 + $0x110] sm:$0xff]  ;;  %v844_v3 = vld [vmem:[%s8680_s1 + $0x108] sm:$0xff]  ;;  %v843_v4 = vld [vmem:[%s8680_s1 + $0x100] sm:$0xff] }
  0x1b   : > { %4964 = vmatprep.subr.mxu1 %v450_v23  ;;  %4946 = vmatpush3.msra.mxu0 %v464_v22  ;;  %5045 = vtanh.f32 %v5246_v13  ;;  %v985_v6 = vld [vmem:[%s8683_s4 + $0xf8] sm:$0xff]  ;;  %v984_v8 = vld [vmem:[%s8683_s4 + $0xf0] sm:$0xff]  ;;  %v1021_v11 = vld [vmem:[%s8683_s4 + $0x1e8] sm:$0xff] }
  0x1c   : > { %4947 = vmatprep.mubr.msk.f32.mxu0 %vm472_vm2, %v462_v25  ;;  %4965 = vmatpush3.msra.mxu1 %v450_v23  ;;  %v1023_v7 = vld [vmem:[%s8683_s4 + $0x1f8] sm:$0xff]  ;;  %v1022_v9 = vld [vmem:[%s8683_s4 + $0x1f0] sm:$0xff]  ;;  %v982_v12 = vld [vmem:[%s8683_s4 + $0xe0] sm:$0xff] }
  0x1d   : > { %4966 = vmatprep.mubr.msk.f32.mxu1 %vm472_vm2, %v448_v26  ;;  %4948 = vmatmul.mubr.msk.f32.vlgmr.msra.gmra.mxu0 %vm472_vm2, %v463_v30  ;;  %v981_v14 = vld [vmem:[%s8683_s4 + $0xd8] sm:$0xff]  ;;  %v980_v16 = vld [vmem:[%s8683_s4 + $0xd0] sm:$0xff]  ;;  %v979_v18 = vld [vmem:[%s8683_s4 + $0xc8] sm:$0xff] }
  0x1e   : > { %4967 = vmatmul.mubr.msk.f32.vlgmr.msra.gmra.mxu1 %vm472_vm2, %v449_v28  ;;  %4969 = vmatprep.subr.mxu0 %v654_v32  ;;  %v1019_v15 = vld [vmem:[%s8683_s4 + $0x1d8] sm:$0xff]  ;;  %v1018_v17 = vld [vmem:[%s8683_s4 + $0x1d0] sm:$0xff]  ;;  %v1017_v19 = vld [vmem:[%s8683_s4 + $0x1c8] sm:$0xff] }
  0x1f   : > { %4988 = vmatprep.subr.mxu1 %v747_v33  ;;  %4970 = vmatpush3.msra.mxu0 %v654_v32  ;;  %v978_v20 = vld [vmem:[%s8683_s4 + $0xc0] sm:$0xff]  ;;  %v977_v22 = vld [vmem:[%s8683_s4 + $0xb8] sm:$0xff]  ;;  %v976_v24 = vld [vmem:[%s8683_s4 + $0xb0] sm:$0xff] }
  0x20   : > { %4989 = vmatpush3.msra.mxu1 %v747_v33  ;;  %4971 = vmatprep.subr.mxu0 %v653_v34  ;;  %v1016_v21 = vld [vmem:[%s8683_s4 + $0x1c0] sm:$0xff]  ;;  %v1015_v23 = vld [vmem:[%s8683_s4 + $0x1b8] sm:$0xff]  ;;  %v1014_v25 = vld [vmem:[%s8683_s4 + $0x1b0] sm:$0xff] }
  0x21   : > { %4990 = vmatprep.subr.mxu1 %v746_v35  ;;  %4972 = vmatpush3.msra.mxu0 %v653_v34  ;;  %v975_v26 = vld [vmem:[%s8683_s4 + $0xa8] sm:$0xff]  ;;  %v974_v28 = vld [vmem:[%s8683_s4 + $0xa0] sm:$0xff]  ;;  %v973_v30 = vld [vmem:[%s8683_s4 + $0x98] sm:$0xff] }
  0x22   : > { %4991 = vmatpush3.msra.mxu1 %v746_v35  ;;  %4973 = vmatprep.subr.mxu0 %v652_v36  ;;  %v1013_v27 = vld [vmem:[%s8683_s4 + $0x1a8] sm:$0xff]  ;;  %v1012_v29 = vld [vmem:[%s8683_s4 + $0x1a0] sm:$0xff]  ;;  %v1011_v31 = vld [vmem:[%s8683_s4 + $0x198] sm:$0xff] }
  0x23   : > { %4992 = vmatprep.subr.mxu1 %v745_v37  ;;  %4974 = vmatpush3.msra.mxu0 %v652_v36  ;;  %v5036_v42 = vpop.eup %5035  ;;  %v972_v32 = vld [vmem:[%s8683_s4 + $0x90] sm:$0xff]  ;;  %v971_v34 = vld [vmem:[%s8683_s4 + $0x88] sm:$0xff]  ;;  %v970_v36 = vld [vmem:[%s8683_s4 + $0x80] sm:$0xff] }
  0x24   : > { %4993 = vmatpush3.msra.mxu1 %v745_v37  ;;  %4975 = vmatprep.subr.mxu0 %v651_v38  ;;  %v837_v43 = vadd.f32 1.0, %v5036_v42  ;;  %v5038_v46 = vpop.eup %5037  ;;  %v1010_v33 = vld [vmem:[%s8683_s4 + $0x190] sm:$0xff]  ;;  %v1009_v35 = vld [vmem:[%s8683_s4 + $0x188] sm:$0xff]  ;;  %v1008_v37 = vld [vmem:[%s8683_s4 + $0x180] sm:$0xff] }
  0x25   : > { %4994 = vmatprep.subr.mxu1 %v744_v39  ;;  %4976 = vmatpush3.msra.mxu0 %v651_v38  ;;  %v5040_v49 = vpop.eup %5039  ;;  %v838_v55 = vadd.f32 1.0, %v5038_v46  ;;  %v969_v38 = vld [vmem:[%s8683_s4 + $0x78] sm:$0xff]  ;;  %v967_v42 = vld [vmem:[%s8683_s4 + $0x68] sm:$0xff] }
  0x26   : > { %4995 = vmatpush3.msra.mxu1 %v744_v39  ;;  %4977 = vmatprep.subr.mxu0 %v650_v40  ;;  %5047 = vrcp.f32 %v837_v43  ;;  %v5042_v50 = vpop.eup %5041  ;;  %v4668_v52 = vadd.f32 -1.0, %v5040_v49  ;;  %v1007_v39 = vld [vmem:[%s8683_s4 + $0x178] sm:$0xff]  ;;  %v1005_v43 = vld [vmem:[%s8683_s4 + $0x168] sm:$0xff]  ;;  %v1002_v49 = vld [vmem:[%s8683_s4 + $0x150] sm:$0xff] }
  0x27   : > { %4996 = vmatprep.subr.mxu1 %v743_v41  ;;  %4978 = vmatpush3.msra.mxu0 %v650_v40  ;;  %v4669_v53 = vadd.f32 -1.0, %v5042_v50  ;;  %v5044_v58 = vpop.eup %5043  ;;  %5049 = vrcp.f32 %v838_v55  ;;  %v968_v40 = vld [vmem:[%s8683_s4 + $0x70] sm:$0xff]  ;;  %v965_v46 = vld [vmem:[%s8683_s4 + $0x58] sm:$0xff]  ;;  %v963_v50 = vld [vmem:[%s8683_s4 + $0x48] sm:$0xff] }
  0x28   : > { %4997 = vmatpush3.msra.mxu1 %v743_v41  ;;  %4979 = vmatprep.subr.mxu0 %v649_v44  ;;  %v645_v56 = vsel %vm635_vm3, %v5238_v10, %v4668_v52  ;;  %v5046_v60 = vpop.eup %5045  ;;  %v983_v10 = vld [vmem:[%s8683_s4 + $0xe8] sm:$0xff]  ;;  %v1006_v41 = vld [vmem:[%s8683_s4 + $0x170] sm:$0xff]  ;;  %v962_v52 = vld [vmem:[%s8683_s4 + $0x40] sm:$0xff] }
  0x29   : > { %4998 = vmatprep.subr.mxu1 %v742_v45  ;;  %4980 = vmatpush3.msra.mxu0 %v649_v44  ;;  %v646_v59 = vsel %vm636_vm4, %v5246_v13, %v4669_v53  ;;  %v1020_v13 = vld [vmem:[%s8683_s4 + $0x1e0] sm:$0xff]  ;;  %v999_v55 = vld [vmem:[%s8683_s4 + $0x138] sm:$0xff] }
  0x2a   : > { %4999 = vmatpush3.msra.mxu1 %v742_v45  ;;  %4981 = vmatprep.subr.mxu0 %v648_v47  ;;  %v966_v44 = vld [vmem:[%s8683_s4 + $0x60] sm:$0xff] }
  0x2b   : > { %5000 = vmatprep.subr.mxu1 %v741_v48  ;;  %4982 = vmatpush3.msra.mxu0 %v648_v47  ;;  %v1004_v45 = vld [vmem:[%s8683_s4 + $0x160] sm:$0xff]  ;;  %v1003_v47 = vld [vmem:[%s8683_s4 + $0x158] sm:$0xff] }
  0x2c   : > { %5001 = vmatpush3.msra.mxu1 %v741_v48  ;;  %4983 = vmatprep.subr.mxu0 %v647_v51  ;;  %v964_v48 = vld [vmem:[%s8683_s4 + $0x50] sm:$0xff]  ;;  %v1000_v53 = vld [vmem:[%s8683_s4 + $0x140] sm:$0xff] }
  0x2d   : > { %4985 = vmatprep.mubr.msk.f32.mxu0 %vm472_vm2, %v645_v56  ;;  %4984 = vmatpush3.msra.mxu0 %v647_v51  ;;  %v1001_v51 = vld [vmem:[%s8683_s4 + $0x148] sm:$0xff]  ;;  %v960_v56 = vld [vmem:[%s8683_s4 + $0x30] sm:$0xff] }
  0x2e   : > { %5002 = vmatprep.subr.mxu1 %v740_v54  ;;  %4986 = vmatmul.mubr.msk.f32.vlgmr.msra.gmra.mxu0 %vm472_vm2, %v646_v59  ;;  %v997_v59 = vld [vmem:[%s8683_s4 + $0x128] sm:$0xff] }
  0x2f   : > { %5007 = vmatprep.subr.mxu0 %v850_v57  ;;  %5003 = vmatpush3.msra.mxu1 %v740_v54  ;;  %v961_v54 = vld [vmem:[%s8683_s4 + $0x38] sm:$0xff] }
  0x30   : > { %5004 = vmatprep.mubr.msk.f32.mxu1 %vm472_vm2, %v5044_v58  ;;  %5008 = vmatpush3.msra.mxu0 %v850_v57  ;;  %v998_v57 = vld [vmem:[%s8683_s4 + $0x130] sm:$0xff]  ;;  %v959_v58 = vld [vmem:[%s8683_s4 + $0x28] sm:$0xff] }
  0x31   : > { %5005 = vmatmul.mubr.msk.f32.vlgmr.msra.gmra.mxu1 %vm472_vm2, %v5046_v60  ;;  %5009 = vmatprep.subr.mxu0 %v849_v61  ;;  %v958_v60 = vld [vmem:[%s8683_s4 + $0x20] sm:$0xff] }
  0x32   : > { %5010 = vmatpush3.msra.mxu0 %v849_v61  ;;  %1024 = vmatprep.subr.mxu1 %v1023_v7  ;;  %v996_v61 = vld [vmem:[%s8683_s4 + $0x120] sm:$0xff]  ;;  %v5123_v7 = vmov 0.0  }
  0x33   : > { %5011 = vmatprep.subr.mxu0 %v848_v62  ;;  %v5048_v0 = vpop.eup %5047  ;;  %1025 = vmatpush1.msra.mxu1 %v1022_v9 }
  0x34   : > { %5012 = vmatpush3.msra.mxu0 %v848_v62  ;;  %5023 = vmatprep.mubr.msk.f32.mxu0 %vm472_vm2, %v5048_v0  ;;  %v5050_v5 = vpop.eup %5049  ;;  %v957_v62 = vld [vmem:[%s8683_s4 + $0x18] sm:$0xff]  ;;  %v956_v0 = vld [vmem:[%s8683_s4 + $0x10] sm:$0xff] }
  0x35   : > { %5013 = vmatprep.subr.mxu0 %v847_v63  ;;  %1026 = vmatprep.subr.mxu1 %v1021_v11 }
  0x36   : > { %5014 = vmatpush3.msra.mxu0 %v847_v63  ;;  %1027 = vmatpush1.msra.mxu1 %v1020_v13  ;;  %v995_v63 = vld [vmem:[%s8683_s4 + $0x118] sm:$0xff] }
  0x37   : > { %5015 = vmatprep.subr.mxu0 %v846_v1  ;;  %1028 = vmatprep.subr.mxu1 %v1019_v15 }
  0x38   : > { %5016 = vmatpush3.msra.mxu0 %v846_v1  ;;  %1029 = vmatpush1.msra.mxu1 %v1018_v17  ;;  %v994_v1 = vld [vmem:[%s8683_s4 + $0x110] sm:$0xff] }
  0x39   : > { %5017 = vmatprep.subr.mxu0 %v845_v2  ;;  %1030 = vmatprep.subr.mxu1 %v1017_v19 }
  0x3a   : > { %5018 = vmatpush3.msra.mxu0 %v845_v2  ;;  %1031 = vmatpush1.msra.mxu1 %v1016_v21  ;;  %v955_v2 = vld [vmem:[%s8683_s4 + $0x8] sm:$0xff] }
  0x3b   : > { %5019 = vmatprep.subr.mxu0 %v844_v3  ;;  %1032 = vmatprep.subr.mxu1 %v1015_v23 }
  0x3c   : > { %5020 = vmatpush3.msra.mxu0 %v844_v3  ;;  %1033 = vmatpush1.msra.mxu1 %v1014_v25  ;;  %v993_v3 = vld [vmem:[%s8683_s4 + $0x108] sm:$0xff]  ;;  %v4676_v25 = vld [vmem:[%s8681_s2] ss:$0 sm:$0xff] }
  0x3d   : > { %5021 = vmatprep.subr.mxu0 %v843_v4  ;;  %1034 = vmatprep.subr.mxu1 %v1013_v27 }
  0x3e   : > { %5022 = vmatpush3.msra.mxu0 %v843_v4  ;;  %1035 = vmatpush1.msra.mxu1 %v1012_v29  ;;  %v954_v4 = vld [vmem:[%s8683_s4] sm:$0xff] }
  0x3f   : > { %5024 = vmatmul.mubr.msk.f32.vlgmr.msra.gmra.mxu0 %vm472_vm2, %v5050_v5  ;;  %1101 = vmatprep.subr.mxu0 %v985_v6  ;;  %v992_v5 = vld [vmem:[%s8683_s4 + $0x100] sm:$0xff]  ;;  %v1336_v6 = vld [vmem:[%s8683_s4 + $0x3f8] sm:$0xff] }
  0x40   : > { %1102 = vmatpush1.msra.mxu0 %v984_v8  ;;  %1036 = vmatprep.subr.mxu1 %v1011_v31  ;;  %v1221_v8 = vld [vmem:[%s8683_s4 + $0x2f8] sm:$0xff] }
  0x41   : > { %1103 = vmatprep.subr.mxu0 %v983_v10  ;;  %1037 = vmatpush1.msra.mxu1 %v1010_v33 }
  0x42   : > { %1104 = vmatpush1.msra.mxu0 %v982_v12  ;;  %1038 = vmatprep.subr.mxu1 %v1009_v35 }
  0x43   : > { %1105 = vmatprep.subr.mxu0 %v981_v14  ;;  %1039 = vmatpush1.msra.mxu1 %v1008_v37  ;;  %v1220_v37 = vld [vmem:[%s8683_s4 + $0x2f0] sm:$0xff] }
  0x44   : > { %1106 = vmatpush1.msra.mxu0 %v980_v16  ;;  %1040 = vmatprep.subr.mxu1 %v1007_v39 }
  0x45   : > { %1107 = vmatprep.subr.mxu0 %v979_v18  ;;  %1041 = vmatpush1.msra.mxu1 %v1006_v41  ;;  %v1332_v41 = vld [vmem:[%s8683_s4 + $0x3d8] sm:$0xff] }
  0x46   : > { %1108 = vmatpush1.msra.mxu0 %v978_v20  ;;  %1042 = vmatprep.subr.mxu1 %v1005_v43 }
  0x47   : > { %1109 = vmatprep.subr.mxu0 %v977_v22  ;;  %1043 = vmatpush1.msra.mxu1 %v1004_v45 }
  0x48   : > { %1110 = vmatpush1.msra.mxu0 %v976_v24  ;;  %1044 = vmatprep.subr.mxu1 %v1003_v47  ;;  %v1216_v47 = vld [vmem:[%s8683_s4 + $0x2d0] sm:$0xff] }
  0x49   : > { %1111 = vmatprep.subr.mxu0 %v975_v26  ;;  %1045 = vmatpush1.msra.mxu1 %v1002_v49 }
  0x4a   : > { %1112 = vmatpush1.msra.mxu0 %v974_v28  ;;  %1046 = vmatprep.subr.mxu1 %v1001_v51  ;;  %v1329_v51 = vld [vmem:[%s8683_s4 + $0x3c0] sm:$0xff] }
  0x4b   : > { %1113 = vmatprep.subr.mxu0 %v973_v30  ;;  %1047 = vmatpush1.msra.mxu1 %v1000_v53  ;;  %v4677_v30 = vld [vmem:[%s8682_s3] ss:$0 sm:$0xff]  ;;  %v1328_v53 = vld [vmem:[%s8683_s4 + $0x3b8] sm:$0xff] }
  0x4c   : > { %1114 = vmatpush1.msra.mxu0 %v972_v32  ;;  %1048 = vmatprep.subr.mxu1 %v999_v55  ;;  %v1213_v55 = vld [vmem:[%s8683_s4 + $0x2b8] sm:$0xff] }
  0x4d   : > { %1115 = vmatprep.subr.mxu0 %v971_v34  ;;  %1049 = vmatpush1.msra.mxu1 %v998_v57  ;;  %v1335_v34 = vld [vmem:[%s8683_s4 + $0x3f0] sm:$0xff] }
  0x4e   : > { %1116 = vmatpush1.msra.mxu0 %v970_v36  ;;  %1050 = vmatprep.subr.mxu1 %v997_v59  ;;  %v1334_v36 = vld [vmem:[%s8683_s4 + $0x3e8] sm:$0xff]  ;;  %v1212_v57 = vld [vmem:[%s8683_s4 + $0x2b0] sm:$0xff] }
  0x4f   : > { %1117 = vmatprep.subr.mxu0 %v969_v38  ;;  %1051 = vmatpush1.msra.mxu1 %v996_v61  ;;  %v1333_v38 = vld [vmem:[%s8683_s4 + $0x3e0] sm:$0xff]  ;;  %v1211_v59 = vld [vmem:[%s8683_s4 + $0x2a8] sm:$0xff] }
  0x50   : > { %1118 = vmatpush1.msra.mxu0 %v968_v40  ;;  %1052 = vmatprep.subr.mxu1 %v995_v63  ;;  %v1219_v40 = vld [vmem:[%s8683_s4 + $0x2e8] sm:$0xff]  ;;  %v1210_v61 = vld [vmem:[%s8683_s4 + $0x2a0] sm:$0xff] }
  0x51   : > { %1119 = vmatprep.subr.mxu0 %v967_v42  ;;  %1053 = vmatpush1.msra.mxu1 %v994_v1  ;;  %v1218_v42 = vld [vmem:[%s8683_s4 + $0x2e0] sm:$0xff]  ;;  %v1209_v1 = vld [vmem:[%s8683_s4 + $0x298] sm:$0xff] }
  0x52   : > { %1120 = vmatpush1.msra.mxu0 %v966_v44  ;;  %1054 = vmatprep.subr.mxu1 %v993_v3  ;;  %v1217_v44 = vld [vmem:[%s8683_s4 + $0x2d8] sm:$0xff]  ;;  %v1208_v3 = vld [vmem:[%s8683_s4 + $0x290] sm:$0xff] }
  0x53   : > { %1121 = vmatprep.subr.mxu0 %v965_v46  ;;  %1055 = vmatpush1.msra.mxu1 %v992_v5  ;;  %v1331_v46 = vld [vmem:[%s8683_s4 + $0x3d0] sm:$0xff]  ;;  %v1207_v5 = vld [vmem:[%s8683_s4 + $0x288] sm:$0xff] }
  0x54   : > { %1122 = vmatpush1.msra.mxu0 %v964_v48  ;;  %1165 = vmatprep.mubr.f32.mxu0 %v5123_v7  ;;  %v1330_v48 = vld [vmem:[%s8683_s4 + $0x3c8] sm:$0xff] }
  0x55   : > { %1123 = vmatprep.subr.mxu0 %v963_v50  ;;  %1088 = vmatprep.mubr.f32.mxu1 %v5123_v7  ;;  %v1215_v50 = vld [vmem:[%s8683_s4 + $0x2c8] sm:$0xff] }
  0x56   : > { %1124 = vmatpush1.msra.mxu0 %v962_v52  ;;  %1222 = vmatprep.subr.mxu1 %v1221_v8  ;;  %v1214_v52 = vld [vmem:[%s8683_s4 + $0x2c0] sm:$0xff] }
  0x57   : > { %1125 = vmatprep.subr.mxu0 %v961_v54  ;;  %v1206_v8 = vld [vmem:[%s8683_s4 + $0x280] sm:$0xff] }
  0x58   : > { %1126 = vmatpush1.msra.mxu0 %v960_v56  ;;  %v1327_v56 = vld [vmem:[%s8683_s4 + $0x3b0] sm:$0xff] }
  0x59   : > { %1127 = vmatprep.subr.mxu0 %v959_v58  ;;  %v1326_v58 = vld [vmem:[%s8683_s4 + $0x3a8] sm:$0xff] }
  0x5a   : > { %1128 = vmatpush1.msra.mxu0 %v958_v60  ;;  %v1325_v60 = vld [vmem:[%s8683_s4 + $0x3a0] sm:$0xff] }
  0x5b   : > { %1129 = vmatprep.subr.mxu0 %v957_v62  ;;  %v1324_v62 = vld [vmem:[%s8683_s4 + $0x398] sm:$0xff] }
  0x5c   : > { %1130 = vmatpush1.msra.mxu0 %v956_v0 }
  0x5d   : > { %1131 = vmatprep.subr.mxu0 %v955_v2  ;;  %v1323_v2 = vld [vmem:[%s8683_s4 + $0x390] sm:$0xff] }
  0x5e   : > { %1132 = vmatpush1.msra.mxu0 %v954_v4  ;;  %v1322_v4 = vld [vmem:[%s8683_s4 + $0x388] sm:$0xff] }
  0x5f   : > { %1337 = vmatprep.subr.mxu0 %v1336_v6  ;;  %v1321_v6 = vld [vmem:[%s8683_s4 + $0x380] sm:$0xff] }
  0xdd   : > { %v4949_v9 = vpop.f32.mrf.mxu0 }
  0xde   : > { %v4968_v10 = vpop.f32.mrf.mxu1 }
  0xdf   : > { %v545_v11 = vpop.f32.mrf.mxu0  ;;  %v632_v14 = vadd.f32 %v4968_v10, %v4949_v9  ;;  %v1320_v9 = vld [vmem:[%s8683_s4 + $0x378] sm:$0xff] }
  0xe0   : > { %v626_v13 = vpop.f32.mrf.mxu1 }
  0xe1   : > { %v627_v17 = vadd.f32 %v626_v13, %v545_v11  ;;  %v1205_v11 = vld [vmem:[%s8683_s4 + $0x278] sm:$0xff]  ;;  %v1204_v13 = vld [vmem:[%s8683_s4 + $0x270] sm:$0xff] }
  0xee   : > { %v4987_v12 = vpop.f32.mrf.mxu0 }
  0xef   : > { %v737_v18 = vadd.f32 %v4987_v12, %v632_v14  ;;  %v1319_v12 = vld [vmem:[%s8683_s4 + $0x370] sm:$0xff]  ;;  %v1318_v14 = vld [vmem:[%s8683_s4 + $0x368] sm:$0xff] }
  0xf0   : > { %v727_v15 = vpop.f32.mrf.mxu0 }
  0xf1   : > { %v5006_v16 = vpop.f32.mrf.mxu1  ;;  %v736_v19 = vadd.f32 %v727_v15, %v627_v17  ;;  %v1203_v15 = vld [vmem:[%s8683_s4 + $0x268] sm:$0xff]  ;;  %v1202_v17 = vld [vmem:[%s8683_s4 + $0x260] sm:$0xff] }
  0xf2   : > { %v830_v21 = vadd.f32 %v5006_v16, %v737_v18  ;;  %v1317_v16 = vld [vmem:[%s8683_s4 + $0x360] sm:$0xff]  ;;  %v1316_v18 = vld [vmem:[%s8683_s4 + $0x358] sm:$0xff] }
  0xf3   : > { %v820_v20 = vpop.f32.mrf.mxu1 }
  0xf4   : > { %v829_v23 = vadd.f32 %v820_v20, %v736_v19  ;;  %v1201_v19 = vld [vmem:[%s8683_s4 + $0x258] sm:$0xff]  ;;  %v1315_v20 = vld [vmem:[%s8683_s4 + $0x350] sm:$0xff] }
  0xff   : > { %v5025_v22 = vpop.f32.mrf.mxu0 }
 0x100   : > { %v933_v24 = vadd.f32 %v5025_v22, %v830_v21  ;;  %v1200_v21 = vld [vmem:[%s8683_s4 + $0x250] sm:$0xff]  ;;  %v1314_v22 = vld [vmem:[%s8683_s4 + $0x348] sm:$0xff] }
 0x101   : > { %v923_v26 = vpop.f32.mrf.mxu0 }
 0x102   : > { %v932_v27 = vadd.f32 %v923_v26, %v829_v23  ;;  %v942_v28 = vmul.f32 %v4676_v25, %v933_v24  ;;  %v1199_v23 = vld [vmem:[%s8683_s4 + $0x248] sm:$0xff]  ;;  %v1313_v24 = vld [vmem:[%s8683_s4 + $0x340] sm:$0xff]  ;;  %v1312_v26 = vld [vmem:[%s8683_s4 + $0x338] sm:$0xff] }
 0x104   : > { %v941_v29 = vmul.f32 %v4676_v25, %v932_v27  ;;  %v5568_v32 = vadd.f32 %v4677_v30, %v942_v28  ;;  %v1198_v25 = vld [vmem:[%s8683_s4 + $0x240] sm:$0xff]  ;;  %v1197_v27 = vld [vmem:[%s8683_s4 + $0x238] sm:$0xff]  ;;  %v1311_v28 = vld [vmem:[%s8683_s4 + $0x330] sm:$0xff] }
 0x106   : > { %v5566_v31 = vadd.f32 %v4677_v30, %v941_v29  ;;  %v989_v43 = vmul.f32 0.1, %v5568_v32  ;;  %vm987_vm6 = vcmp.ge.f32.partialorder %v5568_v32, 0.0  ;;  %v953_v45 = vmax.f32 %v5568_v32, 0.0  ;;  %v1196_v29 = vld [vmem:[%s8683_s4 + $0x230] sm:$0xff]  ;;  %v1310_v30 = vld [vmem:[%s8683_s4 + $0x328] sm:$0xff] }
 0x107   : > { %v1181_v0 = vmin.f32 %v5568_v32, 0.0  ;;  %vm1179_vm8 = vcmp.gt.f32.partialorder %v5568_v32, 0.0 }
 0x108   : > { %v952_v33 = vmax.f32 %v5566_v31, 0.0  ;;  %vm986_vm5 = vcmp.ge.f32.partialorder %v5566_v31, 0.0  ;;  %v988_v35 = vmul.f32 0.1, %v5566_v31  ;;  %v991_v49 = vsel %vm987_vm6, %v5568_v32, %v989_v43 }
 0x109   : > { %v1180_v54 = vmin.f32 %v5566_v31, 0.0  ;;  %v1184_v10 = vmul.f32 1.442695, %v1181_v0  ;;  %vm1178_vm7 = vcmp.gt.f32.partialorder %v5566_v31, 0.0  ;;  %v1451_v0 = vld [vmem:[%s8683_s4 + $0x4a8] sm:$0xff] }
 0x10a   : > { %1166 = vmatmul.mubr.f32.vlgmr.msra.gmra.mxu0 %v952_v33  ;;  %v990_v39 = vsel %vm986_vm5, %v5566_v31, %v988_v35  ;;  %v1418_v33 = vsub.f32 0.0, %v5566_v31  ;;  %v1309_v35 = vld [vmem:[%s8683_s4 + $0x320] sm:$0xff] }
 0x10b   : > { %1338 = vmatpush1.msra.mxu0 %v1335_v34  ;;  %1171 = vmatprep.mubr.f32.mxu0 %v5123_v7  ;;  %v1182_v63 = vmul.f32 1.442695, %v1180_v54  ;;  %v1195_v34 = vld [vmem:[%s8683_s4 + $0x228] sm:$0xff] }
 0x10c   : > { %1089 = vmatmul.mubr.f32.vlgmr.msra.gmra.mxu1 %v990_v39  ;;  %1339 = vmatprep.subr.mxu0 %v1334_v36  ;;  %v1194_v36 = vld [vmem:[%s8683_s4 + $0x220] sm:$0xff]  ;;  %v1193_v39 = vld [vmem:[%s8683_s4 + $0x218] sm:$0xff]  ;;  %v1420_v43 = vmul.f32 1.442695, %v1418_v33 }
 0x10d   : > { %1223 = vmatpush1.msra.mxu1 %v1220_v37  ;;  %1340 = vmatpush1.msra.mxu0 %v1333_v38  ;;  %5051 = vpow2.f32 %v1182_v63  ;;  %v1308_v37 = vld [vmem:[%s8683_s4 + $0x318] sm:$0xff] }
 0x10e   : > { %1224 = vmatprep.subr.mxu1 %v1219_v40  ;;  %1341 = vmatprep.subr.mxu0 %v1332_v41  ;;  %5053 = vpow2.f32 %v1184_v10  ;;  %v1307_v40 = vld [vmem:[%s8683_s4 + $0x310] sm:$0xff]  ;;  %v1453_v63 = vld [vmem:[%s8683_s4 + $0x4b8] sm:$0xff] }
 0x10f   : > { %1225 = vmatpush1.msra.mxu1 %v1218_v42  ;;  %1094 = vmatprep.mubr.f32.mxu1 %v5123_v7  ;;  %5055 = vtanh.f32 %v5566_v31  ;;  %v1192_v41 = vld [vmem:[%s8683_s4 + $0x210] sm:$0xff]  ;;  %v1306_v42 = vld [vmem:[%s8683_s4 + $0x308] sm:$0xff]  ;;  %v1594_v33 = vld [vmem:[%s8686_s7 + $0x78] sm:$0xff] }
 0x110   : > { %1172 = vmatmul.mubr.f32.gmra.mxu0 %v953_v45  ;;  %1226 = vmatprep.subr.mxu1 %v1217_v44  ;;  %5057 = vtanh.f32 %v5568_v32  ;;  %v1191_v44 = vld [vmem:[%s8683_s4 + $0x208] sm:$0xff]  ;;  %v1305_v45 = vld [vmem:[%s8683_s4 + $0x300] sm:$0xff]  ;;  %v1444_v10 = vld [vmem:[%s8683_s4 + $0x470] sm:$0xff] }
 0x111   : > { %1342 = vmatpush1.msra.mxu0 %v1331_v46  ;;  %1095 = vmatmul.mubr.f32.gmra.mxu1 %v991_v49  ;;  %v1419_v46 = vsub.f32 0.0, %v5568_v32  ;;  %5059 = vpow2.f32 %v1420_v43  ;;  %v1607_v43 = vld [vmem:[%s8686_s7 + $0xe0] sm:$0xff] }
 0x112   : > { %1227 = vmatpush1.msra.mxu1 %v1216_v47  ;;  %1343 = vmatprep.subr.mxu0 %v1330_v48  ;;  %v1190_v47 = vld [vmem:[%s8683_s4 + $0x200] sm:$0xff] }
 0x113   : > { %1228 = vmatprep.subr.mxu1 %v1215_v50  ;;  %1344 = vmatpush1.msra.mxu0 %v1329_v51  ;;  %v1461_v50 = vld [vmem:[%s8683_s4 + $0x4f8] sm:$0xff] }
 0x114   : > { %1229 = vmatpush1.msra.mxu1 %v1214_v52  ;;  %1345 = vmatprep.subr.mxu0 %v1328_v53  ;;  %v1460_v52 = vld [vmem:[%s8683_s4 + $0x4f0] sm:$0xff]  ;;  %v1422_v53 = vmul.f32 1.442695, %v1419_v46  ;;  %v1635_v46 = vld [vmem:[%s8686_s7 + $0x160] sm:$0xff] }
 0x115   : > { %1230 = vmatprep.subr.mxu1 %v1213_v55  ;;  %1346 = vmatpush1.msra.mxu0 %v1327_v56  ;;  %v1459_v55 = vld [vmem:[%s8683_s4 + $0x4e8] sm:$0xff] }
 0x116   : > { %1231 = vmatpush1.msra.mxu1 %v1212_v57  ;;  %1347 = vmatprep.subr.mxu0 %v1326_v58  ;;  %v1458_v57 = vld [vmem:[%s8683_s4 + $0x4e0] sm:$0xff]  ;;  %v1457_v58 = vld [vmem:[%s8683_s4 + $0x4d8] sm:$0xff]  ;;  %5061 = vpow2.f32 %v1422_v53  ;;  %v1589_v53 = vld [vmem:[%s8686_s7 + $0x50] sm:$0xff] }
 0x117   : > { %1232 = vmatprep.subr.mxu1 %v1211_v59  ;;  %1348 = vmatpush1.msra.mxu0 %v1325_v60 }
 0x118   : > { %1233 = vmatpush1.msra.mxu1 %v1210_v61  ;;  %1349 = vmatprep.subr.mxu0 %v1324_v62  ;;  %v1455_v61 = vld [vmem:[%s8683_s4 + $0x4c8] sm:$0xff]  ;;  %v1454_v62 = vld [vmem:[%s8683_s4 + $0x4c0] sm:$0xff] }
 0x119   : > { %1234 = vmatprep.subr.mxu1 %v1209_v1  ;;  %1350 = vmatpush1.msra.mxu0 %v1323_v2  ;;  %v1450_v1 = vld [vmem:[%s8683_s4 + $0x4a0] sm:$0xff]  ;;  %v1449_v2 = vld [vmem:[%s8683_s4 + $0x498] sm:$0xff] }
 0x11a   : > { %1235 = vmatpush1.msra.mxu1 %v1208_v3  ;;  %1351 = vmatprep.subr.mxu0 %v1322_v4  ;;  %v5052_v38 = vpop.eup %5051  ;;  %v1448_v3 = vld [vmem:[%s8683_s4 + $0x490] sm:$0xff] }
 0x11b   : > { %1236 = vmatprep.subr.mxu1 %v1207_v5  ;;  %1352 = vmatpush1.msra.mxu0 %v1321_v6  ;;  %v4678_v48 = vadd.f32 -1.0, %v5052_v38  ;;  %v5054_v49 = vpop.eup %5053  ;;  %v1447_v5 = vld [vmem:[%s8683_s4 + $0x488] sm:$0xff]  ;;  %v1446_v6 = vld [vmem:[%s8683_s4 + $0x480] sm:$0xff]  ;;  %v1637_v38 = vld [vmem:[%s8686_s7 + $0x170] sm:$0xff] }
 0x11c   : > { %1237 = vmatpush1.msra.mxu1 %v1206_v8  ;;  %1353 = vmatprep.subr.mxu0 %v1320_v9  ;;  %v5056_v51 = vpop.eup %5055  ;;  %v4679_v56 = vadd.f32 -1.0, %v5054_v49  ;;  %v1445_v8 = vld [vmem:[%s8683_s4 + $0x478] sm:$0xff] }
 0x11d   : > { %1238 = vmatprep.subr.mxu1 %v1205_v11  ;;  %1354 = vmatpush1.msra.mxu0 %v1319_v12  ;;  %v1188_v54 = vsel %vm1178_vm7, %v5566_v31, %v4678_v48  ;;  %v5058_v59 = vpop.eup %5057  ;;  %v1456_v31 = vld [vmem:[%s8683_s4 + $0x4d0] sm:$0xff]  ;;  %v1443_v12 = vld [vmem:[%s8683_s4 + $0x468] sm:$0xff]  ;;  %v1650_v48 = vld [vmem:[%s8686_s7 + $0x1d8] sm:$0xff] }
 0x11e   : > { %1239 = vmatpush1.msra.mxu1 %v1204_v13  ;;  %1355 = vmatprep.subr.mxu0 %v1318_v14  ;;  %v1189_v60 = vsel %vm1179_vm8, %v5568_v32, %v4679_v56  ;;  %v1452_v32 = vld [vmem:[%s8683_s4 + $0x4b0] sm:$0xff]  ;;  %v5060_v4 = vpop.eup %5059  ;;  %v1442_v13 = vld [vmem:[%s8683_s4 + $0x460] sm:$0xff]  ;;  %v1441_v14 = vld [vmem:[%s8683_s4 + $0x458] sm:$0xff] }
 0x11f   : > { %1240 = vmatprep.subr.mxu1 %v1203_v15  ;;  %1356 = vmatpush1.msra.mxu0 %v1317_v16  ;;  %v1424_v9 = vadd.f32 1.0, %v5060_v4  ;;  %v1440_v15 = vld [vmem:[%s8683_s4 + $0x450] sm:$0xff]  ;;  %v1590_v49 = vld [vmem:[%s8686_s7 + $0x58] sm:$0xff]  ;;  %v1648_v56 = vld [vmem:[%s8686_s7 + $0x1c8] sm:$0xff] }
 0x120   : > { %1241 = vmatpush1.msra.mxu1 %v1202_v17  ;;  %1357 = vmatprep.subr.mxu0 %v1316_v18  ;;  %v1439_v17 = vld [vmem:[%s8683_s4 + $0x448] sm:$0xff]  ;;  %v1438_v18 = vld [vmem:[%s8683_s4 + $0x440] sm:$0xff]  ;;  %v1629_v4 = vld [vmem:[%s8686_s7 + $0x130] sm:$0xff] }
 0x121   : > { %1242 = vmatprep.subr.mxu1 %v1201_v19  ;;  %1358 = vmatpush1.msra.mxu0 %v1315_v20  ;;  %5063 = vrcp.f32 %v1424_v9  ;;  %v1437_v19 = vld [vmem:[%s8683_s4 + $0x438] sm:$0xff]  ;;  %v1436_v20 = vld [vmem:[%s8683_s4 + $0x430] sm:$0xff]  ;;  %v1628_v9 = vld [vmem:[%s8686_s7 + $0x128] sm:$0xff] }
 0x122   : > { %1243 = vmatpush1.msra.mxu1 %v1200_v21  ;;  %1359 = vmatprep.subr.mxu0 %v1314_v22  ;;  %v1435_v21 = vld [vmem:[%s8683_s4 + $0x428] sm:$0xff]  ;;  %v1434_v22 = vld [vmem:[%s8683_s4 + $0x420] sm:$0xff] }
 0x123   : > { %1244 = vmatprep.subr.mxu1 %v1199_v23  ;;  %1360 = vmatpush1.msra.mxu0 %v1313_v24  ;;  %v5062_v11 = vpop.eup %5061  ;;  %v1433_v23 = vld [vmem:[%s8683_s4 + $0x418] sm:$0xff]  ;;  %v1432_v24 = vld [vmem:[%s8683_s4 + $0x410] sm:$0xff] }
 0x124   : > { %1245 = vmatpush1.msra.mxu1 %v1198_v25  ;;  %1361 = vmatprep.subr.mxu0 %v1312_v26  ;;  %v1425_v16 = vadd.f32 1.0, %v5062_v11  ;;  %v1431_v25 = vld [vmem:[%s8683_s4 + $0x408] sm:$0xff]  ;;  %v1430_v26 = vld [vmem:[%s8683_s4 + $0x400] sm:$0xff] }
 0x125   : > { %1246 = vmatprep.subr.mxu1 %v1197_v27  ;;  %1362 = vmatpush1.msra.mxu0 %v1311_v28  ;;  %v1643_v11 = vld [vmem:[%s8686_s7 + $0x1a0] sm:$0xff] }
 0x126   : > { %1247 = vmatpush1.msra.mxu1 %v1196_v29  ;;  %1363 = vmatprep.subr.mxu0 %v1310_v30  ;;  %5065 = vrcp.f32 %v1425_v16  ;;  %v1610_v29 = vld [vmem:[%s8686_s7 + $0xf8] sm:$0xff] }
 0x127   : > { %1248 = vmatprep.subr.mxu1 %v1195_v34  ;;  %1364 = vmatpush1.msra.mxu0 %v1309_v35  ;;  %v1654_v30 = vld [vmem:[%s8686_s7 + $0x1f8] sm:$0xff]  ;;  %v1609_v35 = vld [vmem:[%s8686_s7 + $0xf0] sm:$0xff] }
 0x128   : > { %1249 = vmatpush1.msra.mxu1 %v1194_v36  ;;  %1365 = vmatprep.subr.mxu0 %v1308_v37  ;;  %v1638_v34 = vld [vmem:[%s8686_s7 + $0x178] sm:$0xff]  ;;  %v1653_v36 = vld [vmem:[%s8686_s7 + $0x1f0] sm:$0xff] }
 0x129   : > { %1250 = vmatprep.subr.mxu1 %v1193_v39  ;;  %1366 = vmatpush1.msra.mxu0 %v1307_v40  ;;  %v1593_v37 = vld [vmem:[%s8686_s7 + $0x70] sm:$0xff]  ;;  %v1608_v39 = vld [vmem:[%s8686_s7 + $0xe8] sm:$0xff]  ;;  %v1582_v16 = vld [vmem:[%s8686_s7 + $0x18] sm:$0xff] }
 0x12a   : > { %1251 = vmatpush1.msra.mxu1 %v1192_v41  ;;  %1367 = vmatprep.subr.mxu0 %v1306_v42  ;;  %v1652_v40 = vld [vmem:[%s8686_s7 + $0x1e8] sm:$0xff] }
 0x12b   : > { %1252 = vmatprep.subr.mxu1 %v1191_v44  ;;  %1368 = vmatpush1.msra.mxu0 %v1305_v45  ;;  %v1592_v41 = vld [vmem:[%s8686_s7 + $0x68] sm:$0xff]  ;;  %v1651_v44 = vld [vmem:[%s8686_s7 + $0x1e0] sm:$0xff] }
 0x12c   : > { %1401 = vmatprep.mubr.f32.mxu0 %v5123_v7  ;;  %1253 = vmatpush1.msra.mxu1 %v1190_v47  ;;  %v1636_v42 = vld [vmem:[%s8686_s7 + $0x168] sm:$0xff]  ;;  %v1591_v45 = vld [vmem:[%s8686_s7 + $0x60] sm:$0xff]  ;;  %v1606_v47 = vld [vmem:[%s8686_s7 + $0xd8] sm:$0xff] }
 0x12d   : > { %1286 = vmatprep.mubr.f32.mxu1 %v5123_v7  ;;  %1402 = vmatmul.mubr.f32.vlgmr.msra.gmra.mxu0 %v5056_v51  ;;  %v1605_v51 = vld [vmem:[%s8686_s7 + $0xd0] sm:$0xff] }
 0x12e   : > { %1287 = vmatmul.mubr.f32.vlgmr.msra.gmra.mxu1 %v1188_v54  ;;  %1462 = vmatprep.subr.mxu1 %v1461_v50  ;;  %v5064_v27 = vpop.eup %5063  ;;  %v1634_v50 = vld [vmem:[%s8686_s7 + $0x158] sm:$0xff]  ;;  %v1633_v54 = vld [vmem:[%s8686_s7 + $0x150] sm:$0xff] }
 0x12f   : > { %1463 = vmatpush1.msra.mxu1 %v1460_v52  ;;  %1407 = vmatprep.mubr.f32.mxu0 %v5123_v7  ;;  %v1649_v52 = vld [vmem:[%s8686_s7 + $0x1d0] sm:$0xff] }
 0x130   : > { %1464 = vmatprep.subr.mxu1 %v1459_v55  ;;  %1292 = vmatprep.mubr.f32.mxu1 %v5123_v7  ;;  %v1604_v55 = vld [vmem:[%s8686_s7 + $0xc8] sm:$0xff] }
 0x131   : > { %1408 = vmatmul.mubr.f32.gmra.mxu0 %v5058_v59  ;;  %1465 = vmatpush1.msra.mxu1 %v1458_v57  ;;  %v1588_v57 = vld [vmem:[%s8686_s7 + $0x48] sm:$0xff]  ;;  %v1603_v59 = vld [vmem:[%s8686_s7 + $0xc0] sm:$0xff] }
 0x132   : > { %1293 = vmatmul.mubr.f32.gmra.mxu1 %v1189_v60  ;;  %1466 = vmatprep.subr.mxu1 %v1457_v58  ;;  %v1632_v58 = vld [vmem:[%s8686_s7 + $0x148] sm:$0xff]  ;;  %v1587_v60 = vld [vmem:[%s8686_s7 + $0x40] sm:$0xff] }
 0x133   : > { %1467 = vmatpush1.msra.mxu1 %v1456_v31  ;;  %1526 = vmatprep.mubr.f32.mxu1 %v5123_v7  ;;  %v5066_v28 = vpop.eup %5065  ;;  %v1647_v31 = vld [vmem:[%s8686_s7 + $0x1c0] sm:$0xff] }
 0x134   : > { %1468 = vmatprep.subr.mxu1 %v1455_v61  ;;  %4741 = vmatprep.subr.mxu0 %v1654_v30  ;;  %v1631_v61 = vld [vmem:[%s8686_s7 + $0x140] sm:$0xff]  ;;  %v1973_v30 = vld [vmem:[%s8686_s7 + $0x3f8] sm:$0xff] }
 0x135   : > { %1469 = vmatpush1.msra.mxu1 %v1454_v62  ;;  %4742 = vmatpush3.msra.mxu0 %v1638_v34  ;;  %v1602_v62 = vld [vmem:[%s8686_s7 + $0xb8] sm:$0xff] }
 0x136   : > { %1470 = vmatprep.subr.mxu1 %v1453_v63  ;;  %4743 = vmatprep.subr.mxu0 %v1653_v36  ;;  %v1646_v63 = vld [vmem:[%s8686_s7 + $0x1b8] sm:$0xff] }
 0x137   : > { %1471 = vmatpush1.msra.mxu1 %v1452_v32  ;;  %4744 = vmatpush3.msra.mxu0 %v1637_v38  ;;  %v1586_v32 = vld [vmem:[%s8686_s7 + $0x38] sm:$0xff] }
 0x138   : > { %1472 = vmatprep.subr.mxu1 %v1451_v0  ;;  %4745 = vmatprep.subr.mxu0 %v1652_v40  ;;  %v1630_v0 = vld [vmem:[%s8686_s7 + $0x138] sm:$0xff] }
 0x139   : > { %1473 = vmatpush1.msra.mxu1 %v1450_v1  ;;  %4746 = vmatpush3.msra.mxu0 %v1636_v42  ;;  %v1601_v1 = vld [vmem:[%s8686_s7 + $0xb0] sm:$0xff]  ;;  %v1545_v42 = vlaneseq }
 0x13a   : > { %1474 = vmatprep.subr.mxu1 %v1449_v2  ;;  %4747 = vmatprep.subr.mxu0 %v1651_v44  ;;  %v1645_v2 = vld [vmem:[%s8686_s7 + $0x1b0] sm:$0xff] }
 0x13b   : > { %1475 = vmatpush1.msra.mxu1 %v1448_v3  ;;  %4748 = vmatpush3.msra.mxu0 %v1635_v46  ;;  %v1585_v3 = vld [vmem:[%s8686_s7 + $0x30] sm:$0xff] }
 0x13c   : > { %1476 = vmatprep.subr.mxu1 %v1447_v5  ;;  %4749 = vmatprep.subr.mxu0 %v1650_v48  ;;  %v1600_v5 = vld [vmem:[%s8686_s7 + $0xa8] sm:$0xff] }
 0x13d   : > { %1477 = vmatpush1.msra.mxu1 %v1446_v6  ;;  %4750 = vmatpush3.msra.mxu0 %v1634_v50  ;;  %v1644_v6 = vld [vmem:[%s8686_s7 + $0x1a8] sm:$0xff] }
 0x13e   : > { %1478 = vmatprep.subr.mxu1 %v1445_v8  ;;  %4751 = vmatprep.subr.mxu0 %v1649_v52  ;;  %v1584_v8 = vld [vmem:[%s8686_s7 + $0x28] sm:$0xff]  ;;  %v1543_v52 = vld [vmem:[%s8684_s5] sm:$0x3] }
 0x13f   : > { %1479 = vmatpush1.msra.mxu1 %v1444_v10  ;;  %4752 = vmatpush3.msra.mxu0 %v1633_v54  ;;  %v1599_v10 = vld [vmem:[%s8686_s7 + $0xa0] sm:$0xff] }
 0x140   : > { %1480 = vmatprep.subr.mxu1 %v1443_v12  ;;  %4753 = vmatprep.subr.mxu0 %v1648_v56  ;;  %v1583_v12 = vld [vmem:[%s8686_s7 + $0x20] sm:$0xff] }
 0x141   : > { %1481 = vmatpush1.msra.mxu1 %v1442_v13  ;;  %4754 = vmatpush3.msra.mxu0 %v1632_v58  ;;  %v1627_v13 = vld [vmem:[%s8686_s7 + $0x120] sm:$0xff] }
 0x142   : > { %1482 = vmatprep.subr.mxu1 %v1441_v14  ;;  %4755 = vmatprep.subr.mxu0 %v1647_v31  ;;  %v1598_v14 = vld [vmem:[%s8686_s7 + $0x98] sm:$0xff]  ;;  %v1559_v58 = vld [vmem:[%s8685_s6] sm:$0x3] }
 0x143   : > { %1483 = vmatpush1.msra.mxu1 %v1440_v15  ;;  %4756 = vmatpush3.msra.mxu0 %v1631_v61  ;;  %v1642_v15 = vld [vmem:[%s8686_s7 + $0x198] sm:$0xff] }
 0x144   : > { %1484 = vmatprep.subr.mxu1 %v1439_v17  ;;  %4757 = vmatprep.subr.mxu0 %v1646_v63  ;;  %v1626_v17 = vld [vmem:[%s8686_s7 + $0x118] sm:$0xff] }
 0x145   : > { %1485 = vmatpush1.msra.mxu1 %v1438_v18  ;;  %4758 = vmatpush3.msra.mxu0 %v1630_v0  ;;  %v1597_v18 = vld [vmem:[%s8686_s7 + $0x90] sm:$0xff] }
 0x146   : > { %1486 = vmatprep.subr.mxu1 %v1437_v19  ;;  %4759 = vmatprep.subr.mxu0 %v1645_v2  ;;  %v1641_v19 = vld [vmem:[%s8686_s7 + $0x190] sm:$0xff] }
 0x147   : > { %1487 = vmatpush1.msra.mxu1 %v1436_v20  ;;  %4760 = vmatpush3.msra.mxu0 %v1629_v4  ;;  %v1581_v20 = vld [vmem:[%s8686_s7 + $0x10] sm:$0xff] }
 0x148   : > { %1488 = vmatprep.subr.mxu1 %v1435_v21  ;;  %4761 = vmatprep.subr.mxu0 %v1644_v6  ;;  %v1625_v21 = vld [vmem:[%s8686_s7 + $0x110] sm:$0xff] }
 0x149   : > { %1489 = vmatpush1.msra.mxu1 %v1434_v22  ;;  %4762 = vmatpush3.msra.mxu0 %v1628_v9  ;;  %v1596_v22 = vld [vmem:[%s8686_s7 + $0x88] sm:$0xff] }
 0x14a   : > { %1490 = vmatprep.subr.mxu1 %v1433_v23  ;;  %4763 = vmatprep.subr.mxu0 %v1643_v11  ;;  %v1640_v23 = vld [vmem:[%s8686_s7 + $0x188] sm:$0xff] }
 0x14b   : > { %1491 = vmatpush1.msra.mxu1 %v1432_v24  ;;  %4764 = vmatpush3.msra.mxu0 %v1627_v13  ;;  %v1580_v24 = vld [vmem:[%s8686_s7 + $0x8] sm:$0xff] }
 0x14c   : > { %1492 = vmatprep.subr.mxu1 %v1431_v25  ;;  %4765 = vmatprep.subr.mxu0 %v1642_v15  ;;  %v1624_v25 = vld [vmem:[%s8686_s7 + $0x108] sm:$0xff] }
 0x14d   : > { %1493 = vmatpush1.msra.mxu1 %v1430_v26  ;;  %4766 = vmatpush3.msra.mxu0 %v1626_v17  ;;  %v1595_v26 = vld [vmem:[%s8686_s7 + $0x80] sm:$0xff] }
 0x14e   : > { %1527 = vmatmul.mubr.f32.vlgmr.msra.gmra.mxu1 %v5064_v27  ;;  %4779 = vmatprep.subr.mxu1 %v1610_v29  ;;  %v1639_v27 = vld [vmem:[%s8686_s7 + $0x180] sm:$0xff] }
 0x14f   : > { %1532 = vmatprep.mubr.f32.mxu1 %v5123_v7  ;;  %4780 = vmatpush3.msra.mxu1 %v1594_v33  ;;  %v1623_v29 = vld [vmem:[%s8686_s7 + $0x100] sm:$0xff]  ;;  %v1860_v33 = vld [vmem:[%s8686_s7 + $0x2f8] sm:$0xff] }
 0x150   : > { %4781 = vmatprep.subr.mxu1 %v1609_v35  ;;  %4767 = vmatprep.subr.mxu0 %v1641_v19 }
 0x151   : > { %4782 = vmatpush3.msra.mxu1 %v1593_v37  ;;  %4768 = vmatpush3.msra.mxu0 %v1625_v21 }
 0x152   : > { %1533 = vmatmul.mubr.f32.gmra.mxu1 %v5066_v28  ;;  %4783 = vmatprep.subr.mxu1 %v1608_v39  ;;  %v1579_v28 = vld [vmem:[%s8686_s7] sm:$0xff] }
 0x153   : > { %4784 = vmatpush3.msra.mxu1 %v1592_v41  ;;  %4769 = vmatprep.subr.mxu0 %v1640_v23 }
 0x154   : > { %4785 = vmatprep.subr.mxu1 %v1607_v43  ;;  %4770 = vmatpush3.msra.mxu0 %v1624_v25  ;;  %v1957_v25 = vld [vmem:[%s8686_s7 + $0x378] sm:$0xff] }
 0x155   : > { %4786 = vmatpush3.msra.mxu1 %v1591_v45  ;;  %4771 = vmatprep.subr.mxu0 %v1639_v27  ;;  %v6076_v45 = vshrl.u32 %v1545_v42, 7  ;;  %v1972_v27 = vld [vmem:[%s8686_s7 + $0x3f0] sm:$0xff] }
 0x156   : > { %4787 = vmatprep.subr.mxu1 %v1606_v47  ;;  %4772 = vmatpush3.msra.mxu0 %v1623_v29 }
 0x157   : > { %4788 = vmatpush3.msra.mxu1 %v1590_v49  ;;  %4817 = vmatprep.subr.mxu0 %v1860_v33  ;;  %v6085_v56 = vsub.s32 1, %v6076_v45  ;;  %v1956_v33 = vld [vmem:[%s8686_s7 + $0x370] sm:$0xff] }
 0x158   : > { %4789 = vmatprep.subr.mxu1 %v1605_v51  ;;  %v6079_v51 = vsub.s32 0, %v6076_v45 }
 0x159   : > { %4790 = vmatpush3.msra.mxu1 %v1589_v53  ;;  %v1552_v2 = vrot.slane %v1543_v52, %v6085_v56 }
 0x15a   : > { %4791 = vmatprep.subr.mxu1 %v1604_v55  ;;  %v1564_v0 = vrot.slane %v1559_v58, %v6079_v51 }
 0x15b   : > { %4792 = vmatpush3.msra.mxu1 %v1588_v57 }
 0x15c   : > { %4793 = vmatprep.subr.mxu1 %v1603_v59 }
 0x15d   : > { %4794 = vmatpush3.msra.mxu1 %v1587_v60  ;;  %v1548_v60 = vrot.slane %v1543_v52, %v6079_v51  ;;  %v1954_v52 = vld [vmem:[%s8686_s7 + $0x360] sm:$0xff] }
 0x15e   : > { %4795 = vmatprep.subr.mxu1 %v1602_v62 }
 0x15f   : > { %4796 = vmatpush3.msra.mxu1 %v1586_v32 }
 0x160   : > { %4797 = vmatprep.subr.mxu1 %v1601_v1 }
 0x161   : > { %4798 = vmatpush3.msra.mxu1 %v1585_v3 }
 0x162   : > { %4799 = vmatprep.subr.mxu1 %v1600_v5 }
 0x163   : > { %4800 = vmatpush3.msra.mxu1 %v1584_v8  ;;  %v1568_v8 = vrot.slane %v1559_v58, %v6085_v56 }
 0x164   : > { %4801 = vmatprep.subr.mxu1 %v1599_v10 }
 0x165   : > { %4802 = vmatpush3.msra.mxu1 %v1583_v12 }
 0x166   : > { %4803 = vmatprep.subr.mxu1 %v1598_v14 }
 0x167   : > { %4804 = vmatpush3.msra.mxu1 %v1582_v16 }
 0x168   : > { %4805 = vmatprep.subr.mxu1 %v1597_v18 }
 0x169   : > { %4806 = vmatpush3.msra.mxu1 %v1581_v20 }
 0x16a   : > { %4807 = vmatprep.subr.mxu1 %v1596_v22 }
 0x16b   : > { %4808 = vmatpush3.msra.mxu1 %v1580_v24 }
 0x16c   : > { %4809 = vmatprep.subr.mxu1 %v1595_v26 }
 0x16d   : > { %4810 = vmatpush3.msra.mxu1 %v1579_v28 }
 0x16e   : > { %4855 = vmatprep.subr.mxu1 %v1973_v30  ;;  %v1844_v30 = vld [vmem:[%s8686_s7 + $0x278] sm:$0xff] }
 0x1ca   : > { %v1167_v36 = vpop.f32.mrf.mxu0 }
 0x1cc   : > { %v1090_v34 = vpop.f32.mrf.mxu1  ;;  %v1169_v38 = vpop.f32.mrf.mxu0 }
 0x1cd   : > { %v1168_v46 = vadd.f32 %v1167_v36, %v1090_v34  ;;  %v1859_v36 = vld [vmem:[%s8686_s7 + $0x2f0] sm:$0xff] }
 0x1ce   : > { %v1092_v35 = vpop.f32.mrf.mxu1 }
 0x1cf   : > { %v1170_v49 = vadd.f32 %v1169_v38, %v1092_v35  ;;  %v1971_v38 = vld [vmem:[%s8686_s7 + $0x3e8] sm:$0xff] }
 0x1d0   : > { %v1173_v41 = vpop.f32.mrf.mxu0 }
 0x1d1   : > { %v1096_v37 = vpop.f32.mrf.mxu1 }
 0x1d2   : > { %v1175_v44 = vpop.f32.mrf.mxu0  ;;  %v1174_v53 = vadd.f32 %v1173_v41, %v1096_v37  ;;  %v1843_v37 = vld [vmem:[%s8686_s7 + $0x270] sm:$0xff] }
 0x1d3   : > { %v1098_v39 = vpop.f32.mrf.mxu1 }
 0x1d4   : > { %v1176_v61 = vadd.f32 %v1175_v44, %v1098_v39 }
 0x1ed   : > { %v1403_v47 = vpop.f32.mrf.mxu0 }
 0x1ee   : > { %v1288_v40 = vpop.f32.mrf.mxu1 }
 0x1ef   : > { %v1299_v50 = vadd.f32 %v1288_v40, %v1168_v46  ;;  %v1405_v54 = vpop.f32.mrf.mxu0  ;;  %v1858_v46 = vld [vmem:[%s8686_s7 + $0x2e8] sm:$0xff] }
 0x1f0   : > { %v1290_v43 = vpop.f32.mrf.mxu1 }
 0x1f1   : > { %v1300_v55 = vadd.f32 %v1290_v43, %v1170_v49  ;;  %v1414_v31 = vadd.f32 %v1403_v47, %v1299_v50  ;;  %v1409_v63 = vpop.f32.mrf.mxu0  ;;  %v1955_v47 = vld [vmem:[%s8686_s7 + $0x368] sm:$0xff] }
 0x1f2   : > { %v1294_v48 = vpop.f32.mrf.mxu1  ;;  %v1842_v50 = vld [vmem:[%s8686_s7 + $0x268] sm:$0xff] }
 0x1f3   : > { %v1301_v59 = vadd.f32 %v1294_v48, %v1174_v53  ;;  %v1415_v1 = vadd.f32 %v1405_v54, %v1300_v55  ;;  %v1411_v11 = vpop.f32.mrf.mxu0  ;;  %v1970_v48 = vld [vmem:[%s8686_s7 + $0x3e0] sm:$0xff]  ;;  %v1969_v55 = vld [vmem:[%s8686_s7 + $0x3d8] sm:$0xff] }
 0x1f4   : > { %v1296_v57 = vpop.f32.mrf.mxu1  ;;  %v1857_v54 = vld [vmem:[%s8686_s7 + $0x2e0] sm:$0xff] }
 0x1f5   : > { %v1302_v3 = vadd.f32 %v1296_v57, %v1176_v61  ;;  %v1416_v9 = vadd.f32 %v1409_v63, %v1301_v59  ;;  %v1841_v59 = vld [vmem:[%s8686_s7 + $0x260] sm:$0xff]  ;;  %v1968_v61 = vld [vmem:[%s8686_s7 + $0x3d0] sm:$0xff]  ;;  %v1840_v63 = vld [vmem:[%s8686_s7 + $0x258] sm:$0xff] }
 0x1f7   : > { %v1417_v15 = vadd.f32 %v1411_v11, %v1302_v3  ;;  %v1966_v11 = vld [vmem:[%s8686_s7 + $0x3c0] sm:$0xff] }
 0x20e   : > { %v1528_v62 = vpop.f32.mrf.mxu1 }
 0x20f   : > { %v1539_v32 = vadd.f32 %v1528_v62, %v1414_v31  ;;  %v1953_v31 = vld [vmem:[%s8686_s7 + $0x358] sm:$0xff] }
 0x210   : > { %v1530_v4 = vpop.f32.mrf.mxu1 }
 0x211   : > { %v1555_v5 = vmul.f32 %v1548_v60, %v1539_v32  ;;  %v1540_v6 = vadd.f32 %v1530_v4, %v1415_v1  ;;  %v1952_v32 = vld [vmem:[%s8686_s7 + $0x350] sm:$0xff]  ;;  %v1967_v1 = vld [vmem:[%s8686_s7 + $0x3c8] sm:$0xff] }
 0x212   : > { %v1534_v10 = vpop.f32.mrf.mxu1  ;;  %v1839_v4 = vld [vmem:[%s8686_s7 + $0x250] sm:$0xff] }
 0x213   : > { %v6094_v12 = vadd.f32 %v1564_v0, %v1555_v5  ;;  %v1556_v13 = vmul.f32 %v1552_v2, %v1540_v6  ;;  %v1541_v14 = vadd.f32 %v1534_v10, %v1416_v9  ;;  %v1854_v6 = vld [vmem:[%s8686_s7 + $0x2c8] sm:$0xff] }
 0x214   : > { %v1536_v16 = vpop.f32.mrf.mxu1  ;;  %v1838_v10 = vld [vmem:[%s8686_s7 + $0x248] sm:$0xff] }
 0x215   : > { %v6096_v17 = vadd.f32 %v1568_v8, %v1556_v13  ;;  %v1557_v18 = vmul.f32 %v1548_v60, %v1541_v14  ;;  %v1542_v19 = vadd.f32 %v1536_v16, %v1417_v15  ;;  %v1615_v21 = vmul.f32 0.1, %v6094_v12  ;;  %v1856_v60 = vld [vmem:[%s8686_s7 + $0x2d8] sm:$0xff]  ;;  %v1853_v13 = vld [vmem:[%s8686_s7 + $0x2c0] sm:$0xff] }
 0x216   : > { %v1575_v24 = vmax.f32 %v6094_v12, 0.0  ;;  %vm1611_vm10 = vcmp.ge.f32.partialorder %v6094_v12, 0.0  ;;  %v1809_v57 = vmin.f32 %v6094_v12, 0.0  ;;  %v1950_v14 = vld [vmem:[%s8686_s7 + $0x340] sm:$0xff]  ;;  %v1965_v16 = vld [vmem:[%s8686_s7 + $0x3b8] sm:$0xff]  ;;  %vm1805_vm14 = vcmp.gt.f32.partialorder %v6094_v12, 0.0 }
 0x217   : > { %v1576_v20 = vmax.f32 %v6096_v17, 0.0  ;;  %vm1612_vm9 = vcmp.ge.f32.partialorder %v6096_v17, 0.0  ;;  %v1558_v22 = vmul.f32 %v1552_v2, %v1542_v19  ;;  %v1616_v23 = vmul.f32 0.1, %v6096_v17  ;;  %v1837_v15 = vld [vmem:[%s8686_s7 + $0x240] sm:$0xff] }
 0x218   : > { %v6107_v26 = vadd.f32 %v1564_v0, %v1557_v18  ;;  %5067 = vtanh.f32 %v6096_v17  ;;  %v1810_v34 = vmin.f32 %v6096_v17, 0.0  ;;  %v1619_v35 = vsel %vm1611_vm10, %v6094_v12, %v1615_v21  ;;  %v1855_v0 = vld [vmem:[%s8686_s7 + $0x2d0] sm:$0xff]  ;;  %v1949_v21 = vld [vmem:[%s8686_s7 + $0x338] sm:$0xff] }
 0x219   : > { %1794 = vmatprep.mubr.f32.mxu1 %v1576_v20  ;;  %v6113_v28 = vadd.f32 %v1568_v8, %v1558_v22  ;;  %v1620_v29 = vsel %vm1612_vm9, %v6096_v17, %v1616_v23  ;;  %v2052_v49 = vsub.f32 0.0, %v6096_v17  ;;  %v1813_v2 = vmul.f32 1.442695, %v1809_v57  ;;  %v1951_v8 = vld [vmem:[%s8686_s7 + $0x348] sm:$0xff]  ;;  %v1852_v20 = vld [vmem:[%s8686_s7 + $0x2b8] sm:$0xff]  ;;  %v1964_v23 = vld [vmem:[%s8686_s7 + $0x3b0] sm:$0xff] }
 0x21a   : > { %1795 = vmatmul.mubr.f32.vlgmr.msra.gmra.mxu1 %v1575_v24  ;;  %1719 = vmatprep.mubr.f32.mxu0 %v1620_v29  ;;  %v1815_v41 = vmul.f32 1.442695, %v1810_v34  ;;  %v1617_v42 = vmul.f32 0.1, %v6107_v26  ;;  %v1577_v44 = vmax.f32 %v6107_v26, 0.0  ;;  %vm1613_vm12 = vcmp.ge.f32.partialorder %v6107_v26, 0.0 }
 0x21b   : > { %4856 = vmatpush3.msra.mxu1 %v1957_v25  ;;  %1720 = vmatmul.mubr.f32.vlgmr.msra.gmra.mxu0 %v1619_v35  ;;  %v1578_v39 = vmax.f32 %v6113_v28, 0.0  ;;  %vm1614_vm11 = vcmp.ge.f32.partialorder %v6113_v28, 0.0  ;;  %v1618_v40 = vmul.f32 0.1, %v6113_v28  ;;  %v2057_v58 = vmul.f32 1.442695, %v2052_v49 }
 0x21c   : > { %4857 = vmatprep.subr.mxu1 %v1972_v27  ;;  %4818 = vmatpush3.msra.mxu0 %v1844_v30  ;;  %5069 = vpow2.f32 %v1815_v41  ;;  %v1621_v53 = vsel %vm1613_vm12, %v6107_v26, %v1617_v42  ;;  %v1812_v62 = vmin.f32 %v6113_v28, 0.0  ;;  %v1811_v5 = vmin.f32 %v6107_v26, 0.0  ;;  %v1836_v22 = vld [vmem:[%s8686_s7 + $0x238] sm:$0xff]  ;;  %v1851_v25 = vld [vmem:[%s8686_s7 + $0x2b0] sm:$0xff]  ;;  %v1850_v34 = vld [vmem:[%s8686_s7 + $0x2a8] sm:$0xff] }
 0x21d   : > { %4858 = vmatpush3.msra.mxu1 %v1956_v33  ;;  %4819 = vmatprep.subr.mxu0 %v1859_v36  ;;  %v1622_v43 = vsel %vm1614_vm11, %v6113_v28, %v1618_v40  ;;  %5071 = vpow2.f32 %v2057_v58  ;;  %vm1806_vm13 = vcmp.gt.f32.partialorder %v6096_v17, 0.0  ;;  %v1948_v29 = vld [vmem:[%s8686_s7 + $0x330] sm:$0xff]  ;;  %v1963_v33 = vld [vmem:[%s8686_s7 + $0x3a8] sm:$0xff]  ;;  %v1833_v40 = vld [vmem:[%s8686_s7 + $0x220] sm:$0xff]  ;;  %vm1808_vm15 = vcmp.gt.f32.partialorder %v6113_v28, 0.0 }
 0x21e   : > { %1799 = vmatprep.mubr.f32.mxu1 %v1578_v39  ;;  %4820 = vmatpush3.msra.mxu0 %v1843_v37  ;;  %v1819_v9 = vmul.f32 1.442695, %v1812_v62  ;;  %5073 = vpow2.f32 %v1813_v2  ;;  %v1817_v18 = vmul.f32 1.442695, %v1811_v5  ;;  %v1835_v30 = vld [vmem:[%s8686_s7 + $0x230] sm:$0xff]  ;;  %v1947_v35 = vld [vmem:[%s8686_s7 + $0x328] sm:$0xff] }
 0x21f   : > { %4859 = vmatprep.subr.mxu1 %v1971_v38  ;;  %1724 = vmatprep.mubr.f32.mxu0 %v1622_v43  ;;  %v1834_v36 = vld [vmem:[%s8686_s7 + $0x228] sm:$0xff]  ;;  %v1962_v37 = vld [vmem:[%s8686_s7 + $0x3a0] sm:$0xff]  ;;  %v1961_v42 = vld [vmem:[%s8686_s7 + $0x398] sm:$0xff]  ;;  %vm1807_vm0 = vcmp.gt.f32.partialorder %v6107_v26, 0.0 }
 0x220   : > { %1800 = vmatmul.mubr.f32.gmra.mxu1 %v1577_v44  ;;  %4821 = vmatprep.subr.mxu0 %v1858_v46  ;;  %5075 = vpow2.f32 %v1819_v9  ;;  %v1849_v38 = vld [vmem:[%s8686_s7 + $0x2a0] sm:$0xff]  ;;  %v1848_v43 = vld [vmem:[%s8686_s7 + $0x298] sm:$0xff]  ;;  %v1847_v49 = vld [vmem:[%s8686_s7 + $0x290] sm:$0xff] }
 0x221   : > { %4860 = vmatpush3.msra.mxu1 %v1955_v47  ;;  %1725 = vmatmul.mubr.f32.gmra.mxu0 %v1621_v53  ;;  %5077 = vpow2.f32 %v1817_v18  ;;  %v1946_v39 = vld [vmem:[%s8686_s7 + $0x320] sm:$0xff]  ;;  %v1945_v44 = vld [vmem:[%s8686_s7 + $0x318] sm:$0xff]  ;;  %v2051_v47 = vsub.f32 0.0, %v6094_v12  ;;  %v1831_v53 = vld [vmem:[%s8686_s7 + $0x210] sm:$0xff] }
 0x222   : > { %4861 = vmatprep.subr.mxu1 %v1970_v48  ;;  %4822 = vmatpush3.msra.mxu0 %v1842_v50  ;;  %5079 = vtanh.f32 %v6094_v12  ;;  %v1832_v46 = vld [vmem:[%s8686_s7 + $0x218] sm:$0xff]  ;;  %v1960_v48 = vld [vmem:[%s8686_s7 + $0x390] sm:$0xff]  ;;  %v1846_v57 = vld [vmem:[%s8686_s7 + $0x288] sm:$0xff] }
 0x223   : > { %4862 = vmatpush3.msra.mxu1 %v1954_v52  ;;  %4823 = vmatprep.subr.mxu0 %v1857_v54  ;;  %5081 = vtanh.f32 %v6113_v28  ;;  %v1944_v52 = vld [vmem:[%s8686_s7 + $0x310] sm:$0xff]  ;;  %v2054_v54 = vsub.f32 0.0, %v6113_v28  ;;  %v1845_v62 = vld [vmem:[%s8686_s7 + $0x280] sm:$0xff]  ;;  %v2106_v5 = vld [vmem:[%s8686_s7 + $0x4f8] sm:$0xff] }
 0x224   : > { %4863 = vmatprep.subr.mxu1 %v1969_v55  ;;  %4824 = vmatpush3.msra.mxu0 %v1841_v59  ;;  %5083 = vtanh.f32 %v6107_v26  ;;  %v1959_v55 = vld [vmem:[%s8686_s7 + $0x388] sm:$0xff]  ;;  %v2090_v9 = vld [vmem:[%s8686_s7 + $0x478] sm:$0xff] }
 0x225   : > { %4864 = vmatpush3.msra.mxu1 %v1953_v31  ;;  %v5068_v3 = vpop.eup %5067  ;;  %4825 = vmatprep.subr.mxu0 %v1856_v60  ;;  %v1943_v59 = vld [vmem:[%s8686_s7 + $0x308] sm:$0xff]  ;;  %v2055_v60 = vmul.f32 1.442695, %v2051_v47  ;;  %v2061_v2 = vmul.f32 1.442695, %v2054_v54  ;;  %v2079_v47 = vld [vmem:[%s8686_s7 + $0x420] sm:$0xff] }
 0x226   : > { %4865 = vmatprep.subr.mxu1 %v1968_v61  ;;  %4826 = vmatpush3.msra.mxu0 %v1840_v63  ;;  %v1830_v31 = vld [vmem:[%s8686_s7 + $0x208] sm:$0xff]  ;;  %v1958_v61 = vld [vmem:[%s8686_s7 + $0x380] sm:$0xff] }
 0x227   : > { %4866 = vmatpush3.msra.mxu1 %v1952_v32  ;;  %4827 = vmatprep.subr.mxu0 %v1855_v0  ;;  %v2053_v32 = vsub.f32 0.0, %v6107_v26  ;;  %v1942_v0 = vld [vmem:[%s8686_s7 + $0x300] sm:$0xff]  ;;  %v2076_v54 = vld [vmem:[%s8686_s7 + $0x408] sm:$0xff] }
 0x228   : > { %4867 = vmatprep.subr.mxu1 %v1967_v1  ;;  %4828 = vmatpush3.msra.mxu0 %v1839_v4  ;;  %v1829_v1 = vld [vmem:[%s8686_s7 + $0x200] sm:$0xff] }
 0x229   : > { %2038 = vmatprep.mubr.f32.mxu1 %v5068_v3  ;;  %4829 = vmatprep.subr.mxu0 %v1854_v6  ;;  %v5070_v19 = vpop.eup %5069 }
 0x22a   : > { %4868 = vmatpush3.msra.mxu1 %v1951_v8  ;;  %4830 = vmatpush3.msra.mxu0 %v1838_v10  ;;  %v4681_v24 = vadd.f32 -1.0, %v5070_v19  ;;  %v2059_v10 = vmul.f32 1.442695, %v2053_v32  ;;  %v2088_v19 = vld [vmem:[%s8686_s7 + $0x468] sm:$0xff] }
 0x22b   : > { %4869 = vmatprep.subr.mxu1 %v1966_v11  ;;  %4831 = vmatprep.subr.mxu0 %v1853_v13  ;;  %v2105_v13 = vld [vmem:[%s8686_s7 + $0x4f0] sm:$0xff]  ;;  %v2451_v32 = vld [vmem:[%s8689_s10 + $0x788] sm:$0xff] }
 0x22c   : > { %4870 = vmatpush3.msra.mxu1 %v1950_v14  ;;  %4832 = vmatpush3.msra.mxu0 %v1837_v15  ;;  %v1826_v27 = vsel %vm1806_vm13, %v6096_v17, %v4681_v24  ;;  %v5072_v17 = vpop.eup %5071  ;;  %v2089_v15 = vld [vmem:[%s8686_s7 + $0x470] sm:$0xff] }
 0x22d   : > { %4871 = vmatprep.subr.mxu1 %v1965_v16  ;;  %4833 = vmatprep.subr.mxu0 %v1852_v20  ;;  %v2064_v41 = vadd.f32 1.0, %v5072_v17  ;;  %v5074_v50 = vpop.eup %5073  ;;  %v2104_v16 = vld [vmem:[%s8686_s7 + $0x4e8] sm:$0xff]  ;;  %v2103_v20 = vld [vmem:[%s8686_s7 + $0x4e0] sm:$0xff]  ;;  %v2101_v24 = vld [vmem:[%s8686_s7 + $0x4d0] sm:$0xff] }
 0x22e   : > { %4872 = vmatpush3.msra.mxu1 %v1949_v21  ;;  %4834 = vmatpush3.msra.mxu0 %v1836_v22  ;;  %v5076_v58 = vpop.eup %5075  ;;  %v4680_v63 = vadd.f32 -1.0, %v5074_v50  ;;  %v2087_v22 = vld [vmem:[%s8686_s7 + $0x460] sm:$0xff]  ;;  %v2093_v50 = vld [vmem:[%s8686_s7 + $0x490] sm:$0xff] }
 0x22f   : > { %4873 = vmatprep.subr.mxu1 %v1964_v23  ;;  %4835 = vmatprep.subr.mxu0 %v1851_v25  ;;  %5085 = vrcp.f32 %v2064_v41  ;;  %v5078_v3 = vpop.eup %5077  ;;  %v4683_v4 = vadd.f32 -1.0, %v5076_v58  ;;  %v2102_v23 = vld [vmem:[%s8686_s7 + $0x4d8] sm:$0xff]  ;;  %v2085_v25 = vld [vmem:[%s8686_s7 + $0x450] sm:$0xff]  ;;  %v2083_v17 = vld [vmem:[%s8686_s7 + $0x440] sm:$0xff] }
 0x230   : > { %1925 = vmatprep.mubr.f32.mxu0 %v1826_v27  ;;  %4874 = vmatpush3.msra.mxu1 %v1948_v29  ;;  %v5080_v6 = vpop.eup %5079  ;;  %5087 = vpow2.f32 %v2055_v60  ;;  %v1825_v8 = vsel %vm1805_vm14, %v6094_v12, %v4680_v63  ;;  %v4682_v14 = vadd.f32 -1.0, %v5078_v3  ;;  %v2100_v27 = vld [vmem:[%s8686_s7 + $0x4c8] sm:$0xff]  ;;  %v2081_v41 = vld [vmem:[%s8686_s7 + $0x430] sm:$0xff] }
 0x231   : > { %4836 = vmatpush3.msra.mxu0 %v1835_v30  ;;  %4875 = vmatprep.subr.mxu1 %v1963_v33  ;;  %v5082_v11 = vpop.eup %5081  ;;  %5089 = vpow2.f32 %v2061_v2  ;;  %v1828_v12 = vsel %vm1808_vm15, %v6113_v28, %v4683_v4  ;;  %v2084_v29 = vld [vmem:[%s8686_s7 + $0x448] sm:$0xff]  ;;  %v2099_v33 = vld [vmem:[%s8686_s7 + $0x4c0] sm:$0xff]  ;;  %v2460_v63 = vld [vmem:[%s8689_s10 + $0x7d0] sm:$0xff] }
 0x232   : > { %4837 = vmatprep.subr.mxu0 %v1850_v34  ;;  %4876 = vmatpush3.msra.mxu1 %v1947_v35  ;;  %v5084_v18 = vpop.eup %5083  ;;  %5091 = vpow2.f32 %v2059_v10  ;;  %v1827_v28 = vsel %vm1807_vm0, %v6107_v26, %v4682_v14  ;;  %v2086_v26 = vld [vmem:[%s8686_s7 + $0x458] sm:$0xff]  ;;  %v2459_v60 = vld [vmem:[%s8689_s10 + $0x7c8] sm:$0xff]  ;;  %v2452_v2 = vld [vmem:[%s8689_s10 + $0x790] sm:$0xff] }
 0x233   : > { %4838 = vmatpush3.msra.mxu0 %v1834_v36  ;;  %4877 = vmatprep.subr.mxu1 %v1962_v37  ;;  %v2098_v35 = vld [vmem:[%s8686_s7 + $0x4b8] sm:$0xff]  ;;  %v2443_v3 = vld [vmem:[%s8689_s10 + $0x748] sm:$0xff]  ;;  %v2434_v10 = vld [vmem:[%s8689_s10 + $0x700] sm:$0xff] }
 0x234   : > { %4839 = vmatprep.subr.mxu0 %v1849_v38  ;;  %4878 = vmatpush3.msra.mxu1 %v1946_v39  ;;  %v2082_v37 = vld [vmem:[%s8686_s7 + $0x438] sm:$0xff]  ;;  %v2097_v39 = vld [vmem:[%s8686_s7 + $0x4b0] sm:$0xff] }
 0x235   : > { %4840 = vmatpush3.msra.mxu0 %v1833_v40  ;;  %4879 = vmatprep.subr.mxu1 %v1961_v42  ;;  %v2096_v42 = vld [vmem:[%s8686_s7 + $0x4a8] sm:$0xff]  ;;  %v2445_v4 = vld [vmem:[%s8689_s10 + $0x758] sm:$0xff] }
 0x236   : > { %4841 = vmatprep.subr.mxu0 %v1848_v43  ;;  %4880 = vmatpush3.msra.mxu1 %v1945_v44  ;;  %v2080_v43 = vld [vmem:[%s8686_s7 + $0x428] sm:$0xff]  ;;  %v2429_v14 = vld [vmem:[%s8689_s10 + $0x6d8] sm:$0xff] }
 0x237   : > { %4842 = vmatpush3.msra.mxu0 %v1832_v46  ;;  %4881 = vmatprep.subr.mxu1 %v1960_v48  ;;  %v2095_v46 = vld [vmem:[%s8686_s7 + $0x4a0] sm:$0xff]  ;;  %v2094_v48 = vld [vmem:[%s8686_s7 + $0x498] sm:$0xff] }
 0x238   : > { %4843 = vmatprep.subr.mxu0 %v1847_v49  ;;  %4882 = vmatpush3.msra.mxu1 %v1944_v52  ;;  %v2078_v49 = vld [vmem:[%s8686_s7 + $0x418] sm:$0xff]  ;;  %v2077_v52 = vld [vmem:[%s8686_s7 + $0x410] sm:$0xff] }
 0x239   : > { %4844 = vmatpush3.msra.mxu0 %v1831_v53  ;;  %4883 = vmatprep.subr.mxu1 %v1959_v55  ;;  %v2092_v53 = vld [vmem:[%s8686_s7 + $0x488] sm:$0xff]  ;;  %v2091_v55 = vld [vmem:[%s8686_s7 + $0x480] sm:$0xff] }
 0x23a   : > { %4845 = vmatprep.subr.mxu0 %v1846_v57  ;;  %4884 = vmatpush3.msra.mxu1 %v1943_v59  ;;  %v2075_v57 = vld [vmem:[%s8686_s7 + $0x400] sm:$0xff] }
 0x23b   : > { %4846 = vmatpush3.msra.mxu0 %v1830_v31  ;;  %4885 = vmatprep.subr.mxu1 %v1958_v61  ;;  %v2461_v61 = vld [vmem:[%s8689_s10 + $0x7d8] sm:$0xff] }
 0x23c   : > { %4847 = vmatprep.subr.mxu0 %v1845_v62  ;;  %4886 = vmatpush3.msra.mxu1 %v1942_v0  ;;  %v5086_v21 = vpop.eup %5085  ;;  %v2458_v62 = vld [vmem:[%s8689_s10 + $0x7c0] sm:$0xff]  ;;  %v2453_v0 = vld [vmem:[%s8689_s10 + $0x798] sm:$0xff] }
 0x23d   : > { %4848 = vmatpush3.msra.mxu0 %v1829_v1  ;;  %2039 = vmatmul.mubr.f32.vlgmr.msra.gmra.mxu1 %v5080_v6  ;;  %v5088_v30 = vpop.eup %5087  ;;  %v2450_v1 = vld [vmem:[%s8689_s10 + $0x780] sm:$0xff]  ;;  %v2444_v6 = vld [vmem:[%s8689_s10 + $0x750] sm:$0xff] }
 0x23e   : > { %1926 = vmatmul.mubr.f32.vlgmr.msra.gmra.mxu0 %v1825_v8  ;;  %2043 = vmatprep.mubr.f32.mxu1 %v5082_v11  ;;  %v5090_v34 = vpop.eup %5089  ;;  %v2063_v36 = vadd.f32 1.0, %v5088_v30  ;;  %v2435_v8 = vld [vmem:[%s8689_s10 + $0x708] sm:$0xff]  ;;  %v2436_v11 = vld [vmem:[%s8689_s10 + $0x710] sm:$0xff]  ;;  %v2397_v30 = vld [vmem:[%s8689_s10 + $0x5d8] sm:$0xff] }
 0x23f   : > { %4893 = vmatprep.subr.mxu0 %v2106_v5  ;;  %1930 = vmatprep.mubr.f32.mxu0 %v1828_v12  ;;  %v5092_v38 = vpop.eup %5091  ;;  %v2066_v40 = vadd.f32 1.0, %v5090_v34  ;;  %v2442_v5 = vld [vmem:[%s8689_s10 + $0x740] sm:$0xff]  ;;  %v2396_v34 = vld [vmem:[%s8689_s10 + $0x5d0] sm:$0xff] }
 0x240   : > { %4894 = vmatpush3.msra.mxu0 %v2090_v9  ;;  %5093 = vrcp.f32 %v2063_v36  ;;  %v2065_v44 = vadd.f32 1.0, %v5092_v38  ;;  %2466 = vmatprep.subr.mxu1 %v2459_v60  ;;  %v2437_v9 = vld [vmem:[%s8689_s10 + $0x718] sm:$0xff]  ;;  %v2426_v12 = vld [vmem:[%s8689_s10 + $0x6c0] sm:$0xff]  ;;  %v2379_v38 = vld [vmem:[%s8689_s10 + $0x548] sm:$0xff] }
 0x241   : > { %4895 = vmatprep.subr.mxu0 %v2105_v13  ;;  %2044 = vmatmul.mubr.f32.gmra.mxu1 %v5084_v18  ;;  %5095 = vrcp.f32 %v2066_v40  ;;  %v2427_v13 = vld [vmem:[%s8689_s10 + $0x6c8] sm:$0xff]  ;;  %v2421_v18 = vld [vmem:[%s8689_s10 + $0x698] sm:$0xff]  ;;  %v2386_v36 = vld [vmem:[%s8689_s10 + $0x580] sm:$0xff] }
 0x242   : > { %4896 = vmatpush3.msra.mxu0 %v2089_v15  ;;  %2530 = vmatprep.mubr.f32.mxu1 %v5123_v7  ;;  %5097 = vrcp.f32 %v2065_v44  ;;  %v2428_v15 = vld [vmem:[%s8689_s10 + $0x6d0] sm:$0xff]  ;;  %v2378_v40 = vld [vmem:[%s8689_s10 + $0x540] sm:$0xff]  ;;  %v2339_v60 = vld [vmem:[%s8689_s10 + $0x408] sm:$0xff] }
 0x243   : > { %1931 = vmatmul.mubr.f32.gmra.mxu0 %v1827_v28  ;;  %4897 = vmatprep.subr.mxu0 %v2104_v16  ;;  %v2419_v16 = vld [vmem:[%s8689_s10 + $0x688] sm:$0xff]  ;;  %v2420_v28 = vld [vmem:[%s8689_s10 + $0x690] sm:$0xff]  ;;  %v2370_v44 = vld [vmem:[%s8689_s10 + $0x500] sm:$0xff] }
 0x244   : > { %4898 = vmatpush3.msra.mxu0 %v2088_v19  ;;  %2171 = vmatprep.mubr.f32.mxu0 %v5086_v21  ;;  %v2418_v19 = vld [vmem:[%s8689_s10 + $0x680] sm:$0xff]  ;;  %v2413_v21 = vld [vmem:[%s8689_s10 + $0x658] sm:$0xff] }
 0x245   : > { %4899 = vmatprep.subr.mxu0 %v2103_v20  ;;  %2467 = vmatpush1.msra.mxu1 %v2458_v62  ;;  %v2411_v20 = vld [vmem:[%s8689_s10 + $0x648] sm:$0xff]  ;;  %v2338_v62 = vld [vmem:[%s8689_s10 + $0x400] sm:$0xff] }
 0x246   : > { %4900 = vmatpush3.msra.mxu0 %v2087_v22  ;;  %2468 = vmatprep.subr.mxu1 %v2451_v32  ;;  %v2410_v22 = vld [vmem:[%s8689_s10 + $0x640] sm:$0xff]  ;;  %v2463_v32 = vld [vmem:[%s8689_s10 + $0x7e8] sm:$0xff] }
 0x247   : > { %4901 = vmatprep.subr.mxu0 %v2102_v23  ;;  %2469 = vmatpush1.msra.mxu1 %v2450_v1  ;;  %v2412_v23 = vld [vmem:[%s8689_s10 + $0x650] sm:$0xff] }
 0x248   : > { %4902 = vmatpush3.msra.mxu0 %v2086_v26  ;;  %2470 = vmatprep.subr.mxu1 %v2443_v3  ;;  %v2403_v26 = vld [vmem:[%s8689_s10 + $0x608] sm:$0xff] }
 0x249   : > { %4903 = vmatprep.subr.mxu0 %v2101_v24  ;;  %2471 = vmatpush1.msra.mxu1 %v2442_v5  ;;  %v2405_v24 = vld [vmem:[%s8689_s10 + $0x618] sm:$0xff] }
 0x24a   : > { %4904 = vmatpush3.msra.mxu0 %v2085_v25  ;;  %2472 = vmatprep.subr.mxu1 %v2435_v8  ;;  %v2402_v25 = vld [vmem:[%s8689_s10 + $0x600] sm:$0xff] }
 0x24b   : > { %4905 = vmatprep.subr.mxu0 %v2100_v27  ;;  %2473 = vmatpush1.msra.mxu1 %v2434_v10  ;;  %v2404_v27 = vld [vmem:[%s8689_s10 + $0x610] sm:$0xff] }
 0x24c   : > { %4906 = vmatpush3.msra.mxu0 %v2084_v29  ;;  %2474 = vmatprep.subr.mxu1 %v2427_v13  ;;  %v2395_v29 = vld [vmem:[%s8689_s10 + $0x5c8] sm:$0xff] }
 0x24d   : > { %4907 = vmatprep.subr.mxu0 %v2099_v33  ;;  %v5094_v58 = vpop.eup %5093  ;;  %2475 = vmatpush1.msra.mxu1 %v2426_v12  ;;  %v2394_v33 = vld [vmem:[%s8689_s10 + $0x5c0] sm:$0xff] }
 0x24e   : > { %4908 = vmatpush3.msra.mxu0 %v2083_v17  ;;  %v5096_v59 = vpop.eup %5095  ;;  %2476 = vmatprep.subr.mxu1 %v2419_v16  ;;  %v2387_v17 = vld [vmem:[%s8689_s10 + $0x588] sm:$0xff] }
 0x24f   : > { %4909 = vmatprep.subr.mxu0 %v2098_v35  ;;  %v5098_v31 = vpop.eup %5097  ;;  %2477 = vmatpush1.msra.mxu1 %v2418_v19  ;;  %v2389_v35 = vld [vmem:[%s8689_s10 + $0x598] sm:$0xff] }
 0x250   : > { %4910 = vmatpush3.msra.mxu0 %v2082_v37  ;;  %2478 = vmatprep.subr.mxu1 %v2411_v20  ;;  %v2388_v37 = vld [vmem:[%s8689_s10 + $0x590] sm:$0xff] }
 0x251   : > { %4911 = vmatprep.subr.mxu0 %v2097_v39  ;;  %2479 = vmatpush1.msra.mxu1 %v2410_v22  ;;  %v2381_v39 = vld [vmem:[%s8689_s10 + $0x558] sm:$0xff] }
 0x252   : > { %4912 = vmatpush3.msra.mxu0 %v2081_v41  ;;  %2480 = vmatprep.subr.mxu1 %v2403_v26  ;;  %v2380_v41 = vld [vmem:[%s8689_s10 + $0x550] sm:$0xff] }
 0x253   : > { %4913 = vmatprep.subr.mxu0 %v2096_v42  ;;  %2481 = vmatpush1.msra.mxu1 %v2402_v25  ;;  %v2371_v42 = vld [vmem:[%s8689_s10 + $0x508] sm:$0xff] }
 0x254   : > { %4914 = vmatpush3.msra.mxu0 %v2080_v43  ;;  %2482 = vmatprep.subr.mxu1 %v2395_v29  ;;  %v2373_v43 = vld [vmem:[%s8689_s10 + $0x518] sm:$0xff] }
 0x255   : > { %4915 = vmatprep.subr.mxu0 %v2095_v46  ;;  %2483 = vmatpush1.msra.mxu1 %v2394_v33  ;;  %v2372_v46 = vld [vmem:[%s8689_s10 + $0x510] sm:$0xff] }
 0x256   : > { %4916 = vmatpush3.msra.mxu0 %v2079_v47  ;;  %2484 = vmatprep.subr.mxu1 %v2387_v17  ;;  %v2363_v47 = vld [vmem:[%s8689_s10 + $0x4c8] sm:$0xff] }
 0x257   : > { %4917 = vmatprep.subr.mxu0 %v2094_v48  ;;  %2485 = vmatpush1.msra.mxu1 %v2386_v36  ;;  %v2365_v48 = vld [vmem:[%s8689_s10 + $0x4d8] sm:$0xff] }
 0x258   : > { %4918 = vmatpush3.msra.mxu0 %v2078_v49  ;;  %2486 = vmatprep.subr.mxu1 %v2379_v38  ;;  %v2362_v49 = vld [vmem:[%s8689_s10 + $0x4c0] sm:$0xff] }
 0x259   : > { %4919 = vmatprep.subr.mxu0 %v2093_v50  ;;  %2487 = vmatpush1.msra.mxu1 %v2378_v40  ;;  %v2364_v50 = vld [vmem:[%s8689_s10 + $0x4d0] sm:$0xff] }
 0x25a   : > { %4920 = vmatpush3.msra.mxu0 %v2077_v52  ;;  %2488 = vmatprep.subr.mxu1 %v2371_v42  ;;  %v2355_v52 = vld [vmem:[%s8689_s10 + $0x488] sm:$0xff] }
 0x25b   : > { %4921 = vmatprep.subr.mxu0 %v2092_v53  ;;  %2489 = vmatpush1.msra.mxu1 %v2370_v44  ;;  %v2357_v53 = vld [vmem:[%s8689_s10 + $0x498] sm:$0xff] }
 0x25c   : > { %4922 = vmatpush3.msra.mxu0 %v2076_v54  ;;  %2490 = vmatprep.subr.mxu1 %v2363_v47  ;;  %v2354_v54 = vld [vmem:[%s8689_s10 + $0x480] sm:$0xff] }
 0x25d   : > { %4923 = vmatprep.subr.mxu0 %v2091_v55  ;;  %2491 = vmatpush1.msra.mxu1 %v2362_v49  ;;  %v2356_v55 = vld [vmem:[%s8689_s10 + $0x490] sm:$0xff] }
 0x25e   : > { %4924 = vmatpush3.msra.mxu0 %v2075_v57  ;;  %2492 = vmatprep.subr.mxu1 %v2355_v52  ;;  %v2347_v57 = vld [vmem:[%s8689_s10 + $0x448] sm:$0xff]  ;;  %v2464_v52 = vld [vmem:[%s8689_s10 + $0x7f0] sm:$0xff] }
 0x25f   : > { %2172 = vmatmul.mubr.f32.vlgmr.msra.gmra.mxu0 %v5094_v58  ;;  %2543 = vmatprep.subr.mxu0 %v2461_v61  ;;  %v2349_v58 = vld [vmem:[%s8689_s10 + $0x458] sm:$0xff] }
 0x260   : > { %2176 = vmatprep.mubr.f32.mxu0 %v5096_v59  ;;  %2544 = vmatpush1.msra.mxu0 %v2460_v63  ;;  %v2346_v59 = vld [vmem:[%s8689_s10 + $0x440] sm:$0xff]  ;;  %v2341_v61 = vld [vmem:[%s8689_s10 + $0x418] sm:$0xff]  ;;  %v2340_v63 = vld [vmem:[%s8689_s10 + $0x410] sm:$0xff] }
 0x261   : > { %2545 = vmatprep.subr.mxu0 %v2453_v0  ;;  %2493 = vmatpush1.msra.mxu1 %v2354_v54  ;;  %v2465_v0 = vld [vmem:[%s8689_s10 + $0x7f8] sm:$0xff]  ;;  %v2455_v54 = vld [vmem:[%s8689_s10 + $0x7a8] sm:$0xff] }
 0x262   : > { %2546 = vmatpush1.msra.mxu0 %v2452_v2  ;;  %2494 = vmatprep.subr.mxu1 %v2347_v57  ;;  %v2454_v57 = vld [vmem:[%s8689_s10 + $0x7a0] sm:$0xff] }
 0x263   : > { %2177 = vmatmul.mubr.f32.gmra.mxu0 %v5098_v31  ;;  %2547 = vmatprep.subr.mxu0 %v2445_v4  ;;  %v2348_v31 = vld [vmem:[%s8689_s10 + $0x450] sm:$0xff] }
 0x264   : > { %2607 = vmatprep.mubr.f32.mxu0 %v5123_v7  ;;  %2548 = vmatpush1.msra.mxu0 %v2444_v6 }
 0x265   : > { %2549 = vmatprep.subr.mxu0 %v2437_v9  ;;  %2495 = vmatpush1.msra.mxu1 %v2346_v59 }
 0x266   : > { %2550 = vmatpush1.msra.mxu0 %v2436_v11  ;;  %2496 = vmatprep.subr.mxu1 %v2339_v60  ;;  %v2449_v60 = vld [vmem:[%s8689_s10 + $0x778] sm:$0xff] }
 0x267   : > { %2551 = vmatprep.subr.mxu0 %v2429_v14  ;;  %2497 = vmatpush1.msra.mxu1 %v2338_v62  ;;  %v2446_v62 = vld [vmem:[%s8689_s10 + $0x760] sm:$0xff] }
 0x268   : > { %2552 = vmatpush1.msra.mxu0 %v2428_v15  ;;  %2620 = vmatprep.subr.mxu1 %v2463_v32  ;;  %v2439_v32 = vld [vmem:[%s8689_s10 + $0x728] sm:$0xff] }
 0x269   : > { %2553 = vmatprep.subr.mxu0 %v2421_v18 }
 0x26a   : > { %2554 = vmatpush1.msra.mxu0 %v2420_v28 }
 0x26b   : > { %2555 = vmatprep.subr.mxu0 %v2413_v21 }
 0x26c   : > { %2556 = vmatpush1.msra.mxu0 %v2412_v23 }
 0x26d   : > { %2557 = vmatprep.subr.mxu0 %v2405_v24 }
 0x26e   : > { %2558 = vmatpush1.msra.mxu0 %v2404_v27 }
 0x26f   : > { %2559 = vmatprep.subr.mxu0 %v2397_v30 }
 0x270   : > { %2560 = vmatpush1.msra.mxu0 %v2396_v34 }
 0x271   : > { %2561 = vmatprep.subr.mxu0 %v2389_v35  ;;  %v4684_v35 = vld [vmem:[%s8687_s8] ss:$0 sm:$0xff] }
 0x272   : > { %2562 = vmatpush1.msra.mxu0 %v2388_v37 }
 0x273   : > { %2563 = vmatprep.subr.mxu0 %v2381_v39  ;;  %v4685_v39 = vld [vmem:[%s8688_s9] ss:$0 sm:$0xff] }
 0x274   : > { %2564 = vmatpush1.msra.mxu0 %v2380_v41 }
 0x275   : > { %2565 = vmatprep.subr.mxu0 %v2373_v43 }
 0x276   : > { %2566 = vmatpush1.msra.mxu0 %v2372_v46 }
 0x277   : > { %2567 = vmatprep.subr.mxu0 %v2365_v48 }
 0x278   : > { %2568 = vmatpush1.msra.mxu0 %v2364_v50  ;;  %v2462_v50 = vld [vmem:[%s8689_s10 + $0x7e0] sm:$0xff] }
 0x279   : > { %2569 = vmatprep.subr.mxu0 %v2357_v53 }
 0x27a   : > { %2570 = vmatpush1.msra.mxu0 %v2356_v55  ;;  %v2457_v55 = vld [vmem:[%s8689_s10 + $0x7b8] sm:$0xff] }
 0x27b   : > { %2571 = vmatprep.subr.mxu0 %v2349_v58  ;;  %v2456_v58 = vld [vmem:[%s8689_s10 + $0x7b0] sm:$0xff] }
 0x27c   : > { %2572 = vmatpush1.msra.mxu0 %v2348_v31  ;;  %v2447_v31 = vld [vmem:[%s8689_s10 + $0x768] sm:$0xff] }
 0x27d   : > { %2573 = vmatprep.subr.mxu0 %v2341_v61 }
 0x27e   : > { %2574 = vmatpush1.msra.mxu0 %v2340_v63  ;;  %v2448_v63 = vld [vmem:[%s8689_s10 + $0x770] sm:$0xff] }
 0x27f   : > { %2697 = vmatprep.subr.mxu0 %v2465_v0  ;;  %v2441_v0 = vld [vmem:[%s8689_s10 + $0x738] sm:$0xff] }
 0x2da   : > { %v4811_v3 = vpop.f32.mrf.mxu1 }
 0x2db   : > { %v4773_v1 = vpop.f32.mrf.mxu0 }
 0x2dc   : > { %v4812_v5 = vpop.f32.mrf.mxu1 }
 0x2dd   : > { %v4774_v2 = vpop.f32.mrf.mxu0  ;;  %v4813_v12 = vadd.f32 %v4812_v5, %v4811_v3  ;;  %v2431_v3 = vld [vmem:[%s8689_s10 + $0x6e8] sm:$0xff]  ;;  %v2430_v5 = vld [vmem:[%s8689_s10 + $0x6e0] sm:$0xff] }
 0x2de   : > { %v4775_v15 = vadd.f32 %v4774_v2, %v4773_v1  ;;  %v2438_v1 = vld [vmem:[%s8689_s10 + $0x720] sm:$0xff]  ;;  %v2440_v2 = vld [vmem:[%s8689_s10 + $0x730] sm:$0xff] }
 0x2e0   : > { %v4814_v8 = vpop.f32.mrf.mxu1  ;;  %v1797_v28 = vadd.f32 %v4813_v12, %v4775_v15  ;;  %v2414_v12 = vld [vmem:[%s8689_s10 + $0x660] sm:$0xff]  ;;  %v2416_v15 = vld [vmem:[%s8689_s10 + $0x670] sm:$0xff] }
 0x2e1   : > { %v4776_v4 = vpop.f32.mrf.mxu0 }
 0x2e2   : > { %v4815_v10 = vpop.f32.mrf.mxu1 }
 0x2e3   : > { %v4777_v6 = vpop.f32.mrf.mxu0  ;;  %v4816_v20 = vadd.f32 %v4815_v10, %v4814_v8  ;;  %v2423_v8 = vld [vmem:[%s8689_s10 + $0x6a8] sm:$0xff]  ;;  %v2422_v10 = vld [vmem:[%s8689_s10 + $0x6a0] sm:$0xff] }
 0x2e4   : > { %v4778_v21 = vadd.f32 %v4777_v6, %v4776_v4  ;;  %v2433_v4 = vld [vmem:[%s8689_s10 + $0x6f8] sm:$0xff]  ;;  %v2432_v6 = vld [vmem:[%s8689_s10 + $0x6f0] sm:$0xff] }
 0x2e6   : > { %v1802_v25 = vadd.f32 %v4816_v20, %v4778_v21  ;;  %v2399_v20 = vld [vmem:[%s8689_s10 + $0x5e8] sm:$0xff]  ;;  %v2401_v21 = vld [vmem:[%s8689_s10 + $0x5f8] sm:$0xff] }
 0x2fd   : > { %v4887_v13 = vpop.f32.mrf.mxu1 }
 0x2fe   : > { %v4849_v9 = vpop.f32.mrf.mxu0 }
 0x2ff   : > { %v4888_v16 = vpop.f32.mrf.mxu1 }
 0x300   : > { %v4850_v11 = vpop.f32.mrf.mxu0  ;;  %v4889_v27 = vadd.f32 %v4888_v16, %v4887_v13  ;;  %v2415_v13 = vld [vmem:[%s8689_s10 + $0x668] sm:$0xff] }
 0x301   : > { %v4851_v18 = vadd.f32 %v4850_v11, %v4849_v9  ;;  %v4890_v22 = vpop.f32.mrf.mxu1  ;;  %v2425_v9 = vld [vmem:[%s8689_s10 + $0x6b8] sm:$0xff]  ;;  %v2424_v11 = vld [vmem:[%s8689_s10 + $0x6b0] sm:$0xff]  ;;  %v2407_v16 = vld [vmem:[%s8689_s10 + $0x628] sm:$0xff] }
 0x303   : > { %v4852_v14 = vpop.f32.mrf.mxu0  ;;  %v1936_v23 = vadd.f32 %v4851_v18, %v1797_v28  ;;  %v4891_v29 = vpop.f32.mrf.mxu1  ;;  %v2409_v18 = vld [vmem:[%s8689_s10 + $0x638] sm:$0xff]  ;;  %v2408_v28 = vld [vmem:[%s8689_s10 + $0x630] sm:$0xff] }
 0x304   : > { %v4892_v37 = vadd.f32 %v4891_v29, %v4890_v22  ;;  %v2398_v22 = vld [vmem:[%s8689_s10 + $0x5e0] sm:$0xff]  ;;  %v2383_v29 = vld [vmem:[%s8689_s10 + $0x568] sm:$0xff] }
 0x305   : > { %v4853_v19 = vpop.f32.mrf.mxu0  ;;  %v2049_v34 = vadd.f32 %v4889_v27, %v1936_v23  ;;  %v2400_v23 = vld [vmem:[%s8689_s10 + $0x5f0] sm:$0xff] }
 0x306   : > { %v4854_v26 = vadd.f32 %v4853_v19, %v4852_v14  ;;  %v2417_v14 = vld [vmem:[%s8689_s10 + $0x678] sm:$0xff]  ;;  %v2406_v19 = vld [vmem:[%s8689_s10 + $0x620] sm:$0xff]  ;;  %v2392_v27 = vld [vmem:[%s8689_s10 + $0x5b0] sm:$0xff] }
 0x308   : > { %v1937_v33 = vadd.f32 %v4854_v26, %v1802_v25  ;;  %v2391_v26 = vld [vmem:[%s8689_s10 + $0x5a8] sm:$0xff]  ;;  %v2390_v25 = vld [vmem:[%s8689_s10 + $0x5a0] sm:$0xff] }
 0x30a   : > { %v2050_v42 = vadd.f32 %v4892_v37, %v1937_v33  ;;  %v2382_v33 = vld [vmem:[%s8689_s10 + $0x560] sm:$0xff]  ;;  %v2376_v37 = vld [vmem:[%s8689_s10 + $0x530] sm:$0xff] }
 0x31f   : > { %v4925_v24 = vpop.f32.mrf.mxu0 }
 0x321   : > { %v4926_v30 = vpop.f32.mrf.mxu0 }
 0x322   : > { %v4927_v17 = vadd.f32 %v4926_v30, %v4925_v24  ;;  %v2393_v24 = vld [vmem:[%s8689_s10 + $0x5b8] sm:$0xff] }
 0x323   : > { %v4928_v36 = vpop.f32.mrf.mxu0  ;;  %v2385_v30 = vld [vmem:[%s8689_s10 + $0x578] sm:$0xff] }
 0x324   : > { %v2182_v38 = vadd.f32 %v4927_v17, %v2049_v34  ;;  %v2384_v34 = vld [vmem:[%s8689_s10 + $0x570] sm:$0xff]  ;;  %v2375_v17 = vld [vmem:[%s8689_s10 + $0x528] sm:$0xff] }
 0x325   : > { %v4929_v40 = vpop.f32.mrf.mxu0 }
 0x326   : > { %v2191_v41 = vmul.f32 %v4684_v35, %v2182_v38  ;;  %v4930_v43 = vadd.f32 %v4929_v40, %v4928_v36  ;;  %v2374_v36 = vld [vmem:[%s8689_s10 + $0x520] sm:$0xff]  ;;  %v2367_v38 = vld [vmem:[%s8689_s10 + $0x4e8] sm:$0xff] }
 0x327   : > { %v2366_v40 = vld [vmem:[%s8689_s10 + $0x4e0] sm:$0xff] }
 0x328   : > { %v6626_v44 = vadd.f32 %v4685_v39, %v2191_v41  ;;  %v2183_v46 = vadd.f32 %v4930_v43, %v2050_v42  ;;  %v2368_v41 = vld [vmem:[%s8689_s10 + $0x4f0] sm:$0xff]  ;;  %v2359_v42 = vld [vmem:[%s8689_s10 + $0x4a8] sm:$0xff]  ;;  %v2361_v43 = vld [vmem:[%s8689_s10 + $0x4b8] sm:$0xff] }
 0x32a   : > { %v2192_v47 = vmul.f32 %v4684_v35, %v2183_v46  ;;  %vm2332_vm1 = vcmp.ge.f32.partialorder %v6626_v44, 0.0  ;;  %v2334_v48 = vmul.f32 0.1, %v6626_v44  ;;  %v2377_v35 = vld [vmem:[%s8689_s10 + $0x538] sm:$0xff]  ;;  %v2358_v46 = vld [vmem:[%s8689_s10 + $0x4a0] sm:$0xff]  ;;  %vm3082_vm3 = vcmp.gt.f32.partialorder %v6626_v44, 0.0 }
 0x32c   : > { %v6630_v49 = vadd.f32 %v4685_v39, %v2192_v47  ;;  %v6639_v53 = vsel %vm2332_vm1, %v6626_v44, %v2334_v48  ;;  %v2369_v39 = vld [vmem:[%s8689_s10 + $0x4f8] sm:$0xff]  ;;  %v2360_v47 = vld [vmem:[%s8689_s10 + $0x4b0] sm:$0xff]  ;;  %v2351_v48 = vld [vmem:[%s8689_s10 + $0x468] sm:$0xff] }
 0x32d   : > { %2531 = vmatmul.mubr.f32.vlgmr.msra.gmra.mxu1 %v6639_v53  ;;  %2608 = vmatmul.mubr.f32.vlgmr.msra.gmra.mxu0 %v6639_v53 }
 0x32e   : > { %vm2333_vm2 = vcmp.ge.f32.partialorder %v6630_v49, 0.0  ;;  %v2335_v59 = vmul.f32 0.1, %v6630_v49  ;;  %2621 = vmatpush1.msra.mxu1 %v2462_v50  ;;  %2698 = vmatpush1.msra.mxu0 %v2464_v52  ;;  %v2353_v50 = vld [vmem:[%s8689_s10 + $0x478] sm:$0xff]  ;;  %v2350_v52 = vld [vmem:[%s8689_s10 + $0x460] sm:$0xff]  ;;  %vm3083_vm4 = vcmp.gt.f32.partialorder %v6630_v49, 0.0 }
 0x32f   : > { %2622 = vmatprep.subr.mxu1 %v2455_v54  ;;  %2699 = vmatprep.subr.mxu0 %v2457_v55  ;;  %v2352_v54 = vld [vmem:[%s8689_s10 + $0x470] sm:$0xff]  ;;  %v2343_v55 = vld [vmem:[%s8689_s10 + $0x428] sm:$0xff] }
 0x330   : > { %2623 = vmatpush1.msra.mxu1 %v2454_v57  ;;  %2700 = vmatpush1.msra.mxu0 %v2456_v58  ;;  %v6664_v61 = vsel %vm2333_vm2, %v6630_v49, %v2335_v59  ;;  %v2345_v57 = vld [vmem:[%s8689_s10 + $0x438] sm:$0xff]  ;;  %v2342_v58 = vld [vmem:[%s8689_s10 + $0x420] sm:$0xff]  ;;  %v2344_v59 = vld [vmem:[%s8689_s10 + $0x430] sm:$0xff] }
 0x331   : > { %2536 = vmatprep.mubr.f32.mxu1 %v5123_v7  ;;  %2613 = vmatprep.mubr.f32.mxu0 %v5123_v7 }
 0x332   : > { %2624 = vmatprep.subr.mxu1 %v2447_v31  ;;  %2701 = vmatprep.subr.mxu0 %v2449_v60  ;;  %v2325_v31 = vld [vmem:[%s8689_s10 + $0x3c8] sm:$0xff]  ;;  %v2327_v60 = vld [vmem:[%s8689_s10 + $0x3d8] sm:$0xff] }
 0x333   : > { %2537 = vmatmul.mubr.f32.gmra.mxu1 %v6664_v61  ;;  %2614 = vmatmul.mubr.f32.gmra.mxu0 %v6664_v61 }
 0x334   : > { %2625 = vmatpush1.msra.mxu1 %v2446_v62  ;;  %2702 = vmatpush1.msra.mxu0 %v2448_v63  ;;  %v2324_v62 = vld [vmem:[%s8689_s10 + $0x3c0] sm:$0xff]  ;;  %v2326_v63 = vld [vmem:[%s8689_s10 + $0x3d0] sm:$0xff] }
 0x335   : > { %2626 = vmatprep.subr.mxu1 %v2439_v32  ;;  %2703 = vmatprep.subr.mxu0 %v2441_v0  ;;  %v2317_v32 = vld [vmem:[%s8689_s10 + $0x388] sm:$0xff]  ;;  %v2319_v0 = vld [vmem:[%s8689_s10 + $0x398] sm:$0xff] }
 0x336   : > { %2627 = vmatpush1.msra.mxu1 %v2438_v1  ;;  %2704 = vmatpush1.msra.mxu0 %v2440_v2  ;;  %v2316_v1 = vld [vmem:[%s8689_s10 + $0x380] sm:$0xff]  ;;  %v2309_v2 = vld [vmem:[%s8689_s10 + $0x348] sm:$0xff] }
 0x337   : > { %2628 = vmatprep.subr.mxu1 %v2431_v3  ;;  %2705 = vmatprep.subr.mxu0 %v2433_v4  ;;  %v2311_v3 = vld [vmem:[%s8689_s10 + $0x358] sm:$0xff]  ;;  %v2308_v4 = vld [vmem:[%s8689_s10 + $0x340] sm:$0xff] }
 0x338   : > { %2629 = vmatpush1.msra.mxu1 %v2430_v5  ;;  %2706 = vmatpush1.msra.mxu0 %v2432_v6  ;;  %v2310_v5 = vld [vmem:[%s8689_s10 + $0x350] sm:$0xff]  ;;  %v2301_v6 = vld [vmem:[%s8689_s10 + $0x308] sm:$0xff] }
 0x339   : > { %2630 = vmatprep.subr.mxu1 %v2423_v8  ;;  %2707 = vmatprep.subr.mxu0 %v2425_v9  ;;  %v2303_v8 = vld [vmem:[%s8689_s10 + $0x318] sm:$0xff]  ;;  %v2300_v9 = vld [vmem:[%s8689_s10 + $0x300] sm:$0xff] }
 0x33a   : > { %2631 = vmatpush1.msra.mxu1 %v2422_v10  ;;  %2708 = vmatpush1.msra.mxu0 %v2424_v11  ;;  %v2302_v10 = vld [vmem:[%s8689_s10 + $0x310] sm:$0xff]  ;;  %v2295_v11 = vld [vmem:[%s8689_s10 + $0x2d8] sm:$0xff] }
 0x33b   : > { %2632 = vmatprep.subr.mxu1 %v2415_v13  ;;  %2709 = vmatprep.subr.mxu0 %v2417_v14  ;;  %v2292_v13 = vld [vmem:[%s8689_s10 + $0x2c0] sm:$0xff]  ;;  %v2294_v14 = vld [vmem:[%s8689_s10 + $0x2d0] sm:$0xff] }
 0x33c   : > { %2633 = vmatpush1.msra.mxu1 %v2414_v12  ;;  %2710 = vmatpush1.msra.mxu0 %v2416_v15  ;;  %v2285_v12 = vld [vmem:[%s8689_s10 + $0x288] sm:$0xff]  ;;  %v2287_v15 = vld [vmem:[%s8689_s10 + $0x298] sm:$0xff] }
 0x33d   : > { %2634 = vmatprep.subr.mxu1 %v2407_v16  ;;  %2711 = vmatprep.subr.mxu0 %v2409_v18  ;;  %v2284_v16 = vld [vmem:[%s8689_s10 + $0x280] sm:$0xff]  ;;  %v2286_v18 = vld [vmem:[%s8689_s10 + $0x290] sm:$0xff] }
 0x33e   : > { %2635 = vmatpush1.msra.mxu1 %v2406_v19  ;;  %2712 = vmatpush1.msra.mxu0 %v2408_v28  ;;  %v2277_v19 = vld [vmem:[%s8689_s10 + $0x248] sm:$0xff]  ;;  %v2279_v28 = vld [vmem:[%s8689_s10 + $0x258] sm:$0xff] }
 0x33f   : > { %2636 = vmatprep.subr.mxu1 %v2399_v20  ;;  %2713 = vmatprep.subr.mxu0 %v2401_v21  ;;  %v2276_v20 = vld [vmem:[%s8689_s10 + $0x240] sm:$0xff]  ;;  %v2278_v21 = vld [vmem:[%s8689_s10 + $0x250] sm:$0xff] }
 0x340   : > { %2637 = vmatpush1.msra.mxu1 %v2398_v22  ;;  %2714 = vmatpush1.msra.mxu0 %v2400_v23  ;;  %v2269_v22 = vld [vmem:[%s8689_s10 + $0x208] sm:$0xff]  ;;  %v2271_v23 = vld [vmem:[%s8689_s10 + $0x218] sm:$0xff] }
 0x341   : > { %2638 = vmatprep.subr.mxu1 %v2391_v26  ;;  %2715 = vmatprep.subr.mxu0 %v2393_v24  ;;  %v2268_v26 = vld [vmem:[%s8689_s10 + $0x200] sm:$0xff]  ;;  %v2270_v24 = vld [vmem:[%s8689_s10 + $0x210] sm:$0xff] }
 0x342   : > { %2639 = vmatpush1.msra.mxu1 %v2390_v25  ;;  %2716 = vmatpush1.msra.mxu0 %v2392_v27  ;;  %v2261_v25 = vld [vmem:[%s8689_s10 + $0x1c8] sm:$0xff]  ;;  %v2263_v27 = vld [vmem:[%s8689_s10 + $0x1d8] sm:$0xff] }
 0x343   : > { %2640 = vmatprep.subr.mxu1 %v2383_v29  ;;  %2717 = vmatprep.subr.mxu0 %v2385_v30  ;;  %v2260_v29 = vld [vmem:[%s8689_s10 + $0x1c0] sm:$0xff]  ;;  %v2262_v30 = vld [vmem:[%s8689_s10 + $0x1d0] sm:$0xff] }
 0x344   : > { %2641 = vmatpush1.msra.mxu1 %v2382_v33  ;;  %2718 = vmatpush1.msra.mxu0 %v2384_v34  ;;  %v2253_v33 = vld [vmem:[%s8689_s10 + $0x188] sm:$0xff]  ;;  %v2255_v34 = vld [vmem:[%s8689_s10 + $0x198] sm:$0xff] }
 0x345   : > { %2642 = vmatprep.subr.mxu1 %v2375_v17  ;;  %2719 = vmatprep.subr.mxu0 %v2377_v35  ;;  %v2252_v17 = vld [vmem:[%s8689_s10 + $0x180] sm:$0xff]  ;;  %v2254_v35 = vld [vmem:[%s8689_s10 + $0x190] sm:$0xff] }
 0x346   : > { %2643 = vmatpush1.msra.mxu1 %v2374_v36  ;;  %2720 = vmatpush1.msra.mxu0 %v2376_v37  ;;  %v2245_v36 = vld [vmem:[%s8689_s10 + $0x148] sm:$0xff]  ;;  %v2247_v37 = vld [vmem:[%s8689_s10 + $0x158] sm:$0xff] }
 0x347   : > { %2644 = vmatprep.subr.mxu1 %v2367_v38  ;;  %2721 = vmatprep.subr.mxu0 %v2369_v39  ;;  %v2244_v38 = vld [vmem:[%s8689_s10 + $0x140] sm:$0xff]  ;;  %v2246_v39 = vld [vmem:[%s8689_s10 + $0x150] sm:$0xff] }
 0x348   : > { %2645 = vmatpush1.msra.mxu1 %v2366_v40  ;;  %2722 = vmatpush1.msra.mxu0 %v2368_v41  ;;  %v2237_v40 = vld [vmem:[%s8689_s10 + $0x108] sm:$0xff]  ;;  %v2239_v41 = vld [vmem:[%s8689_s10 + $0x118] sm:$0xff] }
 0x349   : > { %2646 = vmatprep.subr.mxu1 %v2359_v42  ;;  %2723 = vmatprep.subr.mxu0 %v2361_v43  ;;  %v2236_v42 = vld [vmem:[%s8689_s10 + $0x100] sm:$0xff]  ;;  %v2238_v43 = vld [vmem:[%s8689_s10 + $0x110] sm:$0xff] }
 0x34a   : > { %2647 = vmatpush1.msra.mxu1 %v2358_v46  ;;  %2724 = vmatpush1.msra.mxu0 %v2360_v47  ;;  %v2229_v46 = vld [vmem:[%s8689_s10 + $0xc8] sm:$0xff]  ;;  %v2231_v47 = vld [vmem:[%s8689_s10 + $0xd8] sm:$0xff] }
 0x34b   : > { %2648 = vmatprep.subr.mxu1 %v2351_v48  ;;  %2725 = vmatprep.subr.mxu0 %v2353_v50  ;;  %v2228_v48 = vld [vmem:[%s8689_s10 + $0xc0] sm:$0xff]  ;;  %v2230_v50 = vld [vmem:[%s8689_s10 + $0xd0] sm:$0xff] }
 0x34c   : > { %2649 = vmatpush1.msra.mxu1 %v2350_v52  ;;  %2726 = vmatpush1.msra.mxu0 %v2352_v54  ;;  %v2221_v52 = vld [vmem:[%s8689_s10 + $0x88] sm:$0xff]  ;;  %v2223_v54 = vld [vmem:[%s8689_s10 + $0x98] sm:$0xff] }
 0x34d   : > { %2650 = vmatprep.subr.mxu1 %v2343_v55  ;;  %2727 = vmatprep.subr.mxu0 %v2345_v57  ;;  %v2220_v55 = vld [vmem:[%s8689_s10 + $0x80] sm:$0xff]  ;;  %v2222_v57 = vld [vmem:[%s8689_s10 + $0x90] sm:$0xff] }
 0x34e   : > { %2651 = vmatpush1.msra.mxu1 %v2342_v58  ;;  %2684 = vmatprep.mubr.f32.mxu1 %v5123_v7  ;;  %v2213_v58 = vld [vmem:[%s8689_s10 + $0x48] sm:$0xff] }
 0x34f   : > { %2728 = vmatpush1.msra.mxu0 %v2344_v59  ;;  %2761 = vmatprep.mubr.f32.mxu0 %v5123_v7  ;;  %v2215_v59 = vld [vmem:[%s8689_s10 + $0x58] sm:$0xff] }
 0x350   : > { %2685 = vmatmul.mubr.f32.vlgmr.msra.gmra.mxu1 %v6639_v53  ;;  %2762 = vmatmul.mubr.f32.vlgmr.msra.gmra.mxu0 %v6639_v53  ;;  %v2318_v53 = vld [vmem:[%s8689_s10 + $0x390] sm:$0xff] }
 0x351   : > { %2774 = vmatprep.subr.mxu1 %v2325_v31  ;;  %2851 = vmatprep.subr.mxu0 %v2327_v60  ;;  %v2212_v31 = vld [vmem:[%s8689_s10 + $0x40] sm:$0xff]  ;;  %v2214_v60 = vld [vmem:[%s8689_s10 + $0x50] sm:$0xff] }
 0x352   : > { %2775 = vmatpush1.msra.mxu1 %v2324_v62  ;;  %2852 = vmatpush1.msra.mxu0 %v2326_v63  ;;  %v2205_v62 = vld [vmem:[%s8689_s10 + $0x8] sm:$0xff]  ;;  %v2207_v63 = vld [vmem:[%s8689_s10 + $0x18] sm:$0xff] }
 0x353   : > { %2776 = vmatprep.subr.mxu1 %v2317_v32  ;;  %2853 = vmatprep.subr.mxu0 %v2319_v0  ;;  %v2204_v32 = vld [vmem:[%s8689_s10] sm:$0xff]  ;;  %v2206_v0 = vld [vmem:[%s8689_s10 + $0x10] sm:$0xff] }
 0x354   : > { %2690 = vmatprep.mubr.f32.mxu1 %v5123_v7  ;;  %2767 = vmatprep.mubr.f32.mxu0 %v5123_v7 }
 0x355   : > { %2777 = vmatpush1.msra.mxu1 %v2316_v1  ;;  %2854 = vmatpush1.msra.mxu0 %v2318_v53  ;;  %v7034_v1 = vmax.f32 %v6626_v44, 0.0  ;;  %v2329_v53 = vld [vmem:[%s8689_s10 + $0x3e8] sm:$0xff] }
 0x356   : > { %2691 = vmatmul.mubr.f32.gmra.mxu1 %v6664_v61  ;;  %2768 = vmatmul.mubr.f32.gmra.mxu0 %v6664_v61  ;;  %v2293_v61 = vld [vmem:[%s8689_s10 + $0x2c8] sm:$0xff] }
 0x357   : > { %2778 = vmatprep.subr.mxu1 %v2309_v2  ;;  %2855 = vmatprep.subr.mxu0 %v2311_v3  ;;  %v2331_v2 = vld [vmem:[%s8689_s10 + $0x3f8] sm:$0xff]  ;;  %v2328_v3 = vld [vmem:[%s8689_s10 + $0x3e0] sm:$0xff] }
 0x358   : > { %2779 = vmatpush1.msra.mxu1 %v2308_v4  ;;  %2856 = vmatpush1.msra.mxu0 %v2310_v5  ;;  %v2330_v4 = vld [vmem:[%s8689_s10 + $0x3f0] sm:$0xff]  ;;  %v2321_v5 = vld [vmem:[%s8689_s10 + $0x3a8] sm:$0xff] }
 0x359   : > { %2780 = vmatprep.subr.mxu1 %v2301_v6  ;;  %2857 = vmatprep.subr.mxu0 %v2303_v8  ;;  %v2323_v6 = vld [vmem:[%s8689_s10 + $0x3b8] sm:$0xff]  ;;  %v2320_v8 = vld [vmem:[%s8689_s10 + $0x3a0] sm:$0xff] }
 0x35a   : > { %2781 = vmatpush1.msra.mxu1 %v2300_v9  ;;  %2858 = vmatpush1.msra.mxu0 %v2302_v10  ;;  %v2322_v9 = vld [vmem:[%s8689_s10 + $0x3b0] sm:$0xff]  ;;  %v7066_v10 = vmax.f32 %v6630_v49, 0.0 }
 0x35b   : > { %2782 = vmatprep.subr.mxu1 %v2293_v61  ;;  %2859 = vmatprep.subr.mxu0 %v2295_v11  ;;  %v2313_v61 = vld [vmem:[%s8689_s10 + $0x368] sm:$0xff]  ;;  %v2315_v11 = vld [vmem:[%s8689_s10 + $0x378] sm:$0xff] }
 0x35c   : > { %2783 = vmatpush1.msra.mxu1 %v2292_v13  ;;  %2860 = vmatpush1.msra.mxu0 %v2294_v14  ;;  %v2312_v13 = vld [vmem:[%s8689_s10 + $0x360] sm:$0xff]  ;;  %v2314_v14 = vld [vmem:[%s8689_s10 + $0x370] sm:$0xff] }
 0x35d   : > { %2784 = vmatprep.subr.mxu1 %v2285_v12  ;;  %2861 = vmatprep.subr.mxu0 %v2287_v15  ;;  %v2305_v12 = vld [vmem:[%s8689_s10 + $0x328] sm:$0xff]  ;;  %v2307_v15 = vld [vmem:[%s8689_s10 + $0x338] sm:$0xff] }
 0x35e   : > { %2785 = vmatpush1.msra.mxu1 %v2284_v16  ;;  %2862 = vmatpush1.msra.mxu0 %v2286_v18  ;;  %v2304_v16 = vld [vmem:[%s8689_s10 + $0x320] sm:$0xff]  ;;  %v2306_v18 = vld [vmem:[%s8689_s10 + $0x330] sm:$0xff] }
 0x35f   : > { %2786 = vmatprep.subr.mxu1 %v2277_v19  ;;  %2863 = vmatprep.subr.mxu0 %v2279_v28  ;;  %v2297_v19 = vld [vmem:[%s8689_s10 + $0x2e8] sm:$0xff]  ;;  %v2299_v28 = vld [vmem:[%s8689_s10 + $0x2f8] sm:$0xff] }
 0x360   : > { %2787 = vmatpush1.msra.mxu1 %v2276_v20  ;;  %2864 = vmatpush1.msra.mxu0 %v2278_v21  ;;  %v2296_v20 = vld [vmem:[%s8689_s10 + $0x2e0] sm:$0xff]  ;;  %v2298_v21 = vld [vmem:[%s8689_s10 + $0x2f0] sm:$0xff] }
 0x361   : > { %2788 = vmatprep.subr.mxu1 %v2269_v22  ;;  %2865 = vmatprep.subr.mxu0 %v2271_v23  ;;  %v2289_v22 = vld [vmem:[%s8689_s10 + $0x2a8] sm:$0xff]  ;;  %v2291_v23 = vld [vmem:[%s8689_s10 + $0x2b8] sm:$0xff] }
 0x362   : > { %2789 = vmatpush1.msra.mxu1 %v2268_v26  ;;  %2866 = vmatpush1.msra.mxu0 %v2270_v24  ;;  %v2288_v26 = vld [vmem:[%s8689_s10 + $0x2a0] sm:$0xff]  ;;  %v2290_v24 = vld [vmem:[%s8689_s10 + $0x2b0] sm:$0xff] }
 0x363   : > { %2790 = vmatprep.subr.mxu1 %v2261_v25  ;;  %2867 = vmatprep.subr.mxu0 %v2263_v27  ;;  %v2281_v25 = vld [vmem:[%s8689_s10 + $0x268] sm:$0xff]  ;;  %v2283_v27 = vld [vmem:[%s8689_s10 + $0x278] sm:$0xff] }
 0x364   : > { %2791 = vmatpush1.msra.mxu1 %v2260_v29  ;;  %2868 = vmatpush1.msra.mxu0 %v2262_v30  ;;  %v2280_v29 = vld [vmem:[%s8689_s10 + $0x260] sm:$0xff]  ;;  %v2282_v30 = vld [vmem:[%s8689_s10 + $0x270] sm:$0xff] }
 0x365   : > { %2792 = vmatprep.subr.mxu1 %v2253_v33  ;;  %2869 = vmatprep.subr.mxu0 %v2255_v34  ;;  %v2273_v33 = vld [vmem:[%s8689_s10 + $0x228] sm:$0xff]  ;;  %v2275_v34 = vld [vmem:[%s8689_s10 + $0x238] sm:$0xff] }
 0x366   : > { %2793 = vmatpush1.msra.mxu1 %v2252_v17  ;;  %2870 = vmatpush1.msra.mxu0 %v2254_v35  ;;  %v2272_v17 = vld [vmem:[%s8689_s10 + $0x220] sm:$0xff]  ;;  %v2274_v35 = vld [vmem:[%s8689_s10 + $0x230] sm:$0xff] }
 0x367   : > { %2794 = vmatprep.subr.mxu1 %v2245_v36  ;;  %2871 = vmatprep.subr.mxu0 %v2247_v37  ;;  %v2265_v36 = vld [vmem:[%s8689_s10 + $0x1e8] sm:$0xff]  ;;  %v2267_v37 = vld [vmem:[%s8689_s10 + $0x1f8] sm:$0xff] }
 0x368   : > { %2795 = vmatpush1.msra.mxu1 %v2244_v38  ;;  %2872 = vmatpush1.msra.mxu0 %v2246_v39  ;;  %v2264_v38 = vld [vmem:[%s8689_s10 + $0x1e0] sm:$0xff]  ;;  %v2266_v39 = vld [vmem:[%s8689_s10 + $0x1f0] sm:$0xff] }
 0x369   : > { %2796 = vmatprep.subr.mxu1 %v2237_v40  ;;  %2873 = vmatprep.subr.mxu0 %v2239_v41  ;;  %v2257_v40 = vld [vmem:[%s8689_s10 + $0x1a8] sm:$0xff]  ;;  %v2259_v41 = vld [vmem:[%s8689_s10 + $0x1b8] sm:$0xff] }
 0x36a   : > { %2797 = vmatpush1.msra.mxu1 %v2236_v42  ;;  %2874 = vmatpush1.msra.mxu0 %v2238_v43  ;;  %v2256_v42 = vld [vmem:[%s8689_s10 + $0x1a0] sm:$0xff]  ;;  %v2258_v43 = vld [vmem:[%s8689_s10 + $0x1b0] sm:$0xff] }
 0x36b   : > { %2798 = vmatprep.subr.mxu1 %v2229_v46  ;;  %2875 = vmatprep.subr.mxu0 %v2231_v47  ;;  %v2249_v46 = vld [vmem:[%s8689_s10 + $0x168] sm:$0xff]  ;;  %v2251_v47 = vld [vmem:[%s8689_s10 + $0x178] sm:$0xff] }
 0x36c   : > { %2799 = vmatpush1.msra.mxu1 %v2228_v48  ;;  %2876 = vmatpush1.msra.mxu0 %v2230_v50  ;;  %v2248_v48 = vld [vmem:[%s8689_s10 + $0x160] sm:$0xff]  ;;  %v2250_v50 = vld [vmem:[%s8689_s10 + $0x170] sm:$0xff] }
 0x36d   : > { %2800 = vmatprep.subr.mxu1 %v2221_v52  ;;  %2877 = vmatprep.subr.mxu0 %v2223_v54  ;;  %v2241_v52 = vld [vmem:[%s8689_s10 + $0x128] sm:$0xff]  ;;  %v2243_v54 = vld [vmem:[%s8689_s10 + $0x138] sm:$0xff] }
 0x36e   : > { %2801 = vmatpush1.msra.mxu1 %v2220_v55  ;;  %2878 = vmatpush1.msra.mxu0 %v2222_v57  ;;  %v2240_v55 = vld [vmem:[%s8689_s10 + $0x120] sm:$0xff]  ;;  %v2242_v57 = vld [vmem:[%s8689_s10 + $0x130] sm:$0xff] }
 0x36f   : > { %2802 = vmatprep.subr.mxu1 %v2213_v58  ;;  %2879 = vmatprep.subr.mxu0 %v2215_v59  ;;  %v2233_v58 = vld [vmem:[%s8689_s10 + $0xe8] sm:$0xff]  ;;  %v2235_v59 = vld [vmem:[%s8689_s10 + $0xf8] sm:$0xff] }
 0x370   : > { %2803 = vmatpush1.msra.mxu1 %v2212_v31  ;;  %2880 = vmatpush1.msra.mxu0 %v2214_v60  ;;  %v2232_v31 = vld [vmem:[%s8689_s10 + $0xe0] sm:$0xff]  ;;  %v2234_v60 = vld [vmem:[%s8689_s10 + $0xf0] sm:$0xff] }
 0x371   : > { %2804 = vmatprep.subr.mxu1 %v2205_v62  ;;  %2881 = vmatprep.subr.mxu0 %v2207_v63  ;;  %v2225_v62 = vld [vmem:[%s8689_s10 + $0xa8] sm:$0xff]  ;;  %v2227_v63 = vld [vmem:[%s8689_s10 + $0xb8] sm:$0xff] }
 0x372   : > { %2805 = vmatpush1.msra.mxu1 %v2204_v32  ;;  %2838 = vmatprep.mubr.f32.mxu1 %v5123_v7  ;;  %v2224_v32 = vld [vmem:[%s8689_s10 + $0xa0] sm:$0xff] }
 0x373   : > { %2882 = vmatpush1.msra.mxu0 %v2206_v0  ;;  %2915 = vmatprep.mubr.f32.mxu0 %v5123_v7  ;;  %v2226_v0 = vld [vmem:[%s8689_s10 + $0xb0] sm:$0xff] }
 0x374   : > { %2839 = vmatmul.mubr.f32.vlgmr.msra.gmra.mxu1 %v7034_v1  ;;  %2916 = vmatmul.mubr.f32.vlgmr.msra.gmra.mxu0 %v7034_v1 }
 0x375   : > { %2928 = vmatprep.subr.mxu1 %v2329_v53  ;;  %3005 = vmatprep.subr.mxu0 %v2331_v2  ;;  %v2217_v53 = vld [vmem:[%s8689_s10 + $0x68] sm:$0xff]  ;;  %v2219_v2 = vld [vmem:[%s8689_s10 + $0x78] sm:$0xff] }
 0x376   : > { %2929 = vmatpush1.msra.mxu1 %v2328_v3  ;;  %3006 = vmatpush1.msra.mxu0 %v2330_v4  ;;  %v2216_v3 = vld [vmem:[%s8689_s10 + $0x60] sm:$0xff]  ;;  %v2218_v4 = vld [vmem:[%s8689_s10 + $0x70] sm:$0xff] }
 0x377   : > { %2930 = vmatprep.subr.mxu1 %v2321_v5  ;;  %3007 = vmatprep.subr.mxu0 %v2323_v6  ;;  %v2209_v5 = vld [vmem:[%s8689_s10 + $0x28] sm:$0xff]  ;;  %v2211_v6 = vld [vmem:[%s8689_s10 + $0x38] sm:$0xff] }
 0x378   : > { %2844 = vmatprep.mubr.f32.mxu1 %v5123_v7  ;;  %2921 = vmatprep.mubr.f32.mxu0 %v5123_v7 }
 0x379   : > { %2931 = vmatpush1.msra.mxu1 %v2320_v8  ;;  %3008 = vmatpush1.msra.mxu0 %v2322_v9  ;;  %v2208_v8 = vld [vmem:[%s8689_s10 + $0x20] sm:$0xff]  ;;  %v2210_v9 = vld [vmem:[%s8689_s10 + $0x30] sm:$0xff] }
 0x37a   : > { %2845 = vmatmul.mubr.f32.gmra.mxu1 %v7066_v10  ;;  %2922 = vmatmul.mubr.f32.gmra.mxu0 %v7066_v10 }
 0x37b   : > { %2932 = vmatprep.subr.mxu1 %v2313_v61  ;;  %3009 = vmatprep.subr.mxu0 %v2315_v11  ;;  %v3215_v61 = vld [vmem:[%s8689_s10 + $0xbc8] sm:$0xff]  ;;  %v3217_v11 = vld [vmem:[%s8689_s10 + $0xbd8] sm:$0xff] }
 0x37c   : > { %2933 = vmatpush1.msra.mxu1 %v2312_v13  ;;  %3010 = vmatpush1.msra.mxu0 %v2314_v14  ;;  %v3214_v13 = vld [vmem:[%s8689_s10 + $0xbc0] sm:$0xff]  ;;  %v3216_v14 = vld [vmem:[%s8689_s10 + $0xbd0] sm:$0xff] }
 0x37d   : > { %2934 = vmatprep.subr.mxu1 %v2305_v12  ;;  %3011 = vmatprep.subr.mxu0 %v2307_v15  ;;  %v3207_v12 = vld [vmem:[%s8689_s10 + $0xb88] sm:$0xff]  ;;  %v3209_v15 = vld [vmem:[%s8689_s10 + $0xb98] sm:$0xff] }
 0x37e   : > { %2935 = vmatpush1.msra.mxu1 %v2304_v16  ;;  %3012 = vmatpush1.msra.mxu0 %v2306_v18  ;;  %v3206_v16 = vld [vmem:[%s8689_s10 + $0xb80] sm:$0xff]  ;;  %v3199_v18 = vld [vmem:[%s8689_s10 + $0xb48] sm:$0xff] }
 0x37f   : > { %2936 = vmatprep.subr.mxu1 %v2297_v19  ;;  %3013 = vmatprep.subr.mxu0 %v2299_v28  ;;  %v3201_v19 = vld [vmem:[%s8689_s10 + $0xb58] sm:$0xff]  ;;  %v3198_v28 = vld [vmem:[%s8689_s10 + $0xb40] sm:$0xff] }
 0x380   : > { %2937 = vmatpush1.msra.mxu1 %v2296_v20  ;;  %3014 = vmatpush1.msra.mxu0 %v2298_v21  ;;  %v3200_v20 = vld [vmem:[%s8689_s10 + $0xb50] sm:$0xff]  ;;  %v3191_v21 = vld [vmem:[%s8689_s10 + $0xb08] sm:$0xff] }
 0x381   : > { %2938 = vmatprep.subr.mxu1 %v2289_v22  ;;  %3015 = vmatprep.subr.mxu0 %v2291_v23  ;;  %v3193_v22 = vld [vmem:[%s8689_s10 + $0xb18] sm:$0xff]  ;;  %v3190_v23 = vld [vmem:[%s8689_s10 + $0xb00] sm:$0xff] }
 0x382   : > { %2939 = vmatpush1.msra.mxu1 %v2288_v26  ;;  %3016 = vmatpush1.msra.mxu0 %v2290_v24  ;;  %v3192_v26 = vld [vmem:[%s8689_s10 + $0xb10] sm:$0xff]  ;;  %v3183_v24 = vld [vmem:[%s8689_s10 + $0xac8] sm:$0xff] }
 0x383   : > { %2940 = vmatprep.subr.mxu1 %v2281_v25  ;;  %3017 = vmatprep.subr.mxu0 %v2283_v27  ;;  %v3185_v25 = vld [vmem:[%s8689_s10 + $0xad8] sm:$0xff]  ;;  %v3182_v27 = vld [vmem:[%s8689_s10 + $0xac0] sm:$0xff] }
 0x384   : > { %2941 = vmatpush1.msra.mxu1 %v2280_v29  ;;  %3018 = vmatpush1.msra.mxu0 %v2282_v30  ;;  %v3184_v29 = vld [vmem:[%s8689_s10 + $0xad0] sm:$0xff]  ;;  %v3175_v30 = vld [vmem:[%s8689_s10 + $0xa88] sm:$0xff] }
 0x385   : > { %2942 = vmatprep.subr.mxu1 %v2273_v33  ;;  %3019 = vmatprep.subr.mxu0 %v2275_v34  ;;  %v3177_v33 = vld [vmem:[%s8689_s10 + $0xa98] sm:$0xff]  ;;  %v3174_v34 = vld [vmem:[%s8689_s10 + $0xa80] sm:$0xff] }
 0x386   : > { %2943 = vmatpush1.msra.mxu1 %v2272_v17  ;;  %3020 = vmatpush1.msra.mxu0 %v2274_v35  ;;  %v3176_v17 = vld [vmem:[%s8689_s10 + $0xa90] sm:$0xff] }
 0x387   : > { %2944 = vmatprep.subr.mxu1 %v2265_v36  ;;  %3021 = vmatprep.subr.mxu0 %v2267_v37  ;;  %v3167_v36 = vld [vmem:[%s8689_s10 + $0xa48] sm:$0xff]  ;;  %v3169_v37 = vld [vmem:[%s8689_s10 + $0xa58] sm:$0xff] }
 0x388   : > { %2945 = vmatpush1.msra.mxu1 %v2264_v38  ;;  %3022 = vmatpush1.msra.mxu0 %v2266_v39  ;;  %v3166_v38 = vld [vmem:[%s8689_s10 + $0xa40] sm:$0xff]  ;;  %v3168_v39 = vld [vmem:[%s8689_s10 + $0xa50] sm:$0xff] }
 0x389   : > { %2946 = vmatprep.subr.mxu1 %v2257_v40  ;;  %3023 = vmatprep.subr.mxu0 %v2259_v41  ;;  %v3085_v40 = vmin.f32 %v6630_v49, 0.0  ;;  %v3159_v41 = vld [vmem:[%s8689_s10 + $0xa08] sm:$0xff] }
 0x38a   : > { %2947 = vmatpush1.msra.mxu1 %v2256_v42  ;;  %3024 = vmatpush1.msra.mxu0 %v2258_v43  ;;  %v3161_v42 = vld [vmem:[%s8689_s10 + $0xa18] sm:$0xff]  ;;  %v3158_v43 = vld [vmem:[%s8689_s10 + $0xa00] sm:$0xff] }
 0x38b   : > { %2948 = vmatprep.subr.mxu1 %v2249_v46  ;;  %3025 = vmatprep.subr.mxu0 %v2251_v47  ;;  %v3160_v46 = vld [vmem:[%s8689_s10 + $0xa10] sm:$0xff]  ;;  %v3151_v47 = vld [vmem:[%s8689_s10 + $0x9c8] sm:$0xff] }
 0x38c   : > { %2949 = vmatpush1.msra.mxu1 %v2248_v48  ;;  %3026 = vmatpush1.msra.mxu0 %v2250_v50  ;;  %v3153_v48 = vld [vmem:[%s8689_s10 + $0x9d8] sm:$0xff]  ;;  %v3150_v50 = vld [vmem:[%s8689_s10 + $0x9c0] sm:$0xff] }
 0x38d   : > { %2950 = vmatprep.subr.mxu1 %v2241_v52  ;;  %3027 = vmatprep.subr.mxu0 %v2243_v54  ;;  %v3152_v52 = vld [vmem:[%s8689_s10 + $0x9d0] sm:$0xff]  ;;  %v3088_v54 = vmul.f32 1.442695, %v3085_v40  ;;  %v3194_v40 = vld [vmem:[%s8689_s10 + $0xb20] sm:$0xff] }
 0x38e   : > { %2951 = vmatpush1.msra.mxu1 %v2240_v55  ;;  %3028 = vmatpush1.msra.mxu0 %v2242_v57  ;;  %v3143_v55 = vld [vmem:[%s8689_s10 + $0x988] sm:$0xff]  ;;  %v3145_v57 = vld [vmem:[%s8689_s10 + $0x998] sm:$0xff] }
 0x38f   : > { %2952 = vmatprep.subr.mxu1 %v2233_v58  ;;  %3029 = vmatprep.subr.mxu0 %v2235_v59  ;;  %v3142_v58 = vld [vmem:[%s8689_s10 + $0x980] sm:$0xff]  ;;  %v3144_v59 = vld [vmem:[%s8689_s10 + $0x990] sm:$0xff] }
 0x390   : > { %2953 = vmatpush1.msra.mxu1 %v2232_v31  ;;  %3030 = vmatpush1.msra.mxu0 %v2234_v60  ;;  %v3135_v31 = vld [vmem:[%s8689_s10 + $0x948] sm:$0xff]  ;;  %v3137_v60 = vld [vmem:[%s8689_s10 + $0x958] sm:$0xff] }
 0x391   : > { %2954 = vmatprep.subr.mxu1 %v2225_v62  ;;  %3031 = vmatprep.subr.mxu0 %v2227_v63  ;;  %v3134_v62 = vld [vmem:[%s8689_s10 + $0x940] sm:$0xff]  ;;  %v3136_v63 = vld [vmem:[%s8689_s10 + $0x950] sm:$0xff] }
 0x392   : > { %2955 = vmatpush1.msra.mxu1 %v2224_v32  ;;  %3032 = vmatpush1.msra.mxu0 %v2226_v0  ;;  %v3127_v32 = vld [vmem:[%s8689_s10 + $0x908] sm:$0xff]  ;;  %v3129_v0 = vld [vmem:[%s8689_s10 + $0x918] sm:$0xff] }
 0x393   : > { %2956 = vmatprep.subr.mxu1 %v2217_v53  ;;  %3033 = vmatprep.subr.mxu0 %v2219_v2  ;;  %v3126_v53 = vld [vmem:[%s8689_s10 + $0x900] sm:$0xff]  ;;  %v3128_v2 = vld [vmem:[%s8689_s10 + $0x910] sm:$0xff] }
 0x394   : > { %2957 = vmatpush1.msra.mxu1 %v2216_v3  ;;  %3034 = vmatpush1.msra.mxu0 %v2218_v4  ;;  %v3119_v3 = vld [vmem:[%s8689_s10 + $0x8c8] sm:$0xff]  ;;  %v3121_v4 = vld [vmem:[%s8689_s10 + $0x8d8] sm:$0xff] }
 0x395   : > { %2958 = vmatprep.subr.mxu1 %v2209_v5  ;;  %3035 = vmatprep.subr.mxu0 %v2211_v6  ;;  %v3118_v5 = vld [vmem:[%s8689_s10 + $0x8c0] sm:$0xff]  ;;  %v3120_v6 = vld [vmem:[%s8689_s10 + $0x8d0] sm:$0xff] }
 0x396   : > { %2959 = vmatpush1.msra.mxu1 %v2208_v8  ;;  %2992 = vmatprep.mubr.f32.mxu1 %v5123_v7  ;;  %v3111_v8 = vld [vmem:[%s8689_s10 + $0x888] sm:$0xff] }
 0x397   : > { %3036 = vmatpush1.msra.mxu0 %v2210_v9  ;;  %3069 = vmatprep.mubr.f32.mxu0 %v5123_v7  ;;  %v3113_v9 = vld [vmem:[%s8689_s10 + $0x898] sm:$0xff] }
 0x398   : > { %2993 = vmatmul.mubr.f32.vlgmr.msra.gmra.mxu1 %v7034_v1  ;;  %3070 = vmatmul.mubr.f32.vlgmr.msra.gmra.mxu0 %v7034_v1  ;;  %v3208_v1 = vld [vmem:[%s8689_s10 + $0xb90] sm:$0xff] }
 0x399   : > { %3222 = vmatprep.subr.mxu1 %v3215_v61  ;;  %3299 = vmatprep.subr.mxu0 %v3217_v11  ;;  %v3110_v61 = vld [vmem:[%s8689_s10 + $0x880] sm:$0xff]  ;;  %v3112_v11 = vld [vmem:[%s8689_s10 + $0x890] sm:$0xff] }
 0x39a   : > { %3223 = vmatpush1.msra.mxu1 %v3214_v13  ;;  %3300 = vmatpush1.msra.mxu0 %v3216_v14  ;;  %v3103_v14 = vld [vmem:[%s8689_s10 + $0x848] sm:$0xff] }
 0x39b   : > { %3224 = vmatprep.subr.mxu1 %v3207_v12  ;;  %3301 = vmatprep.subr.mxu0 %v3209_v15  ;;  %v3105_v12 = vld [vmem:[%s8689_s10 + $0x858] sm:$0xff]  ;;  %v3102_v15 = vld [vmem:[%s8689_s10 + $0x840] sm:$0xff] }
 0x39c   : > { %2998 = vmatprep.mubr.f32.mxu1 %v5123_v7  ;;  %3075 = vmatprep.mubr.f32.mxu0 %v5123_v7 }
 0x39d   : > { %3225 = vmatpush1.msra.mxu1 %v3206_v16  ;;  %3302 = vmatpush1.msra.mxu0 %v3208_v1  ;;  %v3104_v16 = vld [vmem:[%s8689_s10 + $0x850] sm:$0xff]  ;;  %v3095_v1 = vld [vmem:[%s8689_s10 + $0x808] sm:$0xff] }
 0x39e   : > { %2999 = vmatmul.mubr.f32.gmra.mxu1 %v7066_v10  ;;  %3076 = vmatmul.mubr.f32.gmra.mxu0 %v7066_v10  ;;  %v3084_v10 = vmin.f32 %v6626_v44, 0.0 }
 0x39f   : > { %3226 = vmatprep.subr.mxu1 %v3199_v18  ;;  %3303 = vmatprep.subr.mxu0 %v3201_v19  ;;  %v3097_v18 = vld [vmem:[%s8689_s10 + $0x818] sm:$0xff]  ;;  %v3094_v19 = vld [vmem:[%s8689_s10 + $0x800] sm:$0xff] }
 0x3a0   : > { %3227 = vmatpush1.msra.mxu1 %v3198_v28  ;;  %3304 = vmatpush1.msra.mxu0 %v3200_v20  ;;  %v3086_v35 = vmul.f32 1.442695, %v3084_v10  ;;  %v3096_v20 = vld [vmem:[%s8689_s10 + $0x810] sm:$0xff]  ;;  %v3218_v10 = vld [vmem:[%s8689_s10 + $0xbe0] sm:$0xff] }
 0x3a1   : > { %3228 = vmatprep.subr.mxu1 %v3191_v21  ;;  %3305 = vmatprep.subr.mxu0 %v3193_v22  ;;  %v3219_v22 = vld [vmem:[%s8689_s10 + $0xbe8] sm:$0xff] }
 0x3a2   : > { %3229 = vmatpush1.msra.mxu1 %v3190_v23  ;;  %3306 = vmatpush1.msra.mxu0 %v3192_v26  ;;  %5099 = vpow2.f32 %v3086_v35  ;;  %v3221_v23 = vld [vmem:[%s8689_s10 + $0xbf8] sm:$0xff] }
 0x3a3   : > { %3230 = vmatprep.subr.mxu1 %v3183_v24  ;;  %3307 = vmatprep.subr.mxu0 %v3185_v25  ;;  %5101 = vpow2.f32 %v3088_v54  ;;  %v3220_v24 = vld [vmem:[%s8689_s10 + $0xbf0] sm:$0xff]  ;;  %v3211_v25 = vld [vmem:[%s8689_s10 + $0xba8] sm:$0xff] }
 0x3a4   : > { %3231 = vmatpush1.msra.mxu1 %v3182_v27  ;;  %3308 = vmatpush1.msra.mxu0 %v3184_v29  ;;  %v3213_v27 = vld [vmem:[%s8689_s10 + $0xbb8] sm:$0xff]  ;;  %v3180_v54 = vld [vmem:[%s8689_s10 + $0xab0] sm:$0xff]  ;;  %5103 = vtanh.f32 %v6626_v44 }
 0x3a5   : > { %3232 = vmatprep.subr.mxu1 %v3175_v30  ;;  %3309 = vmatprep.subr.mxu0 %v3177_v33  ;;  %v3210_v30 = vld [vmem:[%s8689_s10 + $0xba0] sm:$0xff]  ;;  %v3212_v33 = vld [vmem:[%s8689_s10 + $0xbb0] sm:$0xff]  ;;  %5105 = vtanh.f32 %v6630_v49 }
 0x3a6   : > { %3233 = vmatpush1.msra.mxu1 %v3174_v34  ;;  %3310 = vmatpush1.msra.mxu0 %v3176_v17  ;;  %v3203_v34 = vld [vmem:[%s8689_s10 + $0xb68] sm:$0xff]  ;;  %v3205_v17 = vld [vmem:[%s8689_s10 + $0xb78] sm:$0xff] }
 0x3a7   : > { %3234 = vmatprep.subr.mxu1 %v3167_v36  ;;  %3311 = vmatprep.subr.mxu0 %v3169_v37  ;;  %v3202_v36 = vld [vmem:[%s8689_s10 + $0xb60] sm:$0xff]  ;;  %v3204_v37 = vld [vmem:[%s8689_s10 + $0xb70] sm:$0xff] }
 0x3a8   : > { %3235 = vmatpush1.msra.mxu1 %v3166_v38  ;;  %3312 = vmatpush1.msra.mxu0 %v3168_v39  ;;  %v3195_v38 = vld [vmem:[%s8689_s10 + $0xb28] sm:$0xff]  ;;  %v3197_v39 = vld [vmem:[%s8689_s10 + $0xb38] sm:$0xff] }
 0x3a9   : > { %3236 = vmatprep.subr.mxu1 %v3159_v41  ;;  %3313 = vmatprep.subr.mxu0 %v3161_v42  ;;  %v3196_v41 = vld [vmem:[%s8689_s10 + $0xb30] sm:$0xff]  ;;  %v3187_v42 = vld [vmem:[%s8689_s10 + $0xae8] sm:$0xff] }
 0x3aa   : > { %3237 = vmatpush1.msra.mxu1 %v3158_v43  ;;  %3314 = vmatpush1.msra.mxu0 %v3160_v46  ;;  %v3189_v43 = vld [vmem:[%s8689_s10 + $0xaf8] sm:$0xff]  ;;  %v3186_v46 = vld [vmem:[%s8689_s10 + $0xae0] sm:$0xff] }
 0x3ab   : > { %3238 = vmatprep.subr.mxu1 %v3151_v47  ;;  %3315 = vmatprep.subr.mxu0 %v3153_v48  ;;  %v3188_v47 = vld [vmem:[%s8689_s10 + $0xaf0] sm:$0xff]  ;;  %v3179_v48 = vld [vmem:[%s8689_s10 + $0xaa8] sm:$0xff] }
 0x3ac   : > { %3239 = vmatpush1.msra.mxu1 %v3150_v50  ;;  %3316 = vmatpush1.msra.mxu0 %v3152_v52  ;;  %v3181_v50 = vld [vmem:[%s8689_s10 + $0xab8] sm:$0xff]  ;;  %v3178_v52 = vld [vmem:[%s8689_s10 + $0xaa0] sm:$0xff] }
 0x3ad   : > { %3240 = vmatprep.subr.mxu1 %v3143_v55  ;;  %3317 = vmatprep.subr.mxu0 %v3145_v57  ;;  %v3171_v55 = vld [vmem:[%s8689_s10 + $0xa68] sm:$0xff]  ;;  %v3173_v57 = vld [vmem:[%s8689_s10 + $0xa78] sm:$0xff] }
 0x3ae   : > { %3241 = vmatpush1.msra.mxu1 %v3142_v58  ;;  %3318 = vmatpush1.msra.mxu0 %v3144_v59  ;;  %v3170_v58 = vld [vmem:[%s8689_s10 + $0xa60] sm:$0xff]  ;;  %v3172_v59 = vld [vmem:[%s8689_s10 + $0xa70] sm:$0xff] }
 0x3af   : > { %3242 = vmatprep.subr.mxu1 %v3135_v31  ;;  %3319 = vmatprep.subr.mxu0 %v3137_v60  ;;  %v5100_v13 = vpop.eup %5099  ;;  %v3163_v31 = vld [vmem:[%s8689_s10 + $0xa28] sm:$0xff]  ;;  %v3165_v60 = vld [vmem:[%s8689_s10 + $0xa38] sm:$0xff] }
 0x3b0   : > { %3243 = vmatpush1.msra.mxu1 %v3134_v62  ;;  %3320 = vmatpush1.msra.mxu0 %v3136_v63  ;;  %v4686_v28 = vadd.f32 -1.0, %v5100_v13  ;;  %v5102_v21 = vpop.eup %5101  ;;  %v3162_v62 = vld [vmem:[%s8689_s10 + $0xa20] sm:$0xff]  ;;  %v3164_v63 = vld [vmem:[%s8689_s10 + $0xa30] sm:$0xff]  ;;  %v3131_v13 = vld [vmem:[%s8689_s10 + $0x928] sm:$0xff] }
 0x3b1   : > { %3244 = vmatprep.subr.mxu1 %v3127_v32  ;;  %3321 = vmatprep.subr.mxu0 %v3129_v0  ;;  %v4687_v29 = vadd.f32 -1.0, %v5102_v21  ;;  %v3155_v32 = vld [vmem:[%s8689_s10 + $0x9e8] sm:$0xff]  ;;  %v3157_v0 = vld [vmem:[%s8689_s10 + $0x9f8] sm:$0xff]  ;;  %v3114_v21 = vld [vmem:[%s8689_s10 + $0x8a0] sm:$0xff] }
 0x3b2   : > { %3245 = vmatpush1.msra.mxu1 %v3126_v53  ;;  %3322 = vmatpush1.msra.mxu0 %v3128_v2  ;;  %v7450_v26 = vsel %vm3082_vm3, %v6626_v44, %v4686_v28  ;;  %v3154_v53 = vld [vmem:[%s8689_s10 + $0x9e0] sm:$0xff]  ;;  %v3156_v2 = vld [vmem:[%s8689_s10 + $0x9f0] sm:$0xff]  ;;  %v3115_v28 = vld [vmem:[%s8689_s10 + $0x8a8] sm:$0xff] }
 0x3b3   : > { %3246 = vmatprep.subr.mxu1 %v3119_v3  ;;  %3323 = vmatprep.subr.mxu0 %v3121_v4  ;;  %v7482_v35 = vsel %vm3083_vm4, %v6630_v49, %v4687_v29  ;;  %v3147_v3 = vld [vmem:[%s8689_s10 + $0x9a8] sm:$0xff]  ;;  %v3149_v4 = vld [vmem:[%s8689_s10 + $0x9b8] sm:$0xff] }
 0x3b4   : > { %3247 = vmatpush1.msra.mxu1 %v3118_v5  ;;  %3324 = vmatpush1.msra.mxu0 %v3120_v6  ;;  %v3146_v5 = vld [vmem:[%s8689_s10 + $0x9a0] sm:$0xff]  ;;  %v3148_v6 = vld [vmem:[%s8689_s10 + $0x9b0] sm:$0xff]  ;;  %v3101_v29 = vld [vmem:[%s8689_s10 + $0x838] sm:$0xff] }
 0x3b5   : > { %3248 = vmatprep.subr.mxu1 %v3111_v8  ;;  %3325 = vmatprep.subr.mxu0 %v3113_v9  ;;  %v3139_v8 = vld [vmem:[%s8689_s10 + $0x968] sm:$0xff]  ;;  %v3141_v9 = vld [vmem:[%s8689_s10 + $0x978] sm:$0xff] }
 0x3b6   : > { %3249 = vmatpush1.msra.mxu1 %v3110_v61  ;;  %3326 = vmatpush1.msra.mxu0 %v3112_v11  ;;  %v3138_v61 = vld [vmem:[%s8689_s10 + $0x960] sm:$0xff]  ;;  %v3140_v11 = vld [vmem:[%s8689_s10 + $0x970] sm:$0xff] }
 0x3b7   : > { %3250 = vmatprep.subr.mxu1 %v3103_v14  ;;  %3327 = vmatprep.subr.mxu0 %v3105_v12  ;;  %v3133_v14 = vld [vmem:[%s8689_s10 + $0x938] sm:$0xff]  ;;  %v3130_v12 = vld [vmem:[%s8689_s10 + $0x920] sm:$0xff] }
 0x3b8   : > { %3251 = vmatpush1.msra.mxu1 %v3102_v15  ;;  %3328 = vmatpush1.msra.mxu0 %v3104_v16  ;;  %v3132_v15 = vld [vmem:[%s8689_s10 + $0x930] sm:$0xff]  ;;  %v3123_v16 = vld [vmem:[%s8689_s10 + $0x8e8] sm:$0xff] }
 0x3b9   : > { %3252 = vmatprep.subr.mxu1 %v3095_v1  ;;  %3329 = vmatprep.subr.mxu0 %v3097_v18  ;;  %v3125_v1 = vld [vmem:[%s8689_s10 + $0x8f8] sm:$0xff]  ;;  %v3122_v18 = vld [vmem:[%s8689_s10 + $0x8e0] sm:$0xff] }
 0x3ba   : > { %3253 = vmatpush1.msra.mxu1 %v3094_v19  ;;  %3286 = vmatprep.mubr.f32.mxu1 %v5123_v7  ;;  %v3124_v19 = vld [vmem:[%s8689_s10 + $0x8f0] sm:$0xff] }
 0x3bb   : > { %3330 = vmatpush1.msra.mxu0 %v3096_v20  ;;  %3363 = vmatprep.mubr.f32.mxu0 %v5123_v7  ;;  %v3117_v20 = vld [vmem:[%s8689_s10 + $0x8b8] sm:$0xff] }
 0x3bc   : > { %3287 = vmatmul.mubr.f32.vlgmr.msra.gmra.mxu1 %v7450_v26  ;;  %3364 = vmatmul.mubr.f32.vlgmr.msra.gmra.mxu0 %v7450_v26 }
 0x3bd   : > { %3376 = vmatprep.subr.mxu1 %v3219_v22  ;;  %3453 = vmatprep.subr.mxu0 %v3221_v23  ;;  %v3116_v22 = vld [vmem:[%s8689_s10 + $0x8b0] sm:$0xff]  ;;  %v3107_v23 = vld [vmem:[%s8689_s10 + $0x868] sm:$0xff] }
 0x3be   : > { %3377 = vmatpush1.msra.mxu1 %v3218_v10  ;;  %3454 = vmatpush1.msra.mxu0 %v3220_v24  ;;  %v3109_v10 = vld [vmem:[%s8689_s10 + $0x878] sm:$0xff]  ;;  %v3106_v24 = vld [vmem:[%s8689_s10 + $0x860] sm:$0xff] }
 0x3bf   : > { %3378 = vmatprep.subr.mxu1 %v3211_v25  ;;  %3455 = vmatprep.subr.mxu0 %v3213_v27  ;;  %v3108_v25 = vld [vmem:[%s8689_s10 + $0x870] sm:$0xff]  ;;  %v3099_v27 = vld [vmem:[%s8689_s10 + $0x828] sm:$0xff] }
 0x3c0   : > { %3292 = vmatprep.mubr.f32.mxu1 %v5123_v7  ;;  %3369 = vmatprep.mubr.f32.mxu0 %v5123_v7 }
 0x3c1   : > { %3379 = vmatpush1.msra.mxu1 %v3210_v30  ;;  %3456 = vmatpush1.msra.mxu0 %v3212_v33  ;;  %v3098_v30 = vld [vmem:[%s8689_s10 + $0x820] sm:$0xff]  ;;  %v3100_v33 = vld [vmem:[%s8689_s10 + $0x830] sm:$0xff] }
 0x3c2   : > { %3293 = vmatmul.mubr.f32.gmra.mxu1 %v7482_v35  ;;  %3370 = vmatmul.mubr.f32.gmra.mxu0 %v7482_v35 }
 0x3c3   : > { %3380 = vmatprep.subr.mxu1 %v3203_v34  ;;  %3457 = vmatprep.subr.mxu0 %v3205_v17  ;;  %v3669_v34 = vld [vmem:[%s8689_s10 + $0xfc8] sm:$0xff]  ;;  %v3671_v17 = vld [vmem:[%s8689_s10 + $0xfd8] sm:$0xff] }
 0x3c4   : > { %3381 = vmatpush1.msra.mxu1 %v3202_v36  ;;  %3458 = vmatpush1.msra.mxu0 %v3204_v37  ;;  %v3668_v36 = vld [vmem:[%s8689_s10 + $0xfc0] sm:$0xff]  ;;  %v3670_v37 = vld [vmem:[%s8689_s10 + $0xfd0] sm:$0xff] }
 0x3c5   : > { %3382 = vmatprep.subr.mxu1 %v3195_v38  ;;  %3459 = vmatprep.subr.mxu0 %v3197_v39  ;;  %v3661_v38 = vld [vmem:[%s8689_s10 + $0xf88] sm:$0xff]  ;;  %v3663_v39 = vld [vmem:[%s8689_s10 + $0xf98] sm:$0xff] }
 0x3c6   : > { %3383 = vmatpush1.msra.mxu1 %v3194_v40  ;;  %3460 = vmatpush1.msra.mxu0 %v3196_v41  ;;  %v3660_v40 = vld [vmem:[%s8689_s10 + $0xf80] sm:$0xff]  ;;  %v3653_v41 = vld [vmem:[%s8689_s10 + $0xf48] sm:$0xff] }
 0x3c7   : > { %3384 = vmatprep.subr.mxu1 %v3187_v42  ;;  %3461 = vmatprep.subr.mxu0 %v3189_v43  ;;  %v3655_v42 = vld [vmem:[%s8689_s10 + $0xf58] sm:$0xff]  ;;  %v3652_v43 = vld [vmem:[%s8689_s10 + $0xf40] sm:$0xff] }
 0x3c8   : > { %3385 = vmatpush1.msra.mxu1 %v3186_v46  ;;  %3462 = vmatpush1.msra.mxu0 %v3188_v47  ;;  %v3654_v46 = vld [vmem:[%s8689_s10 + $0xf50] sm:$0xff]  ;;  %v3645_v47 = vld [vmem:[%s8689_s10 + $0xf08] sm:$0xff] }
 0x3c9   : > { %3386 = vmatprep.subr.mxu1 %v3179_v48  ;;  %3463 = vmatprep.subr.mxu0 %v3181_v50  ;;  %v3647_v48 = vld [vmem:[%s8689_s10 + $0xf18] sm:$0xff]  ;;  %v3644_v50 = vld [vmem:[%s8689_s10 + $0xf00] sm:$0xff] }
 0x3ca   : > { %3387 = vmatpush1.msra.mxu1 %v3178_v52  ;;  %3464 = vmatpush1.msra.mxu0 %v3180_v54  ;;  %v3646_v52 = vld [vmem:[%s8689_s10 + $0xf10] sm:$0xff]  ;;  %v3639_v54 = vld [vmem:[%s8689_s10 + $0xed8] sm:$0xff] }
 0x3cb   : > { %3388 = vmatprep.subr.mxu1 %v3171_v55  ;;  %3465 = vmatprep.subr.mxu0 %v3173_v57  ;;  %v3636_v55 = vld [vmem:[%s8689_s10 + $0xec0] sm:$0xff]  ;;  %v3638_v57 = vld [vmem:[%s8689_s10 + $0xed0] sm:$0xff] }
 0x3cc   : > { %3389 = vmatpush1.msra.mxu1 %v3170_v58  ;;  %3466 = vmatpush1.msra.mxu0 %v3172_v59  ;;  %v3629_v58 = vld [vmem:[%s8689_s10 + $0xe88] sm:$0xff]  ;;  %v3631_v59 = vld [vmem:[%s8689_s10 + $0xe98] sm:$0xff] }
 0x3cd   : > { %3390 = vmatprep.subr.mxu1 %v3163_v31  ;;  %3467 = vmatprep.subr.mxu0 %v3165_v60  ;;  %v3628_v31 = vld [vmem:[%s8689_s10 + $0xe80] sm:$0xff]  ;;  %v3630_v60 = vld [vmem:[%s8689_s10 + $0xe90] sm:$0xff] }
 0x3ce   : > { %3391 = vmatpush1.msra.mxu1 %v3162_v62  ;;  %3468 = vmatpush1.msra.mxu0 %v3164_v63  ;;  %v3621_v62 = vld [vmem:[%s8689_s10 + $0xe48] sm:$0xff]  ;;  %v3623_v63 = vld [vmem:[%s8689_s10 + $0xe58] sm:$0xff] }
 0x3cf   : > { %3392 = vmatprep.subr.mxu1 %v3155_v32  ;;  %3469 = vmatprep.subr.mxu0 %v3157_v0  ;;  %v3620_v32 = vld [vmem:[%s8689_s10 + $0xe40] sm:$0xff]  ;;  %v3622_v0 = vld [vmem:[%s8689_s10 + $0xe50] sm:$0xff] }
 0x3d0   : > { %3393 = vmatpush1.msra.mxu1 %v3154_v53  ;;  %3470 = vmatpush1.msra.mxu0 %v3156_v2  ;;  %v3613_v53 = vld [vmem:[%s8689_s10 + $0xe08] sm:$0xff]  ;;  %v3615_v2 = vld [vmem:[%s8689_s10 + $0xe18] sm:$0xff] }
 0x3d1   : > { %3394 = vmatprep.subr.mxu1 %v3147_v3  ;;  %3471 = vmatprep.subr.mxu0 %v3149_v4  ;;  %v3612_v3 = vld [vmem:[%s8689_s10 + $0xe00] sm:$0xff]  ;;  %v3614_v4 = vld [vmem:[%s8689_s10 + $0xe10] sm:$0xff] }
 0x3d2   : > { %3395 = vmatpush1.msra.mxu1 %v3146_v5  ;;  %3472 = vmatpush1.msra.mxu0 %v3148_v6  ;;  %v3605_v5 = vld [vmem:[%s8689_s10 + $0xdc8] sm:$0xff]  ;;  %v3607_v6 = vld [vmem:[%s8689_s10 + $0xdd8] sm:$0xff] }
 0x3d3   : > { %3396 = vmatprep.subr.mxu1 %v3139_v8  ;;  %3473 = vmatprep.subr.mxu0 %v3141_v9  ;;  %v3604_v8 = vld [vmem:[%s8689_s10 + $0xdc0] sm:$0xff]  ;;  %v3606_v9 = vld [vmem:[%s8689_s10 + $0xdd0] sm:$0xff] }
 0x3d4   : > { %3397 = vmatpush1.msra.mxu1 %v3138_v61  ;;  %3474 = vmatpush1.msra.mxu0 %v3140_v11  ;;  %v3597_v61 = vld [vmem:[%s8689_s10 + $0xd88] sm:$0xff]  ;;  %v3599_v11 = vld [vmem:[%s8689_s10 + $0xd98] sm:$0xff] }
 0x3d5   : > { %3398 = vmatprep.subr.mxu1 %v3131_v13  ;;  %3475 = vmatprep.subr.mxu0 %v3133_v14  ;;  %v3596_v13 = vld [vmem:[%s8689_s10 + $0xd80] sm:$0xff]  ;;  %v3598_v14 = vld [vmem:[%s8689_s10 + $0xd90] sm:$0xff] }
 0x3d6   : > { %3399 = vmatpush1.msra.mxu1 %v3130_v12  ;;  %3476 = vmatpush1.msra.mxu0 %v3132_v15  ;;  %v3589_v12 = vld [vmem:[%s8689_s10 + $0xd48] sm:$0xff]  ;;  %v3591_v15 = vld [vmem:[%s8689_s10 + $0xd58] sm:$0xff] }
 0x3d7   : > { %3400 = vmatprep.subr.mxu1 %v3123_v16  ;;  %3477 = vmatprep.subr.mxu0 %v3125_v1  ;;  %v3588_v16 = vld [vmem:[%s8689_s10 + $0xd40] sm:$0xff]  ;;  %v3590_v1 = vld [vmem:[%s8689_s10 + $0xd50] sm:$0xff] }
 0x3d8   : > { %3401 = vmatpush1.msra.mxu1 %v3122_v18  ;;  %3478 = vmatpush1.msra.mxu0 %v3124_v19  ;;  %v3581_v18 = vld [vmem:[%s8689_s10 + $0xd08] sm:$0xff]  ;;  %v3583_v19 = vld [vmem:[%s8689_s10 + $0xd18] sm:$0xff] }
 0x3d9   : > { %3402 = vmatprep.subr.mxu1 %v3115_v28  ;;  %3479 = vmatprep.subr.mxu0 %v3117_v20  ;;  %v3580_v28 = vld [vmem:[%s8689_s10 + $0xd00] sm:$0xff]  ;;  %v3582_v20 = vld [vmem:[%s8689_s10 + $0xd10] sm:$0xff] }
 0x3da   : > { %3403 = vmatpush1.msra.mxu1 %v3114_v21  ;;  %3480 = vmatpush1.msra.mxu0 %v3116_v22  ;;  %v3573_v21 = vld [vmem:[%s8689_s10 + $0xcc8] sm:$0xff]  ;;  %v3575_v22 = vld [vmem:[%s8689_s10 + $0xcd8] sm:$0xff] }
 0x3db   : > { %3404 = vmatprep.subr.mxu1 %v3107_v23  ;;  %3481 = vmatprep.subr.mxu0 %v3109_v10  ;;  %v3572_v23 = vld [vmem:[%s8689_s10 + $0xcc0] sm:$0xff]  ;;  %v3574_v10 = vld [vmem:[%s8689_s10 + $0xcd0] sm:$0xff] }
 0x3dc   : > { %3405 = vmatpush1.msra.mxu1 %v3106_v24  ;;  %3482 = vmatpush1.msra.mxu0 %v3108_v25  ;;  %v3565_v24 = vld [vmem:[%s8689_s10 + $0xc88] sm:$0xff]  ;;  %v3567_v25 = vld [vmem:[%s8689_s10 + $0xc98] sm:$0xff] }
 0x3dd   : > { %3406 = vmatprep.subr.mxu1 %v3099_v27  ;;  %3483 = vmatprep.subr.mxu0 %v3101_v29  ;;  %v3564_v27 = vld [vmem:[%s8689_s10 + $0xc80] sm:$0xff]  ;;  %v3566_v29 = vld [vmem:[%s8689_s10 + $0xc90] sm:$0xff] }
 0x3de   : > { %3407 = vmatpush1.msra.mxu1 %v3098_v30  ;;  %3440 = vmatprep.mubr.f32.mxu1 %v5123_v7  ;;  %v3557_v30 = vld [vmem:[%s8689_s10 + $0xc48] sm:$0xff] }
 0x3df   : > { %3484 = vmatpush1.msra.mxu0 %v3100_v33  ;;  %3517 = vmatprep.mubr.f32.mxu0 %v5123_v7  ;;  %v3559_v33 = vld [vmem:[%s8689_s10 + $0xc58] sm:$0xff] }
 0x3e0   : > { %3441 = vmatmul.mubr.f32.vlgmr.msra.gmra.mxu1 %v7450_v26  ;;  %3518 = vmatmul.mubr.f32.vlgmr.msra.gmra.mxu0 %v7450_v26  ;;  %v3662_v26 = vld [vmem:[%s8689_s10 + $0xf90] sm:$0xff] }
 0x3e1   : > { %3676 = vmatprep.subr.mxu1 %v3669_v34  ;;  %3753 = vmatprep.subr.mxu0 %v3671_v17  ;;  %v3556_v34 = vld [vmem:[%s8689_s10 + $0xc40] sm:$0xff]  ;;  %v3558_v17 = vld [vmem:[%s8689_s10 + $0xc50] sm:$0xff] }
 0x3e2   : > { %3677 = vmatpush1.msra.mxu1 %v3668_v36  ;;  %3754 = vmatpush1.msra.mxu0 %v3670_v37  ;;  %v3549_v36 = vld [vmem:[%s8689_s10 + $0xc08] sm:$0xff]  ;;  %v3551_v37 = vld [vmem:[%s8689_s10 + $0xc18] sm:$0xff] }
 0x3e3   : > { %3678 = vmatprep.subr.mxu1 %v3661_v38  ;;  %3755 = vmatprep.subr.mxu0 %v3663_v39  ;;  %v3548_v38 = vld [vmem:[%s8689_s10 + $0xc00] sm:$0xff]  ;;  %v3550_v39 = vld [vmem:[%s8689_s10 + $0xc10] sm:$0xff] }
 0x3e4   : > { %3446 = vmatprep.mubr.f32.mxu1 %v5123_v7  ;;  %3523 = vmatprep.mubr.f32.mxu0 %v5123_v7 }
 0x3e5   : > { %3679 = vmatpush1.msra.mxu1 %v3660_v40  ;;  %3756 = vmatpush1.msra.mxu0 %v3662_v26  ;;  %v3673_v40 = vld [vmem:[%s8689_s10 + $0xfe8] sm:$0xff]  ;;  %v3675_v26 = vld [vmem:[%s8689_s10 + $0xff8] sm:$0xff] }
 0x3e6   : > { %3447 = vmatmul.mubr.f32.gmra.mxu1 %v7482_v35  ;;  %3524 = vmatmul.mubr.f32.gmra.mxu0 %v7482_v35  ;;  %v3637_v35 = vld [vmem:[%s8689_s10 + $0xec8] sm:$0xff] }
 0x3e7   : > { %3680 = vmatprep.subr.mxu1 %v3653_v41  ;;  %3757 = vmatprep.subr.mxu0 %v3655_v42  ;;  %v7857_v41 = vpop.eup %5103  ;;  %v3672_v42 = vld [vmem:[%s8689_s10 + $0xfe0] sm:$0xff] }
 0x3e8   : > { %3681 = vmatpush1.msra.mxu1 %v3652_v43  ;;  %3758 = vmatpush1.msra.mxu0 %v3654_v46  ;;  %v3674_v43 = vld [vmem:[%s8689_s10 + $0xff0] sm:$0xff]  ;;  %v3665_v46 = vld [vmem:[%s8689_s10 + $0xfa8] sm:$0xff] }
 0x3e9   : > { %3682 = vmatprep.subr.mxu1 %v3645_v47  ;;  %3759 = vmatprep.subr.mxu0 %v3647_v48  ;;  %v3667_v47 = vld [vmem:[%s8689_s10 + $0xfb8] sm:$0xff]  ;;  %v3664_v48 = vld [vmem:[%s8689_s10 + $0xfa0] sm:$0xff] }
 0x3ea   : > { %3683 = vmatpush1.msra.mxu1 %v3644_v50  ;;  %3760 = vmatpush1.msra.mxu0 %v3646_v52  ;;  %v3666_v50 = vld [vmem:[%s8689_s10 + $0xfb0] sm:$0xff]  ;;  %v3657_v52 = vld [vmem:[%s8689_s10 + $0xf68] sm:$0xff] }
 0x3eb   : > { %3684 = vmatprep.subr.mxu1 %v3637_v35  ;;  %3761 = vmatprep.subr.mxu0 %v3639_v54  ;;  %v3659_v35 = vld [vmem:[%s8689_s10 + $0xf78] sm:$0xff]  ;;  %v7888_v54 = vpop.eup %5105 }
 0x3ec   : > { %3685 = vmatpush1.msra.mxu1 %v3636_v55  ;;  %3762 = vmatpush1.msra.mxu0 %v3638_v57  ;;  %v3656_v55 = vld [vmem:[%s8689_s10 + $0xf60] sm:$0xff]  ;;  %v3658_v57 = vld [vmem:[%s8689_s10 + $0xf70] sm:$0xff] }
 0x3ed   : > { %3686 = vmatprep.subr.mxu1 %v3629_v58  ;;  %3763 = vmatprep.subr.mxu0 %v3631_v59  ;;  %v3649_v58 = vld [vmem:[%s8689_s10 + $0xf28] sm:$0xff]  ;;  %v3651_v59 = vld [vmem:[%s8689_s10 + $0xf38] sm:$0xff] }
 0x3ee   : > { %3687 = vmatpush1.msra.mxu1 %v3628_v31  ;;  %3764 = vmatpush1.msra.mxu0 %v3630_v60  ;;  %v3648_v31 = vld [vmem:[%s8689_s10 + $0xf20] sm:$0xff]  ;;  %v3650_v60 = vld [vmem:[%s8689_s10 + $0xf30] sm:$0xff] }
 0x3ef   : > { %3688 = vmatprep.subr.mxu1 %v3621_v62  ;;  %3765 = vmatprep.subr.mxu0 %v3623_v63  ;;  %v3641_v62 = vld [vmem:[%s8689_s10 + $0xee8] sm:$0xff]  ;;  %v3643_v63 = vld [vmem:[%s8689_s10 + $0xef8] sm:$0xff] }
 0x3f0   : > { %3689 = vmatpush1.msra.mxu1 %v3620_v32  ;;  %3766 = vmatpush1.msra.mxu0 %v3622_v0  ;;  %v3640_v32 = vld [vmem:[%s8689_s10 + $0xee0] sm:$0xff]  ;;  %v3642_v0 = vld [vmem:[%s8689_s10 + $0xef0] sm:$0xff] }
 0x3f1   : > { %3690 = vmatprep.subr.mxu1 %v3613_v53  ;;  %3767 = vmatprep.subr.mxu0 %v3615_v2  ;;  %v3633_v53 = vld [vmem:[%s8689_s10 + $0xea8] sm:$0xff]  ;;  %v3635_v2 = vld [vmem:[%s8689_s10 + $0xeb8] sm:$0xff] }
 0x3f2   : > { %3691 = vmatpush1.msra.mxu1 %v3612_v3  ;;  %3768 = vmatpush1.msra.mxu0 %v3614_v4  ;;  %v3632_v3 = vld [vmem:[%s8689_s10 + $0xea0] sm:$0xff]  ;;  %v3634_v4 = vld [vmem:[%s8689_s10 + $0xeb0] sm:$0xff] }
 0x3f3   : > { %3692 = vmatprep.subr.mxu1 %v3605_v5  ;;  %3769 = vmatprep.subr.mxu0 %v3607_v6  ;;  %v3625_v5 = vld [vmem:[%s8689_s10 + $0xe68] sm:$0xff]  ;;  %v3627_v6 = vld [vmem:[%s8689_s10 + $0xe78] sm:$0xff] }
 0x3f4   : > { %3693 = vmatpush1.msra.mxu1 %v3604_v8  ;;  %3770 = vmatpush1.msra.mxu0 %v3606_v9  ;;  %v3624_v8 = vld [vmem:[%s8689_s10 + $0xe60] sm:$0xff]  ;;  %v3626_v9 = vld [vmem:[%s8689_s10 + $0xe70] sm:$0xff] }
 0x3f5   : > { %3694 = vmatprep.subr.mxu1 %v3597_v61  ;;  %3771 = vmatprep.subr.mxu0 %v3599_v11  ;;  %v3617_v61 = vld [vmem:[%s8689_s10 + $0xe28] sm:$0xff]  ;;  %v3619_v11 = vld [vmem:[%s8689_s10 + $0xe38] sm:$0xff] }
 0x3f6   : > { %3695 = vmatpush1.msra.mxu1 %v3596_v13  ;;  %3772 = vmatpush1.msra.mxu0 %v3598_v14  ;;  %v3616_v13 = vld [vmem:[%s8689_s10 + $0xe20] sm:$0xff]  ;;  %v3618_v14 = vld [vmem:[%s8689_s10 + $0xe30] sm:$0xff] }
 0x3f7   : > { %3696 = vmatprep.subr.mxu1 %v3589_v12  ;;  %3773 = vmatprep.subr.mxu0 %v3591_v15  ;;  %v3609_v12 = vld [vmem:[%s8689_s10 + $0xde8] sm:$0xff]  ;;  %v3611_v15 = vld [vmem:[%s8689_s10 + $0xdf8] sm:$0xff] }
 0x3f8   : > { %3697 = vmatpush1.msra.mxu1 %v3588_v16  ;;  %3774 = vmatpush1.msra.mxu0 %v3590_v1  ;;  %v3608_v16 = vld [vmem:[%s8689_s10 + $0xde0] sm:$0xff]  ;;  %v3610_v1 = vld [vmem:[%s8689_s10 + $0xdf0] sm:$0xff] }
 0x3f9   : > { %3698 = vmatprep.subr.mxu1 %v3581_v18  ;;  %3775 = vmatprep.subr.mxu0 %v3583_v19  ;;  %v3601_v18 = vld [vmem:[%s8689_s10 + $0xda8] sm:$0xff]  ;;  %v3603_v19 = vld [vmem:[%s8689_s10 + $0xdb8] sm:$0xff] }
 0x3fa   : > { %3699 = vmatpush1.msra.mxu1 %v3580_v28  ;;  %3776 = vmatpush1.msra.mxu0 %v3582_v20  ;;  %v3600_v28 = vld [vmem:[%s8689_s10 + $0xda0] sm:$0xff]  ;;  %v3602_v20 = vld [vmem:[%s8689_s10 + $0xdb0] sm:$0xff] }
 0x3fb   : > { %3700 = vmatprep.subr.mxu1 %v3573_v21  ;;  %3777 = vmatprep.subr.mxu0 %v3575_v22  ;;  %v3593_v21 = vld [vmem:[%s8689_s10 + $0xd68] sm:$0xff]  ;;  %v3595_v22 = vld [vmem:[%s8689_s10 + $0xd78] sm:$0xff] }
 0x3fc   : > { %3701 = vmatpush1.msra.mxu1 %v3572_v23  ;;  %3778 = vmatpush1.msra.mxu0 %v3574_v10  ;;  %v3592_v23 = vld [vmem:[%s8689_s10 + $0xd60] sm:$0xff]  ;;  %v3594_v10 = vld [vmem:[%s8689_s10 + $0xd70] sm:$0xff] }
 0x3fd   : > { %3702 = vmatprep.subr.mxu1 %v3565_v24  ;;  %3779 = vmatprep.subr.mxu0 %v3567_v25  ;;  %v3585_v24 = vld [vmem:[%s8689_s10 + $0xd28] sm:$0xff]  ;;  %v3587_v25 = vld [vmem:[%s8689_s10 + $0xd38] sm:$0xff] }
 0x3fe   : > { %3703 = vmatpush1.msra.mxu1 %v3564_v27  ;;  %3780 = vmatpush1.msra.mxu0 %v3566_v29  ;;  %v3584_v27 = vld [vmem:[%s8689_s10 + $0xd20] sm:$0xff]  ;;  %v3586_v29 = vld [vmem:[%s8689_s10 + $0xd30] sm:$0xff] }
 0x3ff   : > { %3704 = vmatprep.subr.mxu1 %v3557_v30  ;;  %3781 = vmatprep.subr.mxu0 %v3559_v33  ;;  %v3577_v30 = vld [vmem:[%s8689_s10 + $0xce8] sm:$0xff]  ;;  %v3579_v33 = vld [vmem:[%s8689_s10 + $0xcf8] sm:$0xff] }
 0x400   : > { %3705 = vmatpush1.msra.mxu1 %v3556_v34  ;;  %3782 = vmatpush1.msra.mxu0 %v3558_v17  ;;  %v3576_v34 = vld [vmem:[%s8689_s10 + $0xce0] sm:$0xff]  ;;  %v3578_v17 = vld [vmem:[%s8689_s10 + $0xcf0] sm:$0xff] }
 0x401   : > { %3706 = vmatprep.subr.mxu1 %v3549_v36  ;;  %3783 = vmatprep.subr.mxu0 %v3551_v37  ;;  %v3569_v36 = vld [vmem:[%s8689_s10 + $0xca8] sm:$0xff]  ;;  %v3571_v37 = vld [vmem:[%s8689_s10 + $0xcb8] sm:$0xff] }
 0x402   : > { %3707 = vmatpush1.msra.mxu1 %v3548_v38  ;;  %3740 = vmatprep.mubr.f32.mxu1 %v5123_v7  ;;  %v3568_v38 = vld [vmem:[%s8689_s10 + $0xca0] sm:$0xff] }
 0x403   : > { %3784 = vmatpush1.msra.mxu0 %v3550_v39  ;;  %3817 = vmatprep.mubr.f32.mxu0 %v5123_v7  ;;  %v3570_v39 = vld [vmem:[%s8689_s10 + $0xcb0] sm:$0xff] }
 0x404   : > { %3741 = vmatmul.mubr.f32.vlgmr.msra.gmra.mxu1 %v7857_v41  ;;  %3818 = vmatmul.mubr.f32.vlgmr.msra.gmra.mxu0 %v7857_v41 }
 0x405   : > { %3830 = vmatprep.subr.mxu1 %v3673_v40  ;;  %3907 = vmatprep.subr.mxu0 %v3675_v26  ;;  %v3561_v40 = vld [vmem:[%s8689_s10 + $0xc68] sm:$0xff]  ;;  %v3563_v26 = vld [vmem:[%s8689_s10 + $0xc78] sm:$0xff] }
 0x406   : > { %3831 = vmatpush1.msra.mxu1 %v3672_v42  ;;  %3908 = vmatpush1.msra.mxu0 %v3674_v43  ;;  %v3560_v42 = vld [vmem:[%s8689_s10 + $0xc60] sm:$0xff]  ;;  %v3562_v43 = vld [vmem:[%s8689_s10 + $0xc70] sm:$0xff] }
 0x407   : > { %3832 = vmatprep.subr.mxu1 %v3665_v46  ;;  %3909 = vmatprep.subr.mxu0 %v3667_v47  ;;  %v4000_v46 = vsub.f32 0.0, %v6626_v44  ;;  %v3553_v47 = vld [vmem:[%s8689_s10 + $0xc28] sm:$0xff]  ;;  %v3554_v44 = vld [vmem:[%s8689_s10 + $0xc30] sm:$0xff] }
 0x408   : > { %3746 = vmatprep.mubr.f32.mxu1 %v5123_v7  ;;  %3823 = vmatprep.mubr.f32.mxu0 %v5123_v7 }
 0x409   : > { %3833 = vmatpush1.msra.mxu1 %v3664_v48  ;;  %3910 = vmatpush1.msra.mxu0 %v3666_v50  ;;  %v3555_v48 = vld [vmem:[%s8689_s10 + $0xc38] sm:$0xff]  ;;  %v3552_v50 = vld [vmem:[%s8689_s10 + $0xc20] sm:$0xff] }
 0x40a   : > { %3747 = vmatmul.mubr.f32.gmra.mxu1 %v7888_v54  ;;  %3824 = vmatmul.mubr.f32.gmra.mxu0 %v7888_v54 }
 0x40b   : > { %3834 = vmatprep.subr.mxu1 %v3657_v52  ;;  %3911 = vmatprep.subr.mxu0 %v3659_v35  ;;  %v4002_v52 = vmul.f32 1.442695, %v4000_v46  ;;  %v4133_v35 = vld [vmem:[%s8689_s10 + $0x13c8] sm:$0xff] }
 0x40c   : > { %3835 = vmatpush1.msra.mxu1 %v3656_v55  ;;  %3912 = vmatpush1.msra.mxu0 %v3658_v57  ;;  %v4135_v55 = vld [vmem:[%s8689_s10 + $0x13d8] sm:$0xff]  ;;  %v4132_v57 = vld [vmem:[%s8689_s10 + $0x13c0] sm:$0xff]  ;;  %v4053_v46 = vld [vmem:[%s8689_s10 + $0x1148] sm:$0xff] }
 0x40d   : > { %3836 = vmatprep.subr.mxu1 %v3649_v58  ;;  %3913 = vmatprep.subr.mxu0 %v3651_v59  ;;  %v4134_v58 = vld [vmem:[%s8689_s10 + $0x13d0] sm:$0xff]  ;;  %v4001_v59 = vsub.f32 0.0, %v6630_v49  ;;  %5107 = vpow2.f32 %v4002_v52  ;;  %v4124_v49 = vld [vmem:[%s8689_s10 + $0x1380] sm:$0xff]  ;;  %v4045_v52 = vld [vmem:[%s8689_s10 + $0x1108] sm:$0xff] }
 0x40e   : > { %3837 = vmatpush1.msra.mxu1 %v3648_v31  ;;  %3914 = vmatpush1.msra.mxu0 %v3650_v60  ;;  %v4125_v31 = vld [vmem:[%s8689_s10 + $0x1388] sm:$0xff]  ;;  %v4127_v60 = vld [vmem:[%s8689_s10 + $0x1398] sm:$0xff] }
 0x40f   : > { %3838 = vmatprep.subr.mxu1 %v3641_v62  ;;  %3915 = vmatprep.subr.mxu0 %v3643_v63  ;;  %v4004_v62 = vmul.f32 1.442695, %v4001_v59  ;;  %v4117_v63 = vld [vmem:[%s8689_s10 + $0x1348] sm:$0xff] }
 0x410   : > { %3839 = vmatpush1.msra.mxu1 %v3640_v32  ;;  %3916 = vmatpush1.msra.mxu0 %v3642_v0  ;;  %v4119_v32 = vld [vmem:[%s8689_s10 + $0x1358] sm:$0xff]  ;;  %v4116_v0 = vld [vmem:[%s8689_s10 + $0x1340] sm:$0xff] }
 0x411   : > { %3840 = vmatprep.subr.mxu1 %v3633_v53  ;;  %3917 = vmatprep.subr.mxu0 %v3635_v2  ;;  %v4118_v53 = vld [vmem:[%s8689_s10 + $0x1350] sm:$0xff]  ;;  %v8098_v2 = vpop.f32.mrf.mxu1  ;;  %5109 = vpow2.f32 %v4004_v62 }
 0x412   : > { %3841 = vmatpush1.msra.mxu1 %v3632_v3  ;;  %3918 = vmatpush1.msra.mxu0 %v3634_v4  ;;  %v8100_v3 = vpop.f32.mrf.mxu0  ;;  %v4109_v4 = vld [vmem:[%s8689_s10 + $0x1308] sm:$0xff]  ;;  %v4038_v62 = vld [vmem:[%s8689_s10 + $0x10d0] sm:$0xff] }
 0x413   : > { %3842 = vmatprep.subr.mxu1 %v3625_v5  ;;  %3919 = vmatprep.subr.mxu0 %v3627_v6  ;;  %v4111_v5 = vld [vmem:[%s8689_s10 + $0x1318] sm:$0xff]  ;;  %v4108_v6 = vld [vmem:[%s8689_s10 + $0x1300] sm:$0xff] }
 0x414   : > { %3843 = vmatpush1.msra.mxu1 %v3624_v8  ;;  %3920 = vmatpush1.msra.mxu0 %v3626_v9  ;;  %v4110_v8 = vld [vmem:[%s8689_s10 + $0x1310] sm:$0xff]  ;;  %v4103_v9 = vld [vmem:[%s8689_s10 + $0x12d8] sm:$0xff] }
 0x415   : > { %3844 = vmatprep.subr.mxu1 %v3617_v61  ;;  %3921 = vmatprep.subr.mxu0 %v3619_v11  ;;  %v4100_v61 = vld [vmem:[%s8689_s10 + $0x12c0] sm:$0xff]  ;;  %v4102_v11 = vld [vmem:[%s8689_s10 + $0x12d0] sm:$0xff] }
 0x416   : > { %3845 = vmatpush1.msra.mxu1 %v3616_v13  ;;  %3922 = vmatpush1.msra.mxu0 %v3618_v14  ;;  %v8128_v13 = vpop.f32.mrf.mxu1  ;;  %v8130_v14 = vpop.f32.mrf.mxu0 }
 0x417   : > { %3846 = vmatprep.subr.mxu1 %v3609_v12  ;;  %3923 = vmatprep.subr.mxu0 %v3611_v15  ;;  %v4093_v12 = vld [vmem:[%s8689_s10 + $0x1288] sm:$0xff]  ;;  %v4095_v15 = vld [vmem:[%s8689_s10 + $0x1298] sm:$0xff] }
 0x418   : > { %3847 = vmatpush1.msra.mxu1 %v3608_v16  ;;  %3924 = vmatpush1.msra.mxu0 %v3610_v1  ;;  %v4092_v16 = vld [vmem:[%s8689_s10 + $0x1280] sm:$0xff]  ;;  %v4094_v1 = vld [vmem:[%s8689_s10 + $0x1290] sm:$0xff] }
 0x419   : > { %3848 = vmatprep.subr.mxu1 %v3601_v18  ;;  %3925 = vmatprep.subr.mxu0 %v3603_v19  ;;  %v4085_v18 = vld [vmem:[%s8689_s10 + $0x1248] sm:$0xff]  ;;  %v4087_v19 = vld [vmem:[%s8689_s10 + $0x1258] sm:$0xff] }
 0x41a   : > { %3849 = vmatpush1.msra.mxu1 %v3600_v28  ;;  %3926 = vmatpush1.msra.mxu0 %v3602_v20  ;;  %v4084_v28 = vld [vmem:[%s8689_s10 + $0x1240] sm:$0xff]  ;;  %v4086_v20 = vld [vmem:[%s8689_s10 + $0x1250] sm:$0xff] }
 0x41b   : > { %3850 = vmatprep.subr.mxu1 %v3593_v21  ;;  %3927 = vmatprep.subr.mxu0 %v3595_v22  ;;  %v8156_v21 = vpop.f32.mrf.mxu1  ;;  %v8158_v22 = vpop.f32.mrf.mxu0 }
 0x41c   : > { %3851 = vmatpush1.msra.mxu1 %v3592_v23  ;;  %3928 = vmatpush1.msra.mxu0 %v3594_v10  ;;  %v4077_v23 = vld [vmem:[%s8689_s10 + $0x1208] sm:$0xff]  ;;  %v4079_v10 = vld [vmem:[%s8689_s10 + $0x1218] sm:$0xff] }
 0x41d   : > { %3852 = vmatprep.subr.mxu1 %v3585_v24  ;;  %3929 = vmatprep.subr.mxu0 %v3587_v25  ;;  %v5108_v24 = vpop.eup %5107  ;;  %v4076_v25 = vld [vmem:[%s8689_s10 + $0x1200] sm:$0xff] }
 0x41e   : > { %3853 = vmatpush1.msra.mxu1 %v3584_v27  ;;  %3930 = vmatpush1.msra.mxu0 %v3586_v29  ;;  %v4078_v27 = vld [vmem:[%s8689_s10 + $0x1210] sm:$0xff]  ;;  %v4069_v29 = vld [vmem:[%s8689_s10 + $0x11c8] sm:$0xff] }
 0x41f   : > { %3854 = vmatprep.subr.mxu1 %v3577_v30  ;;  %3931 = vmatprep.subr.mxu0 %v3579_v33  ;;  %v4071_v30 = vld [vmem:[%s8689_s10 + $0x11d8] sm:$0xff]  ;;  %v4068_v33 = vld [vmem:[%s8689_s10 + $0x11c0] sm:$0xff] }
 0x420   : > { %3855 = vmatpush1.msra.mxu1 %v3576_v34  ;;  %3932 = vmatpush1.msra.mxu0 %v3578_v17  ;;  %v4070_v34 = vld [vmem:[%s8689_s10 + $0x11d0] sm:$0xff]  ;;  %v4006_v17 = vadd.f32 1.0, %v5108_v24 }
 0x421   : > { %3856 = vmatprep.subr.mxu1 %v3569_v36  ;;  %3933 = vmatprep.subr.mxu0 %v3571_v37  ;;  %v8184_v36 = vpop.f32.mrf.mxu1  ;;  %v8186_v37 = vpop.f32.mrf.mxu0  ;;  %v4138_v24 = vld [vmem:[%s8689_s10 + $0x13f0] sm:$0xff] }
 0x422   : > { %3857 = vmatpush1.msra.mxu1 %v3568_v38  ;;  %3934 = vmatpush1.msra.mxu0 %v3570_v39  ;;  %v4061_v38 = vld [vmem:[%s8689_s10 + $0x1188] sm:$0xff]  ;;  %v4063_v39 = vld [vmem:[%s8689_s10 + $0x1198] sm:$0xff]  ;;  %5111 = vrcp.f32 %v4006_v17 }
 0x423   : > { %3858 = vmatprep.subr.mxu1 %v3561_v40  ;;  %3935 = vmatprep.subr.mxu0 %v3563_v26  ;;  %v4060_v40 = vld [vmem:[%s8689_s10 + $0x1180] sm:$0xff]  ;;  %v4062_v26 = vld [vmem:[%s8689_s10 + $0x1190] sm:$0xff]  ;;  %v4121_v17 = vld [vmem:[%s8689_s10 + $0x1368] sm:$0xff] }
 0x424   : > { %3859 = vmatpush1.msra.mxu1 %v3560_v42  ;;  %3936 = vmatpush1.msra.mxu0 %v3562_v43  ;;  %v8200_v42 = vpop.f32.mrf.mxu1  ;;  %v8202_v43 = vpop.f32.mrf.mxu0 }
 0x425   : > { %3860 = vmatprep.subr.mxu1 %v3553_v47  ;;  %3937 = vmatprep.subr.mxu0 %v3555_v48  ;;  %v4055_v47 = vld [vmem:[%s8689_s10 + $0x1158] sm:$0xff]  ;;  %v5110_v48 = vpop.eup %5109 }
 0x426   : > { %3861 = vmatpush1.msra.mxu1 %v3552_v50  ;;  %3894 = vmatprep.mubr.f32.mxu1 %v5123_v7  ;;  %v4052_v50 = vld [vmem:[%s8689_s10 + $0x1140] sm:$0xff]  ;;  %v8228_v59 = vpop.f32.mrf.mxu1 }
 0x427   : > { %3938 = vmatpush1.msra.mxu0 %v3554_v44  ;;  %3971 = vmatprep.mubr.f32.mxu0 %v5123_v7  ;;  %v4054_v44 = vld [vmem:[%s8689_s10 + $0x1150] sm:$0xff] }
 0x428   : > { %3895 = vmatmul.mubr.f32.vlgmr.msra.gmra.mxu1 %v7857_v41  ;;  %3972 = vmatmul.mubr.f32.vlgmr.msra.gmra.mxu0 %v7857_v41  ;;  %v4126_v41 = vld [vmem:[%s8689_s10 + $0x1390] sm:$0xff] }
 0x429   : > { %4140 = vmatprep.subr.mxu1 %v4133_v35  ;;  %4217 = vmatprep.subr.mxu0 %v4135_v55  ;;  %v4047_v35 = vld [vmem:[%s8689_s10 + $0x1118] sm:$0xff]  ;;  %v4044_v55 = vld [vmem:[%s8689_s10 + $0x1100] sm:$0xff] }
 0x42a   : > { %4141 = vmatpush1.msra.mxu1 %v4132_v57  ;;  %4218 = vmatpush1.msra.mxu0 %v4134_v58  ;;  %v4046_v57 = vld [vmem:[%s8689_s10 + $0x1110] sm:$0xff]  ;;  %v4007_v58 = vadd.f32 1.0, %v5110_v48  ;;  %v4113_v48 = vld [vmem:[%s8689_s10 + $0x1328] sm:$0xff] }
 0x42b   : > { %4142 = vmatprep.subr.mxu1 %v4125_v31  ;;  %4219 = vmatprep.subr.mxu0 %v4127_v60  ;;  %v8230_v31 = vpop.f32.mrf.mxu0  ;;  %v4037_v60 = vld [vmem:[%s8689_s10 + $0x10c8] sm:$0xff] }
 0x42c   : > { %3900 = vmatprep.mubr.f32.mxu1 %v5123_v7  ;;  %3977 = vmatprep.mubr.f32.mxu0 %v5123_v7  ;;  %5113 = vrcp.f32 %v4007_v58  ;;  %v4106_v58 = vld [vmem:[%s8689_s10 + $0x12f0] sm:$0xff] }
 0x42d   : > { %4143 = vmatpush1.msra.mxu1 %v4124_v49  ;;  %4220 = vmatpush1.msra.mxu0 %v4126_v41  ;;  %v4039_v49 = vld [vmem:[%s8689_s10 + $0x10d8] sm:$0xff]  ;;  %v4036_v41 = vld [vmem:[%s8689_s10 + $0x10c0] sm:$0xff] }
 0x42e   : > { %3901 = vmatmul.mubr.f32.gmra.mxu1 %v7888_v54  ;;  %3978 = vmatmul.mubr.f32.gmra.mxu0 %v7888_v54  ;;  %v4101_v54 = vld [vmem:[%s8689_s10 + $0x12c8] sm:$0xff] }
 0x42f   : > { %4144 = vmatprep.subr.mxu1 %v4117_v63  ;;  %4221 = vmatprep.subr.mxu0 %v4119_v32  ;;  %v4029_v63 = vld [vmem:[%s8689_s10 + $0x1088] sm:$0xff]  ;;  %v4031_v32 = vld [vmem:[%s8689_s10 + $0x1098] sm:$0xff] }
 0x430   : > { %4145 = vmatpush1.msra.mxu1 %v4116_v0  ;;  %4222 = vmatpush1.msra.mxu0 %v4118_v53  ;;  %v4028_v0 = vld [vmem:[%s8689_s10 + $0x1080] sm:$0xff]  ;;  %v4030_v53 = vld [vmem:[%s8689_s10 + $0x1090] sm:$0xff] }
 0x431   : > { %4146 = vmatprep.subr.mxu1 %v4109_v4  ;;  %4223 = vmatprep.subr.mxu0 %v4111_v5  ;;  %v8256_v4 = vpop.f32.mrf.mxu1  ;;  %v8258_v5 = vpop.f32.mrf.mxu0 }
 0x432   : > { %4147 = vmatpush1.msra.mxu1 %v4108_v6  ;;  %4224 = vmatpush1.msra.mxu0 %v4110_v8  ;;  %v4021_v6 = vld [vmem:[%s8689_s10 + $0x1048] sm:$0xff]  ;;  %v4023_v8 = vld [vmem:[%s8689_s10 + $0x1058] sm:$0xff] }
 0x433   : > { %4148 = vmatprep.subr.mxu1 %v4101_v54  ;;  %4225 = vmatprep.subr.mxu0 %v4103_v9  ;;  %v4020_v54 = vld [vmem:[%s8689_s10 + $0x1040] sm:$0xff]  ;;  %v4022_v9 = vld [vmem:[%s8689_s10 + $0x1050] sm:$0xff] }
 0x434   : > { %4149 = vmatpush1.msra.mxu1 %v4100_v61  ;;  %4226 = vmatpush1.msra.mxu0 %v4102_v11  ;;  %v4013_v61 = vld [vmem:[%s8689_s10 + $0x1008] sm:$0xff]  ;;  %v4015_v11 = vld [vmem:[%s8689_s10 + $0x1018] sm:$0xff] }
 0x435   : > { %4150 = vmatprep.subr.mxu1 %v4093_v12  ;;  %4227 = vmatprep.subr.mxu0 %v4095_v15  ;;  %v4012_v12 = vld [vmem:[%s8689_s10 + $0x1000] sm:$0xff]  ;;  %v8281_v15 = vpop.f32.mrf.mxu1 }
 0x436   : > { %4151 = vmatpush1.msra.mxu1 %v4092_v16  ;;  %4228 = vmatpush1.msra.mxu0 %v4094_v1  ;;  %v8283_v16 = vpop.f32.mrf.mxu0  ;;  %v4014_v1 = vld [vmem:[%s8689_s10 + $0x1010] sm:$0xff] }
 0x437   : > { %4152 = vmatprep.subr.mxu1 %v4085_v18  ;;  %4229 = vmatprep.subr.mxu0 %v4087_v19  ;;  %v8289_v18 = vpop.f32.mrf.mxu1 }
 0x438   : > { %4153 = vmatpush1.msra.mxu1 %v4084_v28  ;;  %4230 = vmatpush1.msra.mxu0 %v4086_v20  ;;  %v8291_v19 = vpop.f32.mrf.mxu0  ;;  %v4137_v28 = vld [vmem:[%s8689_s10 + $0x13e8] sm:$0xff]  ;;  %v4139_v20 = vld [vmem:[%s8689_s10 + $0x13f8] sm:$0xff] }
 0x439   : > { %4154 = vmatprep.subr.mxu1 %v4077_v23  ;;  %4231 = vmatprep.subr.mxu0 %v4079_v10  ;;  %v8299_v23 = vpop.eup %5111  ;;  %v4136_v10 = vld [vmem:[%s8689_s10 + $0x13e0] sm:$0xff] }
 0x43a   : > { %4155 = vmatpush1.msra.mxu1 %v4076_v25  ;;  %4232 = vmatpush1.msra.mxu0 %v4078_v27  ;;  %v4129_v25 = vld [vmem:[%s8689_s10 + $0x13a8] sm:$0xff]  ;;  %v4131_v27 = vld [vmem:[%s8689_s10 + $0x13b8] sm:$0xff] }
 0x43b   : > { %4156 = vmatprep.subr.mxu1 %v4069_v29  ;;  %4233 = vmatprep.subr.mxu0 %v4071_v30  ;;  %v8316_v29 = vpop.f32.mrf.mxu1  ;;  %v8318_v30 = vpop.f32.mrf.mxu0 }
 0x43c   : > { %4157 = vmatpush1.msra.mxu1 %v4068_v33  ;;  %4234 = vmatpush1.msra.mxu0 %v4070_v34  ;;  %v4128_v33 = vld [vmem:[%s8689_s10 + $0x13a0] sm:$0xff]  ;;  %v4130_v34 = vld [vmem:[%s8689_s10 + $0x13b0] sm:$0xff] }
 0x43d   : > { %4158 = vmatprep.subr.mxu1 %v4061_v38  ;;  %4235 = vmatprep.subr.mxu0 %v4063_v39  ;;  %v4123_v38 = vld [vmem:[%s8689_s10 + $0x1378] sm:$0xff]  ;;  %v8334_v39 = vpop.eup %5113 }
 0x43e   : > { %4159 = vmatpush1.msra.mxu1 %v4060_v40  ;;  %4236 = vmatpush1.msra.mxu0 %v4062_v26  ;;  %v4120_v40 = vld [vmem:[%s8689_s10 + $0x1360] sm:$0xff]  ;;  %v4122_v26 = vld [vmem:[%s8689_s10 + $0x1370] sm:$0xff] }
 0x43f   : > { %4160 = vmatprep.subr.mxu1 %v4053_v46  ;;  %4237 = vmatprep.subr.mxu0 %v4055_v47  ;;  %v8342_v46 = vpop.f32.mrf.mxu1  ;;  %v8344_v47 = vpop.f32.mrf.mxu0 }
 0x440   : > { %4161 = vmatpush1.msra.mxu1 %v4052_v50  ;;  %4238 = vmatpush1.msra.mxu0 %v4054_v44  ;;  %v4115_v50 = vld [vmem:[%s8689_s10 + $0x1338] sm:$0xff]  ;;  %v4112_v44 = vld [vmem:[%s8689_s10 + $0x1320] sm:$0xff] }
 0x441   : > { %4162 = vmatprep.subr.mxu1 %v4045_v52  ;;  %4239 = vmatprep.subr.mxu0 %v4047_v35  ;;  %v4114_v52 = vld [vmem:[%s8689_s10 + $0x1330] sm:$0xff]  ;;  %v4105_v35 = vld [vmem:[%s8689_s10 + $0x12e8] sm:$0xff] }
 0x442   : > { %4163 = vmatpush1.msra.mxu1 %v4044_v55  ;;  %4240 = vmatpush1.msra.mxu0 %v4046_v57  ;;  %v4107_v55 = vld [vmem:[%s8689_s10 + $0x12f8] sm:$0xff]  ;;  %v4104_v57 = vld [vmem:[%s8689_s10 + $0x12e0] sm:$0xff] }
 0x443   : > { %4164 = vmatprep.subr.mxu1 %v4037_v60  ;;  %4241 = vmatprep.subr.mxu0 %v4039_v49  ;;  %v8372_v60 = vpop.f32.mrf.mxu1  ;;  %v8374_v49 = vpop.f32.mrf.mxu0 }
 0x444   : > { %4165 = vmatpush1.msra.mxu1 %v4036_v41  ;;  %4242 = vmatpush1.msra.mxu0 %v4038_v62  ;;  %v4097_v41 = vld [vmem:[%s8689_s10 + $0x12a8] sm:$0xff]  ;;  %v4099_v62 = vld [vmem:[%s8689_s10 + $0x12b8] sm:$0xff] }
 0x445   : > { %4166 = vmatprep.subr.mxu1 %v4029_v63  ;;  %4243 = vmatprep.subr.mxu0 %v4031_v32  ;;  %v4096_v63 = vld [vmem:[%s8689_s10 + $0x12a0] sm:$0xff]  ;;  %v4098_v32 = vld [vmem:[%s8689_s10 + $0x12b0] sm:$0xff] }
 0x446   : > { %4167 = vmatpush1.msra.mxu1 %v4028_v0  ;;  %4244 = vmatpush1.msra.mxu0 %v4030_v53  ;;  %v4089_v0 = vld [vmem:[%s8689_s10 + $0x1268] sm:$0xff]  ;;  %v4091_v53 = vld [vmem:[%s8689_s10 + $0x1278] sm:$0xff] }
 0x447   : > { %4168 = vmatprep.subr.mxu1 %v4021_v6  ;;  %4245 = vmatprep.subr.mxu0 %v4023_v8 }
 0x448   : > { %4169 = vmatpush1.msra.mxu1 %v4020_v54  ;;  %4246 = vmatpush1.msra.mxu0 %v4022_v9  ;;  %v4088_v54 = vld [vmem:[%s8689_s10 + $0x1260] sm:$0xff]  ;;  %v4090_v9 = vld [vmem:[%s8689_s10 + $0x1270] sm:$0xff] }
 0x449   : > { %4170 = vmatprep.subr.mxu1 %v4013_v61  ;;  %4247 = vmatprep.subr.mxu0 %v4015_v11  ;;  %v4081_v61 = vld [vmem:[%s8689_s10 + $0x1228] sm:$0xff]  ;;  %v4083_v11 = vld [vmem:[%s8689_s10 + $0x1238] sm:$0xff] }
 0x44a   : > { %4171 = vmatpush1.msra.mxu1 %v4012_v12  ;;  %4204 = vmatprep.mubr.f32.mxu1 %v5123_v7 }
 0x44b   : > { %4248 = vmatpush1.msra.mxu0 %v4014_v1  ;;  %4281 = vmatprep.mubr.f32.mxu0 %v5123_v7 }
 0x44c   : > { %4205 = vmatmul.mubr.f32.vlgmr.msra.gmra.mxu1 %v8299_v23  ;;  %4282 = vmatmul.mubr.f32.vlgmr.msra.gmra.mxu0 %v8299_v23 }
 0x44d   : > { %4294 = vmatprep.subr.mxu1 %v4137_v28  ;;  %4371 = vmatprep.subr.mxu0 %v4139_v20  ;;  %v4080_v28 = vld [vmem:[%s8689_s10 + $0x1220] sm:$0xff]  ;;  %v4082_v20 = vld [vmem:[%s8689_s10 + $0x1230] sm:$0xff] }
 0x44e   : > { %4295 = vmatpush1.msra.mxu1 %v4136_v10  ;;  %4372 = vmatpush1.msra.mxu0 %v4138_v24  ;;  %v4073_v10 = vld [vmem:[%s8689_s10 + $0x11e8] sm:$0xff]  ;;  %v4075_v24 = vld [vmem:[%s8689_s10 + $0x11f8] sm:$0xff] }
 0x44f   : > { %4296 = vmatprep.subr.mxu1 %v4129_v25  ;;  %4373 = vmatprep.subr.mxu0 %v4131_v27  ;;  %v4072_v25 = vld [vmem:[%s8689_s10 + $0x11e0] sm:$0xff]  ;;  %v4074_v27 = vld [vmem:[%s8689_s10 + $0x11f0] sm:$0xff] }
 0x450   : > { %4210 = vmatprep.mubr.f32.mxu1 %v5123_v7  ;;  %4287 = vmatprep.mubr.f32.mxu0 %v5123_v7 }
 0x451   : > { %4297 = vmatpush1.msra.mxu1 %v4128_v33  ;;  %4374 = vmatpush1.msra.mxu0 %v4130_v34  ;;  %v4065_v33 = vld [vmem:[%s8689_s10 + $0x11a8] sm:$0xff]  ;;  %v4067_v34 = vld [vmem:[%s8689_s10 + $0x11b8] sm:$0xff] }
 0x452   : > { %4211 = vmatmul.mubr.f32.gmra.mxu1 %v8334_v39  ;;  %4288 = vmatmul.mubr.f32.gmra.mxu0 %v8334_v39 }
 0x453   : > { %4298 = vmatprep.subr.mxu1 %v4121_v17  ;;  %4375 = vmatprep.subr.mxu0 %v4123_v38 }
 0x454   : > { %4299 = vmatpush1.msra.mxu1 %v4120_v40  ;;  %4376 = vmatpush1.msra.mxu0 %v4122_v26  ;;  %v4064_v40 = vld [vmem:[%s8689_s10 + $0x11a0] sm:$0xff]  ;;  %v4066_v26 = vld [vmem:[%s8689_s10 + $0x11b0] sm:$0xff] }
 0x455   : > { %4300 = vmatprep.subr.mxu1 %v4113_v48  ;;  %4377 = vmatprep.subr.mxu0 %v4115_v50  ;;  %v4057_v48 = vld [vmem:[%s8689_s10 + $0x1168] sm:$0xff]  ;;  %v4059_v50 = vld [vmem:[%s8689_s10 + $0x1178] sm:$0xff] }
 0x456   : > { %4301 = vmatpush1.msra.mxu1 %v4112_v44  ;;  %4378 = vmatpush1.msra.mxu0 %v4114_v52 }
 0x457   : > { %4302 = vmatprep.subr.mxu1 %v4105_v35  ;;  %4379 = vmatprep.subr.mxu0 %v4107_v55  ;;  %v4056_v35 = vld [vmem:[%s8689_s10 + $0x1160] sm:$0xff]  ;;  %v4058_v55 = vld [vmem:[%s8689_s10 + $0x1170] sm:$0xff] }
 0x458   : > { %4303 = vmatpush1.msra.mxu1 %v4104_v57  ;;  %4380 = vmatpush1.msra.mxu0 %v4106_v58  ;;  %v8394_v6 = vpop.f32.mrf.mxu1  ;;  %v8396_v8 = vpop.f32.mrf.mxu0 }
 0x459   : > { %4304 = vmatprep.subr.mxu1 %v4097_v41  ;;  %4381 = vmatprep.subr.mxu0 %v4099_v62  ;;  %v4049_v41 = vld [vmem:[%s8689_s10 + $0x1128] sm:$0xff]  ;;  %v4051_v62 = vld [vmem:[%s8689_s10 + $0x1138] sm:$0xff] }
 0x45a   : > { %4305 = vmatpush1.msra.mxu1 %v4096_v63  ;;  %4382 = vmatpush1.msra.mxu0 %v4098_v32  ;;  %v8410_v12 = vpop.f32.mrf.mxu1  ;;  %v8412_v1 = vpop.f32.mrf.mxu0  ;;  %v4041_v63 = vld [vmem:[%s8689_s10 + $0x10e8] sm:$0xff]  ;;  %v4043_v32 = vld [vmem:[%s8689_s10 + $0x10f8] sm:$0xff] }
 0x45b   : > { %4306 = vmatprep.subr.mxu1 %v4089_v0  ;;  %4383 = vmatprep.subr.mxu0 %v4091_v53  ;;  %v4040_v0 = vld [vmem:[%s8689_s10 + $0x10e0] sm:$0xff]  ;;  %v4042_v53 = vld [vmem:[%s8689_s10 + $0x10f0] sm:$0xff] }
 0x45c   : > { %4307 = vmatpush1.msra.mxu1 %v4088_v54  ;;  %4384 = vmatpush1.msra.mxu0 %v4090_v9  ;;  %v4033_v54 = vld [vmem:[%s8689_s10 + $0x10a8] sm:$0xff]  ;;  %v4035_v9 = vld [vmem:[%s8689_s10 + $0x10b8] sm:$0xff] }
 0x45d   : > { %4308 = vmatprep.subr.mxu1 %v4081_v61  ;;  %4385 = vmatprep.subr.mxu0 %v4083_v11  ;;  %v4032_v61 = vld [vmem:[%s8689_s10 + $0x10a0] sm:$0xff]  ;;  %v4034_v11 = vld [vmem:[%s8689_s10 + $0x10b0] sm:$0xff] }
 0x45e   : > { %4309 = vmatpush1.msra.mxu1 %v4080_v28  ;;  %4386 = vmatpush1.msra.mxu0 %v4082_v20  ;;  %v8438_v17 = vpop.f32.mrf.mxu1  ;;  %v8440_v38 = vpop.f32.mrf.mxu0  ;;  %v4025_v28 = vld [vmem:[%s8689_s10 + $0x1068] sm:$0xff]  ;;  %v4027_v20 = vld [vmem:[%s8689_s10 + $0x1078] sm:$0xff] }
 0x45f   : > { %4310 = vmatprep.subr.mxu1 %v4073_v10  ;;  %4387 = vmatprep.subr.mxu0 %v4075_v24  ;;  %v4024_v10 = vld [vmem:[%s8689_s10 + $0x1060] sm:$0xff]  ;;  %v4026_v24 = vld [vmem:[%s8689_s10 + $0x1070] sm:$0xff] }
 0x460   : > { %4311 = vmatpush1.msra.mxu1 %v4072_v25  ;;  %4388 = vmatpush1.msra.mxu0 %v4074_v27  ;;  %v3002_v44 = vpop.f32.mrf.mxu1  ;;  %v3079_v52 = vpop.f32.mrf.mxu0  ;;  %v4017_v25 = vld [vmem:[%s8689_s10 + $0x1028] sm:$0xff]  ;;  %v4019_v27 = vld [vmem:[%s8689_s10 + $0x1038] sm:$0xff] }
 0x461   : > { %4312 = vmatprep.subr.mxu1 %v4065_v33  ;;  %4389 = vmatprep.subr.mxu0 %v4067_v34  ;;  %v8461_v57 = vadd.f32 %v3002_v44, %v8281_v15  ;;  %v8464_v58 = vadd.f32 %v3079_v52, %v8283_v16  ;;  %v4048_v15 = vld [vmem:[%s8689_s10 + $0x1120] sm:$0xff]  ;;  %v4050_v16 = vld [vmem:[%s8689_s10 + $0x1130] sm:$0xff] }
 0x462   : > { %4313 = vmatpush1.msra.mxu1 %v4064_v40  ;;  %4390 = vmatpush1.msra.mxu0 %v4066_v26  ;;  %v4016_v33 = vld [vmem:[%s8689_s10 + $0x1020] sm:$0xff]  ;;  %v4018_v34 = vld [vmem:[%s8689_s10 + $0x1030] sm:$0xff] }
 0x463   : > { %8693 = vst [vmem:[#allocation2_spill] sm:$0xff] %v8461_v57  ;;  %8694 = vst [vmem:[#allocation3_spill] sm:$0xff] %v8464_v58  ;;  %4314 = vmatprep.subr.mxu1 %v4057_v48  ;;  %4391 = vmatprep.subr.mxu0 %v4059_v50  ;;  %v4476_v58 = vsub.s32 2, %v6076_v45  ;;  %v2920_v57 = vadd.f32 %v8318_v30, %v8130_v14  ;;  %v2849_v14 = vadd.f32 %v8372_v60, %v8184_v36 }
 0x464   : > { %4315 = vmatpush1.msra.mxu1 %v4056_v35  ;;  %4392 = vmatpush1.msra.mxu0 %v4058_v55 }
 0x465   : > { %4316 = vmatprep.subr.mxu1 %v4049_v41  ;;  %4393 = vmatprep.subr.mxu0 %v4051_v62 }
 0x466   : > { %4317 = vmatpush1.msra.mxu1 %v4048_v15  ;;  %4394 = vmatpush1.msra.mxu0 %v4050_v16 }
 0x467   : > { %4318 = vmatprep.subr.mxu1 %v4041_v63  ;;  %4395 = vmatprep.subr.mxu0 %v4043_v32 }
 0x468   : > { %4319 = vmatpush1.msra.mxu1 %v4040_v0  ;;  %4396 = vmatpush1.msra.mxu0 %v4042_v53 }
 0x469   : > { %4320 = vmatprep.subr.mxu1 %v4033_v54  ;;  %4397 = vmatprep.subr.mxu0 %v4035_v9 }
 0x46a   : > { %4321 = vmatpush1.msra.mxu1 %v4032_v61  ;;  %4398 = vmatpush1.msra.mxu0 %v4034_v11 }
 0x46b   : > { %4322 = vmatprep.subr.mxu1 %v4025_v28  ;;  %4399 = vmatprep.subr.mxu0 %v4027_v20 }
 0x46c   : > { %4323 = vmatpush1.msra.mxu1 %v4024_v10  ;;  %4400 = vmatpush1.msra.mxu0 %v4026_v24 }
 0x46d   : > { %4324 = vmatprep.subr.mxu1 %v4017_v25  ;;  %4401 = vmatprep.subr.mxu0 %v4019_v27 }
 0x46e   : > { %4325 = vmatpush1.msra.mxu1 %v4016_v33  ;;  %4358 = vmatprep.mubr.f32.mxu1 %v5123_v7 }
 0x46f   : > { %4402 = vmatpush1.msra.mxu0 %v4018_v34  ;;  %4435 = vmatprep.mubr.f32.mxu0 %v5123_v7  ;;  %v2841_v34 = vadd.f32 %v8289_v18, %v8098_v2  ;;  %v2847_v2 = vadd.f32 %v8342_v46, %v8156_v21 }
 0x470   : > { %4359 = vmatmul.mubr.f32.vlgmr.msra.gmra.mxu1 %v8299_v23  ;;  %4436 = vmatmul.mubr.f32.vlgmr.msra.gmra.mxu0 %v8299_v23 }
 0x471   : > { %4364 = vmatprep.mubr.f32.mxu1 %v5123_v7  ;;  %4441 = vmatprep.mubr.f32.mxu0 %v5123_v7 }
 0x474   : > { %4365 = vmatmul.mubr.f32.gmra.mxu1 %v8334_v39  ;;  %4442 = vmatmul.mubr.f32.gmra.mxu0 %v8334_v39 }
 0x47c   : > { %v3288_v40 = vpop.f32.mrf.mxu1  ;;  %v3365_v26 = vpop.f32.mrf.mxu0 }
 0x47d   : > { %v3530_v18 = vadd.f32 %v3288_v40, %v2841_v34 }
 0x47e   : > { %v3290_v48 = vpop.f32.mrf.mxu1  ;;  %v3367_v50 = vpop.f32.mrf.mxu0 }
 0x482   : > { %v3294_v44 = vpop.f32.mrf.mxu1  ;;  %v3371_v52 = vpop.f32.mrf.mxu0 }
 0x484   : > { %v8534_v35 = vpop.f32.mrf.mxu1  ;;  %v8536_v55 = vpop.f32.mrf.mxu0 }
 0x4a0   : > { %v8538_v41 = vpop.f32.mrf.mxu1  ;;  %v8540_v23 = vpop.f32.mrf.mxu0 }
 0x4a2   : > { %v8542_v62 = vpop.f32.mrf.mxu1  ;;  %v8544_v7 = vpop.f32.mrf.mxu0 }
 0x4a6   : > { %v8546_v15 = vpop.f32.mrf.mxu1  ;;  %v8548_v39 = vpop.f32.mrf.mxu0 }
 0x4a8   : > { %v8550_v16 = vpop.f32.mrf.mxu1  ;;  %v8552_v63 = vpop.f32.mrf.mxu0 }
 0x4a9   : > { %8695 = vst [vmem:[#allocation4_spill] sm:$0xff] %v8550_v16  ;;  %8696 = vst [vmem:[#allocation5_spill] sm:$0xff] %v8552_v63  ;;  %v2918_v63 = vadd.f32 %v8291_v19, %v8100_v3  ;;  %v2843_v16 = vadd.f32 %v8316_v29, %v8128_v13  ;;  %v2924_v3 = vadd.f32 %v8344_v47, %v8158_v22  ;;  %v8588_v13 = vld [vmem:[%s8691_s12] sm:$0xff] }
 0x4aa   : > { %v2926_v29 = vadd.f32 %v8374_v49, %v8186_v37  ;;  %v4527_v36 = vrot.slane %v8588_v13, %v6079_v51  ;;  %v4535_v37 = vrot.slane %v8588_v13, %v4476_v58 }
 0x4ab   : > { %v3532_v19 = vadd.f32 %v3365_v26, %v2918_v63  ;;  %v3531_v30 = vadd.f32 %v3290_v48, %v2843_v16  ;;  %v3540_v34 = vadd.f32 %v3371_v52, %v2924_v3 }
 0x4ac   : > { %v3541_v52 = vadd.f32 %v8536_v55, %v2926_v29 }
 0x4c4   : > { %v3742_v32 = vpop.f32.mrf.mxu1  ;;  %v3819_v0 = vpop.f32.mrf.mxu0 }
 0x4c5   : > { %v3984_v22 = vadd.f32 %v3742_v32, %v3530_v18  ;;  %v3986_v47 = vadd.f32 %v3819_v0, %v3532_v19  ;;  %v3538_v0 = vadd.f32 %v3294_v44, %v2847_v2  ;;  %v4531_v19 = vrot.slane %v8588_v13, %v6085_v56 }
 0x4c6   : > { %v3744_v53 = vpop.f32.mrf.mxu1  ;;  %v3821_v54 = vpop.f32.mrf.mxu0  ;;  %v3539_v44 = vadd.f32 %v8534_v35, %v2849_v14 }
 0x4c7   : > { %v3985_v48 = vadd.f32 %v3744_v53, %v3531_v30 }
 0x4ca   : > { %v3748_v9 = vpop.f32.mrf.mxu1  ;;  %v3825_v61 = vpop.f32.mrf.mxu0 }
 0x4cb   : > { %v3992_v53 = vadd.f32 %v3748_v9, %v3538_v0  ;;  %v3072_v0 = vadd.f32 %v8396_v8, %v8202_v43  ;;  %v4496_v43 = vsub.s32 7, %v6076_v45 }
 0x4cc   : > { %v3750_v11 = vpop.f32.mrf.mxu1  ;;  %v3827_v28 = vpop.f32.mrf.mxu0 }
 0x4cd   : > { %v3993_v3 = vadd.f32 %v3750_v11, %v3539_v44  ;;  %v3995_v30 = vadd.f32 %v3827_v28, %v3541_v52  ;;  %v8708_v44 = vld [vmem:[#allocation4_spill] sm:$0xff] }
 0x4e8   : > { %v8554_v20 = vpop.f32.mrf.mxu1  ;;  %v8556_v10 = vpop.f32.mrf.mxu0 }
 0x4e9   : > { %8697 = vst [vmem:[#allocation6_spill] sm:$0xff] %v8556_v10 }
 0x4ea   : > { %v8558_v24 = vpop.f32.mrf.mxu1  ;;  %v8560_v25 = vpop.f32.mrf.mxu0 }
 0x4eb   : > { %8698 = vst [vmem:[#allocation7_spill] sm:$0xff] %v8558_v24  ;;  %8699 = vst [vmem:[#allocation8_spill] sm:$0xff] %v8560_v25  ;;  %v3533_v25 = vadd.f32 %v3367_v50, %v2920_v57 }
 0x4ed   : > { %v3987_v50 = vadd.f32 %v3821_v54, %v3533_v25 }
 0x4ee   : > { %v8562_v27 = vpop.f32.mrf.mxu1  ;;  %v8564_v33 = vpop.f32.mrf.mxu0 }
 0x4ef   : > { %8700 = vst [vmem:[#allocation9_spill] sm:$0xff] %v8562_v27  ;;  %8701 = vst [vmem:[#allocation10_spill] sm:$0xff] %v8564_v33  ;;  %v8578_v27 = vld [vmem:[%s8690_s11] sm:$0xff]  ;;  %v4480_v33 = vsub.s32 3, %v6076_v45 }
 0x4f0   : > { %v8594_v21 = vpop.f32.mrf.mxu1  ;;  %v8596_v46 = vpop.f32.mrf.mxu0  ;;  %v4469_v40 = vrot.slane %v8578_v27, %v6079_v51  ;;  %v4477_v26 = vrot.slane %v8578_v27, %v4476_v58  ;;  %v4473_v49 = vrot.slane %v8578_v27, %v6085_v56  ;;  %v3994_v56 = vadd.f32 %v3825_v61, %v3540_v34 }
 0x4f1   : > { %8702 = vst [vmem:[#allocation11_spill] sm:$0xff] %v8594_v21  ;;  %8703 = vst [vmem:[#allocation12_spill] sm:$0xff] %v8596_v46  ;;  %v4481_v57 = vrot.slane %v8578_v27, %v4480_v33  ;;  %v4539_v46 = vrot.slane %v8588_v13, %v4480_v33 }
 0x4f2   : > { %v8705_v34 = vld [vmem:[#allocation7_spill] sm:$0xff] }
 0x50c   : > { %v4206_v63 = vpop.f32.mrf.mxu1  ;;  %v4283_v60 = vpop.f32.mrf.mxu0 }
 0x50d   : > { %v4448_v16 = vadd.f32 %v4206_v63, %v3984_v22  ;;  %v4450_v32 = vadd.f32 %v4283_v60, %v3986_v47 }
 0x50e   : > { %v4208_v18 = vpop.f32.mrf.mxu1  ;;  %v4285_v51 = vpop.f32.mrf.mxu0 }
 0x50f   : > { %v4506_v58 = vmul.f32 %v4469_v40, %v4448_v16  ;;  %v4508_v21 = vmul.f32 %v4477_v26, %v4450_v32  ;;  %v4449_v24 = vadd.f32 %v4208_v18, %v3985_v48  ;;  %v4451_v10 = vadd.f32 %v4285_v51, %v3987_v50  ;;  %v8706_v18 = vld [vmem:[#allocation8_spill] sm:$0xff] }
 0x510   : > { %v2995_v32 = vadd.f32 %v8394_v6, %v8200_v42  ;;  %v4488_v42 = vsub.s32 5, %v6076_v45 }
 0x511   : > { %v4564_v54 = vadd.f32 %v4527_v36, %v4506_v58  ;;  %v4566_v25 = vadd.f32 %v4535_v37, %v4508_v21  ;;  %v4507_v33 = vmul.f32 %v4473_v49, %v4449_v24  ;;  %v4509_v2 = vmul.f32 %v4481_v57, %v4451_v10  ;;  %v8707_v58 = vld [vmem:[#allocation2_spill] sm:$0xff] }
 0x512   : > { %v4212_v22 = vpop.f32.mrf.mxu1  ;;  %v4289_v47 = vpop.f32.mrf.mxu0  ;;  %v3534_v6 = vadd.f32 %v8538_v41, %v2995_v32  ;;  %v3543_v52 = vadd.f32 %v8708_v44, %v8707_v58 }
 0x513   : > { %4580 = vst [vmem:[%s8614_s16] sm:$0xff] %v4564_v54  ;;  %4582 = vst [vmem:[%s8614_s16 + $0x10] sm:$0xff] %v4566_v25  ;;  %v4565_v63 = vadd.f32 %v4531_v19, %v4507_v33  ;;  %v4567_v60 = vadd.f32 %v4539_v46, %v4509_v2  ;;  %v4456_v35 = vadd.f32 %v4212_v22, %v3992_v53  ;;  %v8709_v53 = vld [vmem:[#allocation3_spill] sm:$0xff] }
 0x514   : > { %v4458_v55 = vadd.f32 %v4289_v47, %v3994_v56  ;;  %v4214_v9 = vpop.f32.mrf.mxu1  ;;  %v4291_v61 = vpop.f32.mrf.mxu0  ;;  %v8710_v56 = vld [vmem:[#allocation5_spill] sm:$0xff]  ;;  %v4547_v33 = vrot.slane %v8588_v13, %v4488_v42 }
 0x515   : > { %4581 = vst [vmem:[%s8614_s16 + $0x8] sm:$0xff] %v4565_v63  ;;  %4583 = vst [vmem:[%s8614_s16 + $0x18] sm:$0xff] %v4567_v60  ;;  %v4514_v24 = vmul.f32 %v4469_v40, %v4456_v35  ;;  %v4457_v11 = vadd.f32 %v4214_v9, %v3993_v3  ;;  %v4459_v28 = vadd.f32 %v4291_v61, %v3995_v30  ;;  %v8711_v63 = vld [vmem:[#allocation9_spill] sm:$0xff]  ;;  %v8712_v35 = vld [vmem:[#allocation10_spill] sm:$0xff] }
 0x516   : > { %v4516_v10 = vmul.f32 %v4477_v26, %v4458_v55  ;;  %v2997_v40 = vadd.f32 %v8410_v12, %v8228_v59  ;;  %v3074_v26 = vadd.f32 %v8412_v1, %v8230_v31  ;;  %v3536_v59 = vadd.f32 %v8540_v23, %v3072_v0  ;;  %v8713_v9 = vld [vmem:[#allocation11_spill] sm:$0xff] }
 0x517   : > { %v4572_v14 = vadd.f32 %v4527_v36, %v4514_v24  ;;  %v4515_v21 = vmul.f32 %v4473_v49, %v4457_v11  ;;  %v4517_v48 = vmul.f32 %v4481_v57, %v4459_v28  ;;  %v4484_v36 = vsub.s32 4, %v6076_v45  ;;  %v8714_v24 = vld [vmem:[#allocation12_spill] sm:$0xff] }
 0x518   : > { %v4574_v29 = vadd.f32 %v4535_v37, %v4516_v10  ;;  %v4492_v37 = vsub.s32 6, %v6076_v45  ;;  %v3078_v49 = vadd.f32 %v8440_v38, %v8258_v5  ;;  %v3535_v31 = vadd.f32 %v8542_v62, %v2997_v40 }
 0x519   : > { %4588 = vst [vmem:[%s8614_s16 + $0x40] sm:$0xff] %v4572_v14  ;;  %v4573_v50 = vadd.f32 %v4531_v19, %v4515_v21  ;;  %v4575_v16 = vadd.f32 %v4539_v46, %v4517_v48  ;;  %v3001_v46 = vadd.f32 %v8438_v17, %v8256_v4  ;;  %v3537_v8 = vadd.f32 %v8544_v7, %v3074_v26  ;;  %v8704_v17 = vld [vmem:[#allocation6_spill] sm:$0xff] }
 0x51a   : > { %4590 = vst [vmem:[%s8614_s16 + $0x50] sm:$0xff] %v4574_v29  ;;  %v3544_v1 = vadd.f32 %v8548_v39, %v3078_v49  ;;  %v3988_v4 = vadd.f32 %v8554_v20, %v3534_v6  ;;  %v3990_v5 = vadd.f32 %v8704_v17, %v3536_v59  ;;  %v4485_v38 = vrot.slane %v8578_v27, %v4484_v36 }
 0x51b   : > { %4589 = vst [vmem:[%s8614_s16 + $0x48] sm:$0xff] %v4573_v50  ;;  %4591 = vst [vmem:[%s8614_s16 + $0x58] sm:$0xff] %v4575_v16  ;;  %v3542_v12 = vadd.f32 %v8546_v15, %v3001_v46  ;;  %v4493_v45 = vrot.slane %v8578_v27, %v4492_v37  ;;  %v4543_v41 = vrot.slane %v8588_v13, %v4484_v36 }
 0x51c   : > { %v4551_v62 = vrot.slane %v8588_v13, %v4492_v37  ;;  %v4489_v7 = vrot.slane %v8578_v27, %v4488_v42  ;;  %v4497_v15 = vrot.slane %v8578_v27, %v4496_v43  ;;  %v3989_v39 = vadd.f32 %v8705_v34, %v3535_v31 }
 0x51d   : > { %v3991_v20 = vadd.f32 %v8706_v18, %v3537_v8  ;;  %v3545_v54 = vadd.f32 %v8710_v56, %v8709_v53  ;;  %v4555_v3 = vrot.slane %v8588_v13, %v4496_v43  ;;  %v3996_v60 = vadd.f32 %v8711_v63, %v3542_v12 }
 0x51e   : > { %v3998_v55 = vadd.f32 %v8712_v35, %v3544_v1  ;;  %v3997_v61 = vadd.f32 %v8713_v9, %v3543_v52 }
 0x51f   : > { %v3999_v10 = vadd.f32 %v8714_v24, %v3545_v54 }
 0x530   : > { %v4360_v57 = vpop.f32.mrf.mxu1  ;;  %v4437_v23 = vpop.f32.mrf.mxu0 }
 0x531   : > { %v4452_v19 = vadd.f32 %v4360_v57, %v3988_v4  ;;  %v4454_v51 = vadd.f32 %v4437_v23, %v3990_v5 }
 0x532   : > { %v4362_v25 = vpop.f32.mrf.mxu1  ;;  %v4439_v2 = vpop.f32.mrf.mxu0 }
 0x533   : > { %v4510_v30 = vmul.f32 %v4485_v38, %v4452_v19  ;;  %v4512_v27 = vmul.f32 %v4493_v45, %v4454_v51  ;;  %v4453_v22 = vadd.f32 %v4362_v25, %v3989_v39  ;;  %v4455_v47 = vadd.f32 %v4439_v2, %v3991_v20 }
 0x534   : > { %v4366_v11 = vpop.f32.mrf.mxu1  ;;  %v4443_v28 = vpop.f32.mrf.mxu0 }
 0x535   : > { %v4568_v14 = vadd.f32 %v4543_v41, %v4510_v30  ;;  %v4570_v29 = vadd.f32 %v4551_v62, %v4512_v27  ;;  %v4511_v13 = vmul.f32 %v4489_v7, %v4453_v22  ;;  %v4513_v21 = vmul.f32 %v4497_v15, %v4455_v47 }
 0x536   : > { %v4460_v48 = vadd.f32 %v4366_v11, %v3996_v60  ;;  %v4462_v50 = vadd.f32 %v4443_v28, %v3998_v55  ;;  %v4368_v16 = vpop.f32.mrf.mxu1  ;;  %v4445_v32 = vpop.f32.mrf.mxu0 }
 0x537   : > { %4584 = vst [vmem:[%s8614_s16 + $0x20] sm:$0xff] %v4568_v14  ;;  %4586 = vst [vmem:[%s8614_s16 + $0x30] sm:$0xff] %v4570_v29  ;;  %v4569_v0 = vadd.f32 %v4547_v33, %v4511_v13  ;;  %v4571_v40 = vadd.f32 %v4555_v3, %v4513_v21  ;;  %v4461_v26 = vadd.f32 %v4368_v16, %v3997_v61 }
 0x538   : > { %v4463_v36 = vadd.f32 %v4445_v32, %v3999_v10  ;;  %v4518_v37 = vmul.f32 %v4485_v38, %v4460_v48  ;;  %v4520_v46 = vmul.f32 %v4493_v45, %v4462_v50 }
 0x539   : > { %4585 = vst [vmem:[%s8614_s16 + $0x28] sm:$0xff] %v4569_v0  ;;  %4587 = vst [vmem:[%s8614_s16 + $0x38] sm:$0xff] %v4571_v40  ;;  %v4519_v49 = vmul.f32 %v4489_v7, %v4461_v26 }
 0x53a   : > { %v4521_v42 = vmul.f32 %v4497_v15, %v4463_v36  ;;  %v4576_v43 = vadd.f32 %v4543_v41, %v4518_v37  ;;  %v4578_v6 = vadd.f32 %v4551_v62, %v4520_v46 }
 0x53b   : > { %v4577_v59 = vadd.f32 %v4547_v33, %v4519_v49 }
 0x53c   : > { %v4579_v31 = vadd.f32 %v4555_v3, %v4521_v42  ;;  %4592 = vst [vmem:[%s8614_s16 + $0x60] sm:$0xff] %v4576_v43  ;;  %4594 = vst [vmem:[%s8614_s16 + $0x70] sm:$0xff] %v4578_v6 }
 0x53d   : > { %4593 = vst [vmem:[%s8614_s16 + $0x68] sm:$0xff] %v4577_v59 }
 0x53e   : > { %4595 = vst [vmem:[%s8614_s16 + $0x78] sm:$0xff] %v4579_v31 }
 0x53f PF: > { %s23_s25 = sadd.s32 1, %s5121_s25  }
 0x540   : > { %p20_p4 = scmp.ge.s32.totalorder %s23_s25, 4  }
 0x542   :  { %22 = sbr.rel (!%p20_p4) target bundleno = 1 (0x1), region = 102 }

</bundles_post_ra>
